<compile_context>
chip_gen: v6e
topology: v6e:2x2x1
jax: 0.10.0
libtpu: 0.0.40
codegen_flags: <defaults>
</compile_context>

<pallas_src>
import numpy as np
import jax
import jax.numpy as jnp
from jax.experimental import pallas as pl
from jax.experimental.pallas import tpu as pltpu

# ---- module hyper-parameters -------------------------------------------------
C_IN = 3            # input_channels
ACT_DIM = 4         # action_space_dim
H_IN = W_IN = 80    # forced by linear1 in_features == 648

C1_OUT, K1 = 6, 3
C2_OUT, K2 = 8, 5

H1 = H_IN - K1 + 1          # 78  conv1 output (stride 1, VALID)
P1 = H1 // 2                # 39  after 2x2 max-pool
H2 = (P1 - K2) // 2 + 1     # 18  conv2 output (stride 2, VALID)
P2 = H2 // 2                # 9   after 2x2 max-pool
FLAT = C2_OUT * P2 * P2     # 648
HID1, HID2 = 128, 64

K1_COLS = C_IN * W_IN       # 240  channel-stacked input row width
LHS1_K = K1 * K1_COLS       # 720  conv1 contraction depth
S1_PAD = 256                # conv1 pooled width 234 padded to 2 lane tiles
C2_PAD = 128                # conv2 pooled width 72 padded to 1 lane tile
S1_ROWS = 2 * (P1 + 1)      # 80   two row-parity halves, each padded 39 -> 40


# ---- fused Pallas kernel -----------------------------------------------------
def _cnn_kernel(lhs_ref, b1_ref, b2_ref, pk2_ref, rp_ref,
                w1_ref, w2_ref, w3_ref, o_ref, flat_ref):
    f32, bf16 = jnp.float32, jnp.bfloat16
    dot = lambda a, b: jnp.dot(a, b, preferred_element_type=f32)

    # ---- conv1 (3x3,s1) + 2x2 max-pool: ONE banded MXU matmul --------------------
    r = dot(lhs_ref[...], b1_ref[...])                       # (80, 512) f32
    p1 = jnp.maximum(jnp.maximum(r[:40, :256], r[:40, 256:]),
                     jnp.maximum(r[40:, :256], r[40:, 256:]))  # (40, 256), aligned splits
    s1 = jnp.tanh(p1).astype(bf16)                           # tanh after pool (exact)

    # ---- conv2 (5x5,s2); stride-2 + BOTH pool-column parities folded into band ---
    acc = jnp.zeros((H2, 2 * C2_PAD), f32)
    for kh in range(K2):
        l_kh = dot(pk2_ref[kh], s1).astype(bf16)             # (18,256) exact row select
        acc = acc + dot(l_kh, b2_ref[kh])                    # (18,256)
    cm = jnp.maximum(acc[:, :C2_PAD], acc[:, C2_PAD:]).astype(bf16)   # (18,128)

    # ---- 2x2 max-pool over conv2 rows, then tanh ---------------------------------
    feat = jnp.tanh(jnp.maximum(dot(rp_ref[0], cm), dot(rp_ref[1], cm)))  # (9,128) f32

    # ---- lin1 as ONE matmul: lane-aligned flatten (9,128) -> (1,1152) ------------
    for i in range(P2):
        flat_ref[:, 128 * i:128 * (i + 1)] = feat[i:i + 1, :]
    h1 = jnp.tanh(dot(flat_ref[...].astype(bf16), w1_ref[...])).astype(bf16)  # (1,128)
    h2 = jnp.tanh(dot(h1, w2_ref[...])).astype(bf16)                          # (1,64)
    o_ref[...] = dot(h2, w3_ref[...])                                         # (1,128)


# ---- one-time (per weight set) host-side parameter preparation -----------------
def make_cnn_params(conv1_w, conv2_w, lin1_w, lin2_w, out_w):
    """Build the banded / permuted kernel weights ONCE (e.g. at ES policy-update
    time).  Returns a pytree of bf16 device arrays consumed by cnn_forward."""
    w1 = np.asarray(conv1_w, np.float32)
    w2 = np.asarray(conv2_w, np.float32)
    l1 = np.asarray(lin1_w, np.float32)
    l2 = np.asarray(lin2_w, np.float32)
    l3 = np.asarray(out_w, np.float32)

    # conv1 band (720, 512): [pool-col parity 0 | parity 1], each padded 234 -> 256.
    band1 = np.zeros((LHS1_K, 2 * S1_PAD), np.float32)
    co, ci, kh, kw, j = np.meshgrid(np.arange(C1_OUT), np.arange(C_IN), np.arange(K1),
                                    np.arange(K1), np.arange(P1), indexing="ij")
    for q in (0, 1):
        rows = (kh * K1_COLS + ci * W_IN + 2 * j + q + kw).ravel()
        cols = (q * S1_PAD + co * P1 + j).ravel()
        band1[rows, cols] = w1[co, ci, kh, kw].ravel()

    # conv2 bands (5, 256, 256): stride-2 + BOTH pool-col parities folded per kh tap.
    band2 = np.zeros((K2, S1_PAD, 2 * C2_PAD), np.float32)
    q, co, ci, kh, kw, j = np.meshgrid(np.arange(2), np.arange(C2_OUT),
                                       np.arange(C1_OUT), np.arange(K2),
                                       np.arange(K2), np.arange(P2), indexing="ij")
    band2[kh.ravel(),
          (ci * P1 + 4 * j + 2 * q + kw).ravel(),
          (q * C2_PAD + co * P2 + j).ravel()] = w2[co, ci, kh, kw].ravel()

    # conv2 row pickers (5, 18, 40): pick s1 row 2*r + kh  (col 39 = padded zero row).
    pick2 = np.zeros((K2, H2, P1 + 1), np.float32)
    kk, rr = np.meshgrid(np.arange(K2), np.arange(H2), indexing="ij")
    pick2[kk.ravel(), rr.ravel(), (2 * rr + kk).ravel()] = 1.0

    # row-pool pickers (2, 9, 18): pick conv2 row 2*p + a.
    rowpool = np.zeros((2, P2, H2), np.float32)
    aa, pp = np.meshgrid(np.arange(2), np.arange(P2), indexing="ij")
    rowpool[aa.ravel(), pp.ravel(), (2 * pp + aa).ravel()] = 1.0

    # lin1 (1152, 128): torch flat index co*81 + p*9 + j  ->  kernel index p*128 + co*9 + j.
    w1flat = np.zeros((P2 * 128, HID1), np.float32)
    p, co, j = np.meshgrid(np.arange(P2), np.arange(C2_OUT), np.arange(P2), indexing="ij")
    w1flat[(p * 128 + co * P2 + j).ravel(), :] = \
        l1.T[(co * P2 * P2 + p * P2 + j).ravel(), :]

    # out head padded to 128 lanes (zero columns), so the output block is lane-dense.
    w3pad = np.zeros((HID2, 128), np.float32)
    w3pad[:, :ACT_DIM] = l3.T

    bf = jnp.bfloat16
    return dict(band1=jnp.asarray(band1, bf), band2=jnp.asarray(band2, bf),
                pick2=jnp.asarray(pick2, bf), rowpool=jnp.asarray(rowpool, bf),
                w1=jnp.asarray(w1flat, bf), w2=jnp.asarray(l2.T, bf),
                w3=jnp.asarray(w3pad, bf))


# ---- batched forward -----------------------------------------------------------
def cnn_forward(xb, params):
    """xb: (B, C, H, W) float observations; params: output of make_cnn_params."""
    f32, bf16 = jnp.float32, jnp.bfloat16
    B = xb.shape[0]
    xb = xb.astype(f32)

    # conv1 LHS (B, 80, 720): per pooled output row, the 3 kh-shifted channel-stacked
    # input rows; the two pool-row parities stacked along sublanes, padded 39 -> 40
    # each so the in-kernel row split is sublane-tile aligned.
    xm = jnp.transpose(xb, (0, 2, 1, 3)).reshape(B, H_IN, K1_COLS)      # (B, 80, 240)

    def lhs(p):
        blocks = [xm[:, p + kh: p + kh + 2 * P1 - 1: 2, :] for kh in range(K1)]
        return jnp.concatenate(blocks, axis=2)                           # (B, 39, 720)

    zrow = jnp.zeros((B, 1, LHS1_K), f32)
    lhs_full = jnp.concatenate([lhs(0), zrow, lhs(1), zrow], axis=1).astype(bf16)

    def resident(shape):   # full-array block, constant index_map -> stays in VMEM
        return pl.BlockSpec(shape, lambda b: (0,) * len(shape))

    out = pl.pallas_call(
        _cnn_kernel,
        grid=(B,),
        out_shape=jax.ShapeDtypeStruct((B, 1, 128), f32),
        in_specs=[
            pl.BlockSpec((None, S1_ROWS, LHS1_K), lambda b: (b, 0, 0)),   # per-obs LHS
            resident((LHS1_K, 2 * S1_PAD)),                               # conv1 band
            resident((K2, S1_PAD, 2 * C2_PAD)),                           # conv2 bands
            resident((K2, H2, P1 + 1)),                                   # conv2 pickers
            resident((2, P2, H2)),                                        # row-pool pickers
            resident((P2 * 128, HID1)),                                   # lin1
            resident((HID1, HID2)),                                       # lin2
            resident((HID2, 128)),                                        # out (padded)
        ],
        out_specs=pl.BlockSpec((None, 1, 128), lambda b: (b, 0, 0)),
        scratch_shapes=[pltpu.VMEM((1, P2 * 128), f32)],                  # lin1 flatten
        compiler_params=pltpu.CompilerParams(dimension_semantics=("parallel",)),
    )(lhs_full, params["band1"], params["band2"], params["pick2"], params["rowpool"],
      params["w1"], params["w2"], params["w3"])
    return out[:, 0, :ACT_DIM]


# ---- pure-JAX reference (sanity check) ------------------------------------------
def _reference(x, conv1_w, conv2_w, lin1_w, lin2_w, out_w):
    dn = ("NCHW", "OIHW", "NCHW")
    hp = jax.lax.Precision.HIGHEST
    x4 = x[None].astype(jnp.float32)
    c1 = jax.lax.conv_general_dilated(x4, conv1_w, (1, 1), "VALID",
                                      dimension_numbers=dn, precision=hp)
    p1 = jax.lax.reduce_window(jnp.tanh(c1), -jnp.inf, jax.lax.max,
                               (1, 1, 2, 2), (1, 1, 2, 2), "VALID")
    c2 = jax.lax.conv_general_dilated(p1, conv2_w, (2, 2), "VALID",
                                      dimension_numbers=dn, precision=hp)
    p2 = jax.lax.reduce_window(jnp.tanh(c2), -jnp.inf, jax.lax.max,
                               (1, 1, 2, 2), (1, 1, 2, 2), "VALID")
    flat = p2.reshape(-1)
    h1 = jnp.tanh(jnp.dot(flat, lin1_w.T, precision=hp))
    h2 = jnp.tanh(jnp.dot(h1, lin2_w.T, precision=hp))
    return jnp.dot(h2, out_w.T, precision=hp)


if __name__ == "__main__":
    key = jax.random.PRNGKey(0)
    k1, k2, k3, k4, k5, k6 = jax.random.split(key, 6)
    # deterministic synthetic parameters (PyTorch shape conventions)
    conv1_w = 0.10 * jax.random.normal(k1, (C1_OUT, C_IN, K1, K1), jnp.float32)
    conv2_w = 0.10 * jax.random.normal(k2, (C2_OUT, C1_OUT, K2, K2), jnp.float32)
    lin1_w = 0.05 * jax.random.normal(k3, (HID1, FLAT), jnp.float32)
    lin2_w = 0.05 * jax.random.normal(k4, (HID2, HID1), jnp.float32)
    out_w = 0.05 * jax.random.normal(k5, (ACT_DIM, HID2), jnp.float32)

    # small batch of observations: (B, C, H, W); H=W=80 is forced by linear1's 648
    B = 8
    x = jax.random.normal(k6, (B, C_IN, H_IN, W_IN), jnp.float32)

    params = make_cnn_params(conv1_w, conv2_w, lin1_w, lin2_w, out_w)   # once per weights
    fwd = jax.jit(cnn_forward)
    o = jax.block_until_ready(fwd(x, params))

    ref = jax.vmap(_reference, in_axes=(0, None, None, None, None, None))(
        x, conv1_w, conv2_w, lin1_w, lin2_w, out_w)
    assert o.shape == (B, ACT_DIM)
    err = float(jnp.max(jnp.abs(o - ref)))
    assert err < 5e-2, f"max abs err {err}"
    print("KERNEL_OK")
</pallas_src>

<mosaic_0001>
module attributes {stable_mosaic.version = 11 : i64} {
  func.func @_cnn_kernel(%arg0: i32, %arg1: memref<1x80x720xbf16, #tpu.memory_space<vmem>>, %arg2: memref<720x512xbf16, #tpu.memory_space<vmem>>, %arg3: memref<5x256x256xbf16, #tpu.memory_space<vmem>>, %arg4: memref<5x18x40xbf16, #tpu.memory_space<vmem>>, %arg5: memref<2x9x18xbf16, #tpu.memory_space<vmem>>, %arg6: memref<1152x128xbf16, #tpu.memory_space<vmem>>, %arg7: memref<128x64xbf16, #tpu.memory_space<vmem>>, %arg8: memref<64x128xbf16, #tpu.memory_space<vmem>>, %arg9: memref<1x1x128xf32, #tpu.memory_space<vmem>>, %arg10: memref<1x1152xf32, #tpu.memory_space<vmem>>) attributes {dimension_semantics = [#tpu.dimension_semantics<parallel>], iteration_bounds = array<i64: 8>, scalar_prefetch = 0 : i64, scratch_operands = 1 : i64, tpu.core_type = #tpu.core_type<tc>, window_params = [{transform_indices = @transform_0, window_bounds = array<i64: 1, 80, 720>}, {pipeline_mode = #tpu.pipeline_mode<synchronous>, transform_indices = @transform_1, window_bounds = array<i64: 720, 512>}, {pipeline_mode = #tpu.pipeline_mode<synchronous>, transform_indices = @transform_2, window_bounds = array<i64: 5, 256, 256>}, {pipeline_mode = #tpu.pipeline_mode<synchronous>, transform_indices = @transform_3, window_bounds = array<i64: 5, 18, 40>}, {pipeline_mode = #tpu.pipeline_mode<synchronous>, transform_indices = @transform_4, window_bounds = array<i64: 2, 9, 18>}, {pipeline_mode = #tpu.pipeline_mode<synchronous>, transform_indices = @transform_5, window_bounds = array<i64: 1152, 128>}, {pipeline_mode = #tpu.pipeline_mode<synchronous>, transform_indices = @transform_6, window_bounds = array<i64: 128, 64>}, {pipeline_mode = #tpu.pipeline_mode<synchronous>, transform_indices = @transform_7, window_bounds = array<i64: 64, 128>}, {transform_indices = @transform_8, window_bounds = array<i64: 1, 1, 128>}]} {
    %c0 = arith.constant 0 : index
    %c0_0 = arith.constant 0 : index
    %c0_1 = arith.constant 0 : index
    %0 = vector.load %arg1[%c0, %c0_0, %c0_1] : memref<1x80x720xbf16, #tpu.memory_space<vmem>>, vector<1x80x720xbf16>
    %1 = vector.shape_cast %0 : vector<1x80x720xbf16> to vector<80x720xbf16>
    %c0_2 = arith.constant 0 : index
    %c0_3 = arith.constant 0 : index
    %2 = vector.load %arg2[%c0_2, %c0_3] : memref<720x512xbf16, #tpu.memory_space<vmem>>, vector<720x512xbf16>
    %cst = arith.constant dense<0.000000e+00> : vector<80x512xf32>
    %3 = tpu.matmul %1, %2, %cst {dimension_numbers = #tpu.dot_dimension_numbers<[1], [0], [0], [1], [0, 0, 1, 1], [], []>} : vector<80x720xbf16>, vector<720x512xbf16>, vector<80x512xf32> -> vector<80x512xf32>
    %4 = vector.extract_strided_slice %3 {offsets = [0, 0], sizes = [40, 256], strides = [1, 1]} : vector<80x512xf32> to vector<40x256xf32>
    %5 = vector.extract_strided_slice %3 {offsets = [0, 256], sizes = [40, 256], strides = [1, 1]} : vector<80x512xf32> to vector<40x256xf32>
    %6 = arith.maximumf %4, %5 : vector<40x256xf32>
    %7 = vector.extract_strided_slice %3 {offsets = [40, 0], sizes = [40, 256], strides = [1, 1]} : vector<80x512xf32> to vector<40x256xf32>
    %8 = vector.extract_strided_slice %3 {offsets = [40, 256], sizes = [40, 256], strides = [1, 1]} : vector<80x512xf32> to vector<40x256xf32>
    %9 = arith.maximumf %7, %8 : vector<40x256xf32>
    %10 = arith.maximumf %6, %9 : vector<40x256xf32>
    %11 = math.tanh %10 : vector<40x256xf32>
    %12 = arith.truncf %11 : vector<40x256xf32> to vector<40x256xbf16>
    %cst_4 = arith.constant 0.000000e+00 : f32
    %13 = vector.broadcast %cst_4 : f32 to vector<18x256xf32>
    %c0_5 = arith.constant 0 : index
    %c0_6 = arith.constant 0 : index
    %c0_7 = arith.constant 0 : index
    %14 = vector.load %arg4[%c0_5, %c0_6, %c0_7] : memref<5x18x40xbf16, #tpu.memory_space<vmem>>, vector<1x18x40xbf16>
    %15 = vector.shape_cast %14 : vector<1x18x40xbf16> to vector<18x40xbf16>
    %cst_8 = arith.constant dense<0.000000e+00> : vector<18x256xf32>
    %16 = tpu.matmul %15, %12, %cst_8 {dimension_numbers = #tpu.dot_dimension_numbers<[1], [0], [0], [1], [0, 0, 1, 1], [], []>} : vector<18x40xbf16>, vector<40x256xbf16>, vector<18x256xf32> -> vector<18x256xf32>
    %17 = arith.truncf %16 : vector<18x256xf32> to vector<18x256xbf16>
    %c0_9 = arith.constant 0 : index
    %c0_10 = arith.constant 0 : index
    %c0_11 = arith.constant 0 : index
    %18 = vector.load %arg3[%c0_9, %c0_10, %c0_11] : memref<5x256x256xbf16, #tpu.memory_space<vmem>>, vector<1x256x256xbf16>
    %19 = vector.shape_cast %18 : vector<1x256x256xbf16> to vector<256x256xbf16>
    %cst_12 = arith.constant dense<0.000000e+00> : vector<18x256xf32>
    %20 = tpu.matmul %17, %19, %cst_12 {dimension_numbers = #tpu.dot_dimension_numbers<[1], [0], [0], [1], [0, 0, 1, 1], [], []>} : vector<18x256xbf16>, vector<256x256xbf16>, vector<18x256xf32> -> vector<18x256xf32>
    %21 = arith.addf %13, %20 : vector<18x256xf32>
    %c1 = arith.constant 1 : index
    %c0_13 = arith.constant 0 : index
    %c0_14 = arith.constant 0 : index
    %22 = vector.load %arg4[%c1, %c0_13, %c0_14] : memref<5x18x40xbf16, #tpu.memory_space<vmem>>, vector<1x18x40xbf16>
    %23 = vector.shape_cast %22 : vector<1x18x40xbf16> to vector<18x40xbf16>
    %cst_15 = arith.constant dense<0.000000e+00> : vector<18x256xf32>
    %24 = tpu.matmul %23, %12, %cst_15 {dimension_numbers = #tpu.dot_dimension_numbers<[1], [0], [0], [1], [0, 0, 1, 1], [], []>} : vector<18x40xbf16>, vector<40x256xbf16>, vector<18x256xf32> -> vector<18x256xf32>
    %25 = arith.truncf %24 : vector<18x256xf32> to vector<18x256xbf16>
    %c1_16 = arith.constant 1 : index
    %c0_17 = arith.constant 0 : index
    %c0_18 = arith.constant 0 : index
    %26 = vector.load %arg3[%c1_16, %c0_17, %c0_18] : memref<5x256x256xbf16, #tpu.memory_space<vmem>>, vector<1x256x256xbf16>
    %27 = vector.shape_cast %26 : vector<1x256x256xbf16> to vector<256x256xbf16>
    %cst_19 = arith.constant dense<0.000000e+00> : vector<18x256xf32>
    %28 = tpu.matmul %25, %27, %cst_19 {dimension_numbers = #tpu.dot_dimension_numbers<[1], [0], [0], [1], [0, 0, 1, 1], [], []>} : vector<18x256xbf16>, vector<256x256xbf16>, vector<18x256xf32> -> vector<18x256xf32>
    %29 = arith.addf %21, %28 : vector<18x256xf32>
    %c2 = arith.constant 2 : index
    %c0_20 = arith.constant 0 : index
    %c0_21 = arith.constant 0 : index
    %30 = vector.load %arg4[%c2, %c0_20, %c0_21] : memref<5x18x40xbf16, #tpu.memory_space<vmem>>, vector<1x18x40xbf16>
    %31 = vector.shape_cast %30 : vector<1x18x40xbf16> to vector<18x40xbf16>
    %cst_22 = arith.constant dense<0.000000e+00> : vector<18x256xf32>
    %32 = tpu.matmul %31, %12, %cst_22 {dimension_numbers = #tpu.dot_dimension_numbers<[1], [0], [0], [1], [0, 0, 1, 1], [], []>} : vector<18x40xbf16>, vector<40x256xbf16>, vector<18x256xf32> -> vector<18x256xf32>
    %33 = arith.truncf %32 : vector<18x256xf32> to vector<18x256xbf16>
    %c2_23 = arith.constant 2 : index
    %c0_24 = arith.constant 0 : index
    %c0_25 = arith.constant 0 : index
    %34 = vector.load %arg3[%c2_23, %c0_24, %c0_25] : memref<5x256x256xbf16, #tpu.memory_space<vmem>>, vector<1x256x256xbf16>
    %35 = vector.shape_cast %34 : vector<1x256x256xbf16> to vector<256x256xbf16>
    %cst_26 = arith.constant dense<0.000000e+00> : vector<18x256xf32>
    %36 = tpu.matmul %33, %35, %cst_26 {dimension_numbers = #tpu.dot_dimension_numbers<[1], [0], [0], [1], [0, 0, 1, 1], [], []>} : vector<18x256xbf16>, vector<256x256xbf16>, vector<18x256xf32> -> vector<18x256xf32>
    %37 = arith.addf %29, %36 : vector<18x256xf32>
    %c3 = arith.constant 3 : index
    %c0_27 = arith.constant 0 : index
    %c0_28 = arith.constant 0 : index
    %38 = vector.load %arg4[%c3, %c0_27, %c0_28] : memref<5x18x40xbf16, #tpu.memory_space<vmem>>, vector<1x18x40xbf16>
    %39 = vector.shape_cast %38 : vector<1x18x40xbf16> to vector<18x40xbf16>
    %cst_29 = arith.constant dense<0.000000e+00> : vector<18x256xf32>
    %40 = tpu.matmul %39, %12, %cst_29 {dimension_numbers = #tpu.dot_dimension_numbers<[1], [0], [0], [1], [0, 0, 1, 1], [], []>} : vector<18x40xbf16>, vector<40x256xbf16>, vector<18x256xf32> -> vector<18x256xf32>
    %41 = arith.truncf %40 : vector<18x256xf32> to vector<18x256xbf16>
    %c3_30 = arith.constant 3 : index
    %c0_31 = arith.constant 0 : index
    %c0_32 = arith.constant 0 : index
    %42 = vector.load %arg3[%c3_30, %c0_31, %c0_32] : memref<5x256x256xbf16, #tpu.memory_space<vmem>>, vector<1x256x256xbf16>
    %43 = vector.shape_cast %42 : vector<1x256x256xbf16> to vector<256x256xbf16>
    %cst_33 = arith.constant dense<0.000000e+00> : vector<18x256xf32>
    %44 = tpu.matmul %41, %43, %cst_33 {dimension_numbers = #tpu.dot_dimension_numbers<[1], [0], [0], [1], [0, 0, 1, 1], [], []>} : vector<18x256xbf16>, vector<256x256xbf16>, vector<18x256xf32> -> vector<18x256xf32>
    %45 = arith.addf %37, %44 : vector<18x256xf32>
    %c4 = arith.constant 4 : index
    %c0_34 = arith.constant 0 : index
    %c0_35 = arith.constant 0 : index
    %46 = vector.load %arg4[%c4, %c0_34, %c0_35] : memref<5x18x40xbf16, #tpu.memory_space<vmem>>, vector<1x18x40xbf16>
    %47 = vector.shape_cast %46 : vector<1x18x40xbf16> to vector<18x40xbf16>
    %cst_36 = arith.constant dense<0.000000e+00> : vector<18x256xf32>
    %48 = tpu.matmul %47, %12, %cst_36 {dimension_numbers = #tpu.dot_dimension_numbers<[1], [0], [0], [1], [0, 0, 1, 1], [], []>} : vector<18x40xbf16>, vector<40x256xbf16>, vector<18x256xf32> -> vector<18x256xf32>
    %49 = arith.truncf %48 : vector<18x256xf32> to vector<18x256xbf16>
    %c4_37 = arith.constant 4 : index
    %c0_38 = arith.constant 0 : index
    %c0_39 = arith.constant 0 : index
    %50 = vector.load %arg3[%c4_37, %c0_38, %c0_39] : memref<5x256x256xbf16, #tpu.memory_space<vmem>>, vector<1x256x256xbf16>
    %51 = vector.shape_cast %50 : vector<1x256x256xbf16> to vector<256x256xbf16>
    %cst_40 = arith.constant dense<0.000000e+00> : vector<18x256xf32>
    %52 = tpu.matmul %49, %51, %cst_40 {dimension_numbers = #tpu.dot_dimension_numbers<[1], [0], [0], [1], [0, 0, 1, 1], [], []>} : vector<18x256xbf16>, vector<256x256xbf16>, vector<18x256xf32> -> vector<18x256xf32>
    %53 = arith.addf %45, %52 : vector<18x256xf32>
    %54 = vector.extract_strided_slice %53 {offsets = [0, 0], sizes = [18, 128], strides = [1, 1]} : vector<18x256xf32> to vector<18x128xf32>
    %55 = vector.extract_strided_slice %53 {offsets = [0, 128], sizes = [18, 128], strides = [1, 1]} : vector<18x256xf32> to vector<18x128xf32>
    %56 = arith.maximumf %54, %55 : vector<18x128xf32>
    %57 = arith.truncf %56 : vector<18x128xf32> to vector<18x128xbf16>
    %c0_41 = arith.constant 0 : index
    %c0_42 = arith.constant 0 : index
    %c0_43 = arith.constant 0 : index
    %58 = vector.load %arg5[%c0_41, %c0_42, %c0_43] : memref<2x9x18xbf16, #tpu.memory_space<vmem>>, vector<1x9x18xbf16>
    %59 = vector.shape_cast %58 : vector<1x9x18xbf16> to vector<9x18xbf16>
    %cst_44 = arith.constant dense<0.000000e+00> : vector<9x128xf32>
    %60 = tpu.matmul %59, %57, %cst_44 {dimension_numbers = #tpu.dot_dimension_numbers<[1], [0], [0], [1], [0, 0, 1, 1], [], []>} : vector<9x18xbf16>, vector<18x128xbf16>, vector<9x128xf32> -> vector<9x128xf32>
    %c1_45 = arith.constant 1 : index
    %c0_46 = arith.constant 0 : index
    %c0_47 = arith.constant 0 : index
    %61 = vector.load %arg5[%c1_45, %c0_46, %c0_47] : memref<2x9x18xbf16, #tpu.memory_space<vmem>>, vector<1x9x18xbf16>
    %62 = vector.shape_cast %61 : vector<1x9x18xbf16> to vector<9x18xbf16>
    %cst_48 = arith.constant dense<0.000000e+00> : vector<9x128xf32>
    %63 = tpu.matmul %62, %57, %cst_48 {dimension_numbers = #tpu.dot_dimension_numbers<[1], [0], [0], [1], [0, 0, 1, 1], [], []>} : vector<9x18xbf16>, vector<18x128xbf16>, vector<9x128xf32> -> vector<9x128xf32>
    %64 = arith.maximumf %60, %63 : vector<9x128xf32>
    %65 = math.tanh %64 : vector<9x128xf32>
    %66 = vector.extract_strided_slice %65 {offsets = [0, 0], sizes = [1, 128], strides = [1, 1]} : vector<9x128xf32> to vector<1x128xf32>
    %c0_49 = arith.constant 0 : index
    %c0_50 = arith.constant 0 : index
    %67 = vector.load %arg10[%c0_49, %c0_50] : memref<1x1152xf32, #tpu.memory_space<vmem>>, vector<1x128xf32>
    tpu.vector_store %arg10[%c0_49, %c0_50], %66 {strides = array<i32>} : memref<1x1152xf32, #tpu.memory_space<vmem>>, vector<1x128xf32>,
    %68 = vector.extract_strided_slice %65 {offsets = [1, 0], sizes = [1, 128], strides = [1, 1]} : vector<9x128xf32> to vector<1x128xf32>
    %c0_51 = arith.constant 0 : index
    %c128 = arith.constant 128 : index
    %69 = vector.load %arg10[%c0_51, %c128] : memref<1x1152xf32, #tpu.memory_space<vmem>>, vector<1x128xf32>
    tpu.vector_store %arg10[%c0_51, %c128], %68 {strides = array<i32>} : memref<1x1152xf32, #tpu.memory_space<vmem>>, vector<1x128xf32>,
    %70 = vector.extract_strided_slice %65 {offsets = [2, 0], sizes = [1, 128], strides = [1, 1]} : vector<9x128xf32> to vector<1x128xf32>
    %c0_52 = arith.constant 0 : index
    %c256 = arith.constant 256 : index
    %71 = vector.load %arg10[%c0_52, %c256] : memref<1x1152xf32, #tpu.memory_space<vmem>>, vector<1x128xf32>
    tpu.vector_store %arg10[%c0_52, %c256], %70 {strides = array<i32>} : memref<1x1152xf32, #tpu.memory_space<vmem>>, vector<1x128xf32>,
    %72 = vector.extract_strided_slice %65 {offsets = [3, 0], sizes = [1, 128], strides = [1, 1]} : vector<9x128xf32> to vector<1x128xf32>
    %c0_53 = arith.constant 0 : index
    %c384 = arith.constant 384 : index
    %73 = vector.load %arg10[%c0_53, %c384] : memref<1x1152xf32, #tpu.memory_space<vmem>>, vector<1x128xf32>
    tpu.vector_store %arg10[%c0_53, %c384], %72 {strides = array<i32>} : memref<1x1152xf32, #tpu.memory_space<vmem>>, vector<1x128xf32>,
    %74 = vector.extract_strided_slice %65 {offsets = [4, 0], sizes = [1, 128], strides = [1, 1]} : vector<9x128xf32> to vector<1x128xf32>
    %c0_54 = arith.constant 0 : index
    %c512 = arith.constant 512 : index
    %75 = vector.load %arg10[%c0_54, %c512] : memref<1x1152xf32, #tpu.memory_space<vmem>>, vector<1x128xf32>
    tpu.vector_store %arg10[%c0_54, %c512], %74 {strides = array<i32>} : memref<1x1152xf32, #tpu.memory_space<vmem>>, vector<1x128xf32>,
    %76 = vector.extract_strided_slice %65 {offsets = [5, 0], sizes = [1, 128], strides = [1, 1]} : vector<9x128xf32> to vector<1x128xf32>
    %c0_55 = arith.constant 0 : index
    %c640 = arith.constant 640 : index
    %77 = vector.load %arg10[%c0_55, %c640] : memref<1x1152xf32, #tpu.memory_space<vmem>>, vector<1x128xf32>
    tpu.vector_store %arg10[%c0_55, %c640], %76 {strides = array<i32>} : memref<1x1152xf32, #tpu.memory_space<vmem>>, vector<1x128xf32>,
    %78 = vector.extract_strided_slice %65 {offsets = [6, 0], sizes = [1, 128], strides = [1, 1]} : vector<9x128xf32> to vector<1x128xf32>
    %c0_56 = arith.constant 0 : index
    %c768 = arith.constant 768 : index
    %79 = vector.load %arg10[%c0_56, %c768] : memref<1x1152xf32, #tpu.memory_space<vmem>>, vector<1x128xf32>
    tpu.vector_store %arg10[%c0_56, %c768], %78 {strides = array<i32>} : memref<1x1152xf32, #tpu.memory_space<vmem>>, vector<1x128xf32>,
    %80 = vector.extract_strided_slice %65 {offsets = [7, 0], sizes = [1, 128], strides = [1, 1]} : vector<9x128xf32> to vector<1x128xf32>
    %c0_57 = arith.constant 0 : index
    %c896 = arith.constant 896 : index
    %81 = vector.load %arg10[%c0_57, %c896] : memref<1x1152xf32, #tpu.memory_space<vmem>>, vector<1x128xf32>
    tpu.vector_store %arg10[%c0_57, %c896], %80 {strides = array<i32>} : memref<1x1152xf32, #tpu.memory_space<vmem>>, vector<1x128xf32>,
    %82 = vector.extract_strided_slice %65 {offsets = [8, 0], sizes = [1, 128], strides = [1, 1]} : vector<9x128xf32> to vector<1x128xf32>
    %c0_58 = arith.constant 0 : index
    %c1024 = arith.constant 1024 : index
    %83 = vector.load %arg10[%c0_58, %c1024] : memref<1x1152xf32, #tpu.memory_space<vmem>>, vector<1x128xf32>
    tpu.vector_store %arg10[%c0_58, %c1024], %82 {strides = array<i32>} : memref<1x1152xf32, #tpu.memory_space<vmem>>, vector<1x128xf32>,
    %c0_59 = arith.constant 0 : index
    %c0_60 = arith.constant 0 : index
    %84 = vector.load %arg10[%c0_59, %c0_60] : memref<1x1152xf32, #tpu.memory_space<vmem>>, vector<1x1152xf32>
    %85 = arith.truncf %84 : vector<1x1152xf32> to vector<1x1152xbf16>
    %c0_61 = arith.constant 0 : index
    %c0_62 = arith.constant 0 : index
    %86 = vector.load %arg6[%c0_61, %c0_62] : memref<1152x128xbf16, #tpu.memory_space<vmem>>, vector<1152x128xbf16>
    %cst_63 = arith.constant dense<0.000000e+00> : vector<1x128xf32>
    %87 = tpu.matmul %85, %86, %cst_63 {dimension_numbers = #tpu.dot_dimension_numbers<[1], [0], [0], [1], [0, 0, 1, 1], [], []>} : vector<1x1152xbf16>, vector<1152x128xbf16>, vector<1x128xf32> -> vector<1x128xf32>
    %88 = math.tanh %87 : vector<1x128xf32>
    %89 = arith.truncf %88 : vector<1x128xf32> to vector<1x128xbf16>
    %c0_64 = arith.constant 0 : index
    %c0_65 = arith.constant 0 : index
    %90 = vector.load %arg7[%c0_64, %c0_65] : memref<128x64xbf16, #tpu.memory_space<vmem>>, vector<128x64xbf16>
    %cst_66 = arith.constant dense<0.000000e+00> : vector<1x64xf32>
    %91 = tpu.matmul %89, %90, %cst_66 {dimension_numbers = #tpu.dot_dimension_numbers<[1], [0], [0], [1], [0, 0, 1, 1], [], []>} : vector<1x128xbf16>, vector<128x64xbf16>, vector<1x64xf32> -> vector<1x64xf32>
    %92 = math.tanh %91 : vector<1x64xf32>
    %93 = arith.truncf %92 : vector<1x64xf32> to vector<1x64xbf16>
    %c0_67 = arith.constant 0 : index
    %c0_68 = arith.constant 0 : index
    %94 = vector.load %arg8[%c0_67, %c0_68] : memref<64x128xbf16, #tpu.memory_space<vmem>>, vector<64x128xbf16>
    %cst_69 = arith.constant dense<0.000000e+00> : vector<1x128xf32>
    %95 = tpu.matmul %93, %94, %cst_69 {dimension_numbers = #tpu.dot_dimension_numbers<[1], [0], [0], [1], [0, 0, 1, 1], [], []>} : vector<1x64xbf16>, vector<64x128xbf16>, vector<1x128xf32> -> vector<1x128xf32>
    %c0_70 = arith.constant 0 : index
    %c0_71 = arith.constant 0 : index
    %c0_72 = arith.constant 0 : index
    %96 = vector.load %arg9[%c0_70, %c0_71, %c0_72] : memref<1x1x128xf32, #tpu.memory_space<vmem>>, vector<1x1x128xf32>
    %97 = vector.shape_cast %96 : vector<1x1x128xf32> to vector<1x128xf32>
    %98 = vector.shape_cast %95 : vector<1x128xf32> to vector<1x1x128xf32>
    tpu.vector_store %arg9[%c0_70, %c0_71, %c0_72], %98 {strides = array<i32>} : memref<1x1x128xf32, #tpu.memory_space<vmem>>, vector<1x1x128xf32>,
    return
  }
  func.func @transform_0(%arg0: i32) -> (i32, i32, i32) {
    %c0_i32 = arith.constant 0 : i32
    %c0_i32_0 = arith.constant 0 : i32
    %c0_i32_1 = arith.constant 0 : i32
    return %arg0, %c0_i32, %c0_i32_0 : i32, i32, i32
  }
  func.func @transform_1(%arg0: i32) -> (i32, i32) {
    %c0_i32 = arith.constant 0 : i32
    %c0_i32_0 = arith.constant 0 : i32
    %c0_i32_1 = arith.constant 0 : i32
    return %c0_i32, %c0_i32_0 : i32, i32
  }
  func.func @transform_2(%arg0: i32) -> (i32, i32, i32) {
    %c0_i32 = arith.constant 0 : i32
    %c0_i32_0 = arith.constant 0 : i32
    %c0_i32_1 = arith.constant 0 : i32
    %c0_i32_2 = arith.constant 0 : i32
    return %c0_i32, %c0_i32_0, %c0_i32_1 : i32, i32, i32
  }
  func.func @transform_3(%arg0: i32) -> (i32, i32, i32) {
    %c0_i32 = arith.constant 0 : i32
    %c0_i32_0 = arith.constant 0 : i32
    %c0_i32_1 = arith.constant 0 : i32
    %c0_i32_2 = arith.constant 0 : i32
    return %c0_i32, %c0_i32_0, %c0_i32_1 : i32, i32, i32
  }
  func.func @transform_4(%arg0: i32) -> (i32, i32, i32) {
    %c0_i32 = arith.constant 0 : i32
    %c0_i32_0 = arith.constant 0 : i32
    %c0_i32_1 = arith.constant 0 : i32
    %c0_i32_2 = arith.constant 0 : i32
    return %c0_i32, %c0_i32_0, %c0_i32_1 : i32, i32, i32
  }
  func.func @transform_5(%arg0: i32) -> (i32, i32) {
    %c0_i32 = arith.constant 0 : i32
    %c0_i32_0 = arith.constant 0 : i32
    %c0_i32_1 = arith.constant 0 : i32
    return %c0_i32, %c0_i32_0 : i32, i32
  }
  func.func @transform_6(%arg0: i32) -> (i32, i32) {
    %c0_i32 = arith.constant 0 : i32
    %c0_i32_0 = arith.constant 0 : i32
    %c0_i32_1 = arith.constant 0 : i32
    return %c0_i32, %c0_i32_0 : i32, i32
  }
  func.func @transform_7(%arg0: i32) -> (i32, i32) {
    %c0_i32 = arith.constant 0 : i32
    %c0_i32_0 = arith.constant 0 : i32
    %c0_i32_1 = arith.constant 0 : i32
    return %c0_i32, %c0_i32_0 : i32, i32
  }
  func.func @transform_8(%arg0: i32) -> (i32, i32, i32) {
    %c0_i32 = arith.constant 0 : i32
    %c0_i32_0 = arith.constant 0 : i32
    %c0_i32_1 = arith.constant 0 : i32
    return %arg0, %c0_i32, %c0_i32_0 : i32, i32, i32
  }
}

</mosaic_0001>

<bundles_post_ra>
// kernel: cnn_forward.1
= control target key start
LH: loop header
LB: loop body
LE: loop exit
PB: predicated region body
PF: predicated region fallthrough
CT: control target
= control target key end

     0   :  { %s6566_s27 = smov 0   ;;  %s8353_s0 = inlined_call_operand.vmem [shape: bf16[8,80,720], index: 0, kind: input, shape index: {}]   ;;  %s8354_s1 = inlined_call_operand.vmem [shape: bf16[720,512], index: 1, kind: input, shape index: {}]   ;;  %s8355_s2 = inlined_call_operand.vmem [shape: bf16[5,256,256], index: 2, kind: input, shape index: {}]   ;;  %s8356_s3 = inlined_call_operand.vmem [shape: bf16[5,18,40], index: 3, kind: input, shape index: {}]   ;;  %s8357_s4 = inlined_call_operand.vmem [shape: bf16[2,9,18], index: 4, kind: input, shape index: {}]   ;;  %s8358_s5 = inlined_call_operand.vmem [shape: bf16[1152,128], index: 5, kind: input, shape index: {}]   ;;  %s8359_s6 = inlined_call_operand.vmem [shape: bf16[128,64], index: 6, kind: input, shape index: {}]   ;;  %s8360_s7 = inlined_call_operand.vmem [shape: bf16[64,128], index: 7, kind: input, shape index: {}]   ;;  %s8361_s8 = inlined_call_operand.vmem [shape: f32[8,1,128], index: 8, kind: output, shape index: {}]  }
   0x1 LB: > { %s4980_s28 = sadd.s32 4294967295, %s6515_s27   ;;  %p4984_p0 = scmp.ge.s32.totalorder %s6515_s27, 1  ;;  %s6515_s27 = sphi %s6566_s27, %s18_s27  }
   0x2   : > { %p262_p1 = scmp.lt.s32.totalorder %s6515_s27, 9 }
   0x4   : > { %p263_p2 = pnand %p4984_p0, %p262_p1 }
   0x6   : > { %266 = sbr.rel (%p263_p2) target bundleno = 2237 (0x8bd), region = 52 }
   0xb   : > { %v5823_v0 = vld [vmem:[%s8354_s1 + $0xe4] ss:$16 sps:$4 sm:$0xff]   ;;  %v5827_v2 = vld [vmem:[%s8354_s1 + $0xe0] ss:$16 sps:$4 sm:$0xff]   ;;  %p294_p3 = scmp.lt.s32.totalorder %s4980_s28, 7  ;;  %vm1558_vm0 = vcmask 654336  }
   0xc   : > { %v5825_v1 = vld [vmem:[%s8354_s1 + $0x2e4] ss:$16 sps:$4 sm:$0xff]   ;;  %1574 = vmatprep.subr.bf16.mxu0 %v5823_v0  ;;  %v5828_v3 = vld [vmem:[%s8354_s1 + $0x2e0] ss:$16 sps:$4 sm:$0xff]   ;;  %vm2136_vm1 = vcmask 1043456   ;;  %vm2129_vm2 = vcmask 326656  }
   0xd   : > { %1657 = vmatprep.subr.bf16.mxu1 %v5825_v1  ;;  %v5829_v4 = vld [vmem:[%s8354_s1 + $0xc4] ss:$16 sps:$4 sm:$0xff]   ;;  %1575 = vmatpush1.bf16.msra.mxu0 %v5827_v2  ;;  %v5833_v6 = vld [vmem:[%s8354_s1 + $0xc0] ss:$16 sps:$4 sm:$0xff]   ;;  %s8377_s28 = smov (!%p294_p3, %s4980_s28), 7  ;;  %vm6519_vm3 = vmmov 0  }
   0xe   : > { %1658 = vmatpush1.bf16.msra.mxu1 %v5828_v3  ;;  %v5831_v5 = vld [vmem:[%s8354_s1 + $0x2c4] ss:$16 sps:$4 sm:$0xff]   ;;  %1576 = vmatprep.subr.bf16.mxu0 %v5829_v4  ;;  %v5834_v7 = vld [vmem:[%s8354_s1 + $0x2c0] ss:$16 sps:$4 sm:$0xff]   ;;  %s5810_s9 = smul.u32 240, %s8377_s28  ;;  %vm3743_vm4 = vcmask 1040384   ;;  %s301_s18 = scalar_lea.vmem %s8361_s8, %s8377_s28 }
   0xf   : > { %1659 = vmatprep.subr.bf16.mxu1 %v5831_v5  ;;  %v5835_v8 = vld [vmem:[%s8354_s1 + $0xa4] ss:$16 sps:$4 sm:$0xff]   ;;  %v5839_v10 = vld [vmem:[%s8354_s1 + $0xa0] ss:$16 sps:$4 sm:$0xff]   ;;  %v5930_v3 = vld [vmem:[%s8354_s1 + $0xec] ss:$16 sps:$4 sm:$0xff]  }
  0x10   : > { %v5837_v9 = vld [vmem:[%s8354_s1 + $0x2a4] ss:$16 sps:$4 sm:$0xff]   ;;  %v5840_v11 = vld [vmem:[%s8354_s1 + $0x2a0] ss:$16 sps:$4 sm:$0xff]   ;;  %s6719_s20 = scalar_lea.vmem %s8353_s0, %s5810_s9  ;;  %vm3739_vm5 = vcmask 146432   ;;  %vm4888_vm7 = vcmask 523264  }
  0x11   : > { %1577 = vmatpush1.bf16.msra.mxu0 %v5833_v6  ;;  %v5841_v12 = vld [vmem:[%s8354_s1 + $0x84] ss:$16 sps:$4 sm:$0xff]   ;;  %v5845_v14 = vld [vmem:[%s8354_s1 + $0x80] ss:$16 sps:$4 sm:$0xff]  }
  0x12   : > { %1660 = vmatpush1.bf16.msra.mxu1 %v5834_v7  ;;  %1578 = vmatprep.subr.bf16.mxu0 %v5835_v8  ;;  %v5843_v13 = vld [vmem:[%s8354_s1 + $0x284] ss:$16 sps:$4 sm:$0xff]   ;;  %v5846_v15 = vld [vmem:[%s8354_s1 + $0x280] ss:$16 sps:$4 sm:$0xff]   ;;  %v5928_v7 = vld [vmem:[%s8354_s1 + $0xe8] ss:$16 sps:$4 sm:$0xff]  }
  0x13   : > { %1661 = vmatprep.subr.bf16.mxu1 %v5837_v9  ;;  %v5847_v16 = vld [vmem:[%s8354_s1 + $0x64] ss:$16 sps:$4 sm:$0xff]   ;;  %v5851_v18 = vld [vmem:[%s8354_s1 + $0x60] ss:$16 sps:$4 sm:$0xff]   ;;  %v5936_v9 = vld [vmem:[%s8354_s1 + $0xcc] ss:$16 sps:$4 sm:$0xff]  }
  0x14   : > { %v5849_v17 = vld [vmem:[%s8354_s1 + $0x264] ss:$16 sps:$4 sm:$0xff]   ;;  %v5852_v19 = vld [vmem:[%s8354_s1 + $0x260] ss:$16 sps:$4 sm:$0xff]  }
  0x15   : > { %1579 = vmatpush1.bf16.msra.mxu0 %v5839_v10  ;;  %v5853_v20 = vld [vmem:[%s8354_s1 + $0x44] ss:$16 sps:$4 sm:$0xff]   ;;  %v5857_v22 = vld [vmem:[%s8354_s1 + $0x40] ss:$16 sps:$4 sm:$0xff]  }
  0x16   : > { %1662 = vmatpush1.bf16.msra.mxu1 %v5840_v11  ;;  %1580 = vmatprep.subr.bf16.mxu0 %v5841_v12  ;;  %v5855_v21 = vld [vmem:[%s8354_s1 + $0x244] ss:$16 sps:$4 sm:$0xff]   ;;  %v5858_v23 = vld [vmem:[%s8354_s1 + $0x240] ss:$16 sps:$4 sm:$0xff]  }
  0x17   : > { %1663 = vmatprep.subr.bf16.mxu1 %v5843_v13  ;;  %v5859_v24 = vld [vmem:[%s8354_s1 + $0x24] ss:$16 sps:$4 sm:$0xff]   ;;  %v5863_v26 = vld [vmem:[%s8354_s1 + $0x20] ss:$16 sps:$4 sm:$0xff]   ;;  %v5934_v13 = vld [vmem:[%s8354_s1 + $0xc8] ss:$16 sps:$4 sm:$0xff]  }
  0x18   : > { %v5861_v25 = vld [vmem:[%s8354_s1 + $0x224] ss:$16 sps:$4 sm:$0xff]   ;;  %v5864_v27 = vld [vmem:[%s8354_s1 + $0x220] ss:$16 sps:$4 sm:$0xff]  }
  0x19   : > { %1581 = vmatpush1.bf16.msra.mxu0 %v5845_v14  ;;  %v5865_v28 = vld [vmem:[%s8354_s1 + $0x4] ss:$16 sps:$4 sm:$0xff]   ;;  %v5869_v30 = vld [vmem:[%s8354_s1] ss:$16 sps:$4 sm:$0xff]  }
  0x1a   : > { %1664 = vmatpush1.bf16.msra.mxu1 %v5846_v15  ;;  %1582 = vmatprep.subr.bf16.mxu0 %v5847_v16  ;;  %v5867_v29 = vld [vmem:[%s8354_s1 + $0x204] ss:$16 sps:$4 sm:$0xff]   ;;  %v5870_v31 = vld [vmem:[%s8354_s1 + $0x200] ss:$16 sps:$4 sm:$0xff]   ;;  %v5942_v15 = vld [vmem:[%s8354_s1 + $0xac] ss:$16 sps:$4 sm:$0xff]  }
  0x1b   : > { %1665 = vmatprep.subr.bf16.mxu1 %v5849_v17  ;;  %v5871_v32 = vld [vmem:[%s8354_s1 + $0x1e4] ss:$16 sps:$4 sm:$0xff]   ;;  %v5875_v34 = vld [vmem:[%s8354_s1 + $0x1e0] ss:$16 sps:$4 sm:$0xff]   ;;  %v5940_v17 = vld [vmem:[%s8354_s1 + $0xa8] ss:$16 sps:$4 sm:$0xff]  }
  0x1c   : > { %v5873_v33 = vld [vmem:[%s8354_s1 + $0x3e4] ss:$16 sps:$4 sm:$0xff]   ;;  %v5876_v35 = vld [vmem:[%s8354_s1 + $0x3e0] ss:$16 sps:$4 sm:$0xff]  }
  0x1d   : > { %1583 = vmatpush1.bf16.msra.mxu0 %v5851_v18  ;;  %v5877_v36 = vld [vmem:[%s8354_s1 + $0x1c4] ss:$16 sps:$4 sm:$0xff]   ;;  %v5881_v38 = vld [vmem:[%s8354_s1 + $0x1c0] ss:$16 sps:$4 sm:$0xff]  }
  0x1e   : > { %1666 = vmatpush1.bf16.msra.mxu1 %v5852_v19  ;;  %1584 = vmatprep.subr.bf16.mxu0 %v5853_v20  ;;  %v5879_v37 = vld [vmem:[%s8354_s1 + $0x3c4] ss:$16 sps:$4 sm:$0xff]   ;;  %v5882_v39 = vld [vmem:[%s8354_s1 + $0x3c0] ss:$16 sps:$4 sm:$0xff]  }
  0x1f   : > { %1667 = vmatprep.subr.bf16.mxu1 %v5855_v21  ;;  %v5883_v40 = vld [vmem:[%s8354_s1 + $0x1a4] ss:$16 sps:$4 sm:$0xff]   ;;  %v5887_v42 = vld [vmem:[%s8354_s1 + $0x1a0] ss:$16 sps:$4 sm:$0xff]   ;;  %v5948_v21 = vld [vmem:[%s8354_s1 + $0x8c] ss:$16 sps:$4 sm:$0xff]  }
  0x20   : > { %v5885_v41 = vld [vmem:[%s8354_s1 + $0x3a4] ss:$16 sps:$4 sm:$0xff]   ;;  %v5888_v43 = vld [vmem:[%s8354_s1 + $0x3a0] ss:$16 sps:$4 sm:$0xff]  }
  0x21   : > { %1585 = vmatpush1.bf16.msra.mxu0 %v5857_v22  ;;  %v5889_v44 = vld [vmem:[%s8354_s1 + $0x184] ss:$16 sps:$4 sm:$0xff]   ;;  %v5893_v46 = vld [vmem:[%s8354_s1 + $0x180] ss:$16 sps:$4 sm:$0xff]  }
  0x22   : > { %1668 = vmatpush1.bf16.msra.mxu1 %v5858_v23  ;;  %1586 = vmatprep.subr.bf16.mxu0 %v5859_v24  ;;  %v5891_v45 = vld [vmem:[%s8354_s1 + $0x384] ss:$16 sps:$4 sm:$0xff]   ;;  %v5894_v47 = vld [vmem:[%s8354_s1 + $0x380] ss:$16 sps:$4 sm:$0xff]  }
  0x23   : > { %1669 = vmatprep.subr.bf16.mxu1 %v5861_v25  ;;  %v5895_v48 = vld [vmem:[%s8354_s1 + $0x164] ss:$16 sps:$4 sm:$0xff]   ;;  %v5899_v52 = vld [vmem:[%s8354_s1 + $0x160] ss:$16 sps:$4 sm:$0xff]   ;;  %v5946_v25 = vld [vmem:[%s8354_s1 + $0x88] ss:$16 sps:$4 sm:$0xff]  }
  0x24   : > { %v6734_v49 = vld [vmem:[%s6719_s20 + $0x4] ss:$24 sps:$4 sm:$0xff]   ;;  %v5900_v53 = vld [vmem:[%s8354_s1 + $0x360] ss:$16 sps:$4 sm:$0xff]   ;;  %v6809_v10 = vld [vmem:[%s6719_s20 + $0x34] ss:$24 sps:$4 sm:$0xff]  }
  0x25   : > { %1587 = vmatpush1.bf16.msra.mxu0 %v5863_v26  ;;  %v5897_v50 = vld [vmem:[%s8354_s1 + $0x364] ss:$16 sps:$4 sm:$0xff]   ;;  %1606 = vmatprep.mubr.bf16.mxu0 %v6734_v49  ;;  %v5905_v56 = vld [vmem:[%s8354_s1 + $0x140] ss:$16 sps:$4 sm:$0xff]  }
  0x26   : > { %1670 = vmatpush1.bf16.msra.mxu1 %v5864_v27  ;;  %1588 = vmatprep.subr.bf16.mxu0 %v5865_v28  ;;  %v6740_v51 = vld [vmem:[%s6719_s20 + $0xc] ss:$24 sps:$4 sm:$0xff]   ;;  %v5906_v57 = vld [vmem:[%s8354_s1 + $0x340] ss:$16 sps:$4 sm:$0xff]   ;;  %v5951_v11 = vld [vmem:[%s6719_s20 + $0x3c] ss:$24 sps:$4 sm:$0xff]  }
  0x27   : > { %1671 = vmatprep.subr.bf16.mxu1 %v5867_v29  ;;  %1689 = vmatprep.mubr.bf16.mxu1 %v6740_v51  ;;  %v5901_v54 = vld [vmem:[%s8354_s1 + $0x144] ss:$16 sps:$4 sm:$0xff]   ;;  %v5911_v60 = vld [vmem:[%s8354_s1 + $0x120] ss:$16 sps:$4 sm:$0xff]   ;;  %v5960_v27 = vld [vmem:[%s8354_s1 + $0x6c] ss:$16 sps:$4 sm:$0xff]  }
  0x28   : > { %v5903_v55 = vld [vmem:[%s8354_s1 + $0x344] ss:$16 sps:$4 sm:$0xff]   ;;  %v5912_v61 = vld [vmem:[%s8354_s1 + $0x320] ss:$16 sps:$4 sm:$0xff]   ;;  %v5958_v29 = vld [vmem:[%s8354_s1 + $0x68] ss:$16 sps:$4 sm:$0xff]  }
  0x29   : > { %1589 = vmatpush1.bf16.msra.mxu0 %v5869_v30  ;;  %v5907_v58 = vld [vmem:[%s8354_s1 + $0x124] ss:$16 sps:$4 sm:$0xff]   ;;  %v5917_v0 = vld [vmem:[%s8354_s1 + $0x100] ss:$16 sps:$4 sm:$0xff]  }
  0x2a   : > { %1672 = vmatpush1.bf16.msra.mxu1 %v5870_v31  ;;  %1590 = vmatprep.subr.bf16.mxu0 %v5871_v32  ;;  %v5909_v59 = vld [vmem:[%s8354_s1 + $0x324] ss:$16 sps:$4 sm:$0xff]   ;;  %v5918_v1 = vld [vmem:[%s8354_s1 + $0x300] ss:$16 sps:$4 sm:$0xff]  }
  0x2b   : > { %1673 = vmatprep.subr.bf16.mxu1 %v5873_v33  ;;  %v5913_v62 = vld [vmem:[%s8354_s1 + $0x104] ss:$16 sps:$4 sm:$0xff]   ;;  %v6793_v4 = vld [vmem:[%s6719_s20] ss:$24 sps:$4 sm:$0xff]   ;;  %v6833_v18 = vld [vmem:[%s6719_s20 + $0x30] ss:$24 sps:$4 sm:$0xff]  }
  0x2c   : > { %v5915_v63 = vld [vmem:[%s8354_s1 + $0x304] ss:$16 sps:$4 sm:$0xff]   ;;  %v5922_v5 = vld [vmem:[%s6719_s20 + $0x8] ss:$24 sps:$4 sm:$0xff]   ;;  %v5954_v19 = vld [vmem:[%s6719_s20 + $0x38] ss:$24 sps:$4 sm:$0xff]  }
  0x2d   : > { %1591 = vmatpush2.bf16.msra.mxu0 %v5875_v34  ;;  %v5927_v2 = vld [vmem:[%s8354_s1 + $0x4e4] ss:$16 sps:$4 sm:$0xff]   ;;  %v5925_v6 = vld [vmem:[%s8354_s1 + $0x4e0] ss:$16 sps:$4 sm:$0xff]   ;;  %v5966_v33 = vld [vmem:[%s8354_s1 + $0x4c] ss:$16 sps:$4 sm:$0xff]  }
  0x2e   : > { %1674 = vmatpush2.bf16.msra.mxu1 %v5876_v35  ;;  %1592 = vmatprep.subr.bf16.mxu0 %v5877_v36  ;;  %v5933_v8 = vld [vmem:[%s8354_s1 + $0x4c4] ss:$16 sps:$4 sm:$0xff]   ;;  %v5931_v12 = vld [vmem:[%s8354_s1 + $0x4c0] ss:$16 sps:$4 sm:$0xff]  }
  0x2f   : > { %1675 = vmatprep.subr.bf16.mxu1 %v5879_v37  ;;  %v5939_v14 = vld [vmem:[%s8354_s1 + $0x4a4] ss:$16 sps:$4 sm:$0xff]   ;;  %v5937_v16 = vld [vmem:[%s8354_s1 + $0x4a0] ss:$16 sps:$4 sm:$0xff]   ;;  %v5964_v37 = vld [vmem:[%s8354_s1 + $0x48] ss:$16 sps:$4 sm:$0xff]  }
  0x30   : > { %v5945_v20 = vld [vmem:[%s8354_s1 + $0x484] ss:$16 sps:$4 sm:$0xff]   ;;  %v5943_v24 = vld [vmem:[%s8354_s1 + $0x480] ss:$16 sps:$4 sm:$0xff]  }
  0x31   : > { %1593 = vmatpush2.bf16.msra.mxu0 %v5881_v38  ;;  %v6843_v22 = vld [vmem:[%s6719_s20 + $0x64] ss:$24 sps:$4 sm:$0xff]   ;;  %v5955_v28 = vld [vmem:[%s8354_s1 + $0x460] ss:$16 sps:$4 sm:$0xff]   ;;  %v6877_v34 = vld [vmem:[%s6719_s20 + $0x94] ss:$24 sps:$4 sm:$0xff]  }
  0x32   : > { %1676 = vmatpush2.bf16.msra.mxu1 %v5882_v39  ;;  %1594 = vmatprep.subr.bf16.mxu0 %v5883_v40  ;;  %v5969_v23 = vld [vmem:[%s6719_s20 + $0x6c] ss:$24 sps:$4 sm:$0xff]   ;;  %v6867_v30 = vld [vmem:[%s6719_s20 + $0x60] ss:$24 sps:$4 sm:$0xff]   ;;  %v5987_v35 = vld [vmem:[%s6719_s20 + $0x9c] ss:$24 sps:$4 sm:$0xff]  }
  0x33   : > { %1677 = vmatprep.subr.bf16.mxu1 %v5885_v41  ;;  %v5957_v26 = vld [vmem:[%s8354_s1 + $0x464] ss:$16 sps:$4 sm:$0xff]   ;;  %v5972_v31 = vld [vmem:[%s6719_s20 + $0x68] ss:$24 sps:$4 sm:$0xff]   ;;  %v5978_v39 = vld [vmem:[%s8354_s1 + $0x2c] ss:$16 sps:$4 sm:$0xff]  }
  0x34   : > { %v5963_v32 = vld [vmem:[%s8354_s1 + $0x444] ss:$16 sps:$4 sm:$0xff]   ;;  %v5961_v36 = vld [vmem:[%s8354_s1 + $0x440] ss:$16 sps:$4 sm:$0xff]   ;;  %v5976_v41 = vld [vmem:[%s8354_s1 + $0x28] ss:$16 sps:$4 sm:$0xff]  }
  0x35   : > { %1595 = vmatpush2.bf16.msra.mxu0 %v5887_v42  ;;  %v5975_v38 = vld [vmem:[%s8354_s1 + $0x424] ss:$16 sps:$4 sm:$0xff]   ;;  %v5973_v40 = vld [vmem:[%s8354_s1 + $0x420] ss:$16 sps:$4 sm:$0xff]  }
  0x36   : > { %1678 = vmatpush2.bf16.msra.mxu1 %v5888_v43  ;;  %1596 = vmatprep.subr.bf16.mxu0 %v5889_v44  ;;  %v6901_v42 = vld [vmem:[%s6719_s20 + $0x90] ss:$24 sps:$4 sm:$0xff]   ;;  %v5981_v44 = vld [vmem:[%s8354_s1 + $0x404] ss:$16 sps:$4 sm:$0xff]  }
  0x37   : > { %1679 = vmatprep.subr.bf16.mxu1 %v5891_v45  ;;  %v5990_v43 = vld [vmem:[%s6719_s20 + $0x98] ss:$24 sps:$4 sm:$0xff]   ;;  %v5984_v45 = vld [vmem:[%s8354_s1 + $0xc] ss:$16 sps:$4 sm:$0xff]  }
  0x39   : > { %1597 = vmatpush2.bf16.msra.mxu0 %v5893_v46  ;;  %v6911_v46 = vld [vmem:[%s6719_s20 + $0xc4] ss:$24 sps:$4 sm:$0xff]  }
  0x3a   : > { %1680 = vmatpush2.bf16.msra.mxu1 %v5894_v47  ;;  %1598 = vmatprep.subr.bf16.mxu0 %v5895_v48  ;;  %v6914_v47 = vld [vmem:[%s6719_s20 + $0xcc] ss:$24 sps:$4 sm:$0xff]   ;;  %v5979_v48 = vld [vmem:[%s8354_s1 + $0x400] ss:$16 sps:$4 sm:$0xff]  }
  0x3b   : > { %1681 = vmatprep.subr.bf16.mxu1 %v5897_v50  ;;  %v5982_v50 = vld [vmem:[%s8354_s1 + $0x8] ss:$16 sps:$4 sm:$0xff]  }
  0x3d   : > { %1599 = vmatpush2.bf16.msra.mxu0 %v5899_v52  ;;  %v5993_v52 = vld [vmem:[%s8354_s1 + $0x584] ss:$16 sps:$4 sm:$0xff]  }
  0x3e   : > { %1682 = vmatpush2.bf16.msra.mxu1 %v5900_v53  ;;  %1600 = vmatprep.subr.bf16.mxu0 %v5901_v54  ;;  %v5996_v53 = vld [vmem:[%s8354_s1 + $0x1ec] ss:$16 sps:$4 sm:$0xff]   ;;  %v5991_v54 = vld [vmem:[%s8354_s1 + $0x580] ss:$16 sps:$4 sm:$0xff]  }
  0x3f   : > { %1683 = vmatprep.subr.bf16.mxu1 %v5903_v55  ;;  %v5994_v55 = vld [vmem:[%s8354_s1 + $0x1e8] ss:$16 sps:$4 sm:$0xff]  }
  0x41   : > { %1601 = vmatpush2.bf16.msra.mxu0 %v5905_v56  ;;  %v6938_v56 = vld [vmem:[%s6719_s20 + $0xc0] ss:$24 sps:$4 sm:$0xff]  }
  0x42   : > { %1684 = vmatpush2.bf16.msra.mxu1 %v5906_v57  ;;  %1602 = vmatprep.subr.bf16.mxu0 %v5907_v58  ;;  %v6941_v57 = vld [vmem:[%s6719_s20 + $0xc8] ss:$24 sps:$4 sm:$0xff]   ;;  %v5999_v58 = vld [vmem:[%s8354_s1 + $0x564] ss:$16 sps:$4 sm:$0xff]  }
  0x43   : > { %1685 = vmatprep.subr.bf16.mxu1 %v5909_v59  ;;  %v6002_v59 = vld [vmem:[%s8354_s1 + $0x1cc] ss:$16 sps:$4 sm:$0xff]  }
  0x45   : > { %1603 = vmatpush2.bf16.msra.mxu0 %v5911_v60  ;;  %v6950_v60 = vld [vmem:[%s6719_s20 + $0x14] ss:$24 sps:$4 sm:$0xff]  }
  0x46   : > { %1686 = vmatpush2.bf16.msra.mxu1 %v5912_v61  ;;  %1604 = vmatprep.subr.bf16.mxu0 %v5913_v62  ;;  %v5997_v61 = vld [vmem:[%s8354_s1 + $0x560] ss:$16 sps:$4 sm:$0xff]   ;;  %v6000_v62 = vld [vmem:[%s8354_s1 + $0x1c8] ss:$16 sps:$4 sm:$0xff]  }
  0x47   : > { %1687 = vmatprep.subr.bf16.mxu1 %v5915_v63  ;;  %v6011_v63 = vld [vmem:[%s8354_s1 + $0x544] ss:$16 sps:$4 sm:$0xff]  }
  0x49   : > { %1605 = vmatpush2.bf16.msra.mxu0 %v5917_v0  ;;  %v6014_v0 = vld [vmem:[%s8354_s1 + $0x1ac] ss:$16 sps:$4 sm:$0xff]  }
  0x4a   : > { %1688 = vmatpush2.bf16.msra.mxu1 %v5918_v1  ;;  %1740 = vmatprep.subr.bf16.mxu0 %v5927_v2  ;;  %v6009_v1 = vld [vmem:[%s8354_s1 + $0x540] ss:$16 sps:$4 sm:$0xff]   ;;  %v6012_v2 = vld [vmem:[%s8354_s1 + $0x1a8] ss:$16 sps:$4 sm:$0xff]  }
  0x4b   : > { %1823 = vmatprep.subr.bf16.mxu1 %v5930_v3  ;;  %v6017_v3 = vld [vmem:[%s8354_s1 + $0x524] ss:$16 sps:$4 sm:$0xff]  }
  0x4c   : > { %1607 = vmatmul.mubr.bf16.vlgmr.msra.gmra.mxu0 %v6793_v4 }
  0x4d   : > { %1690 = vmatmul.mubr.bf16.vlgmr.msra.gmra.mxu1 %v5922_v5  ;;  %1741 = vmatpush1.bf16.msra.mxu0 %v5925_v6  ;;  %v6015_v5 = vld [vmem:[%s8354_s1 + $0x520] ss:$16 sps:$4 sm:$0xff]   ;;  %v6018_v6 = vld [vmem:[%s8354_s1 + $0x188] ss:$16 sps:$4 sm:$0xff]  }
  0x4e   : > { %1824 = vmatpush1.bf16.msra.mxu1 %v5928_v7  ;;  %1742 = vmatprep.subr.bf16.mxu0 %v5933_v8  ;;  %v6023_v7 = vld [vmem:[%s8354_s1 + $0x504] ss:$16 sps:$4 sm:$0xff]   ;;  %v6026_v8 = vld [vmem:[%s8354_s1 + $0x16c] ss:$16 sps:$4 sm:$0xff]  }
  0x4f   : > { %1825 = vmatprep.subr.bf16.mxu1 %v5936_v9  ;;  %1616 = vmatprep.mubr.bf16.mxu0 %v6809_v10  ;;  %v6021_v9 = vld [vmem:[%s8354_s1 + $0x500] ss:$16 sps:$4 sm:$0xff]  }
  0x50   : > { %1699 = vmatprep.mubr.bf16.mxu1 %v5951_v11  ;;  %v6024_v11 = vld [vmem:[%s8354_s1 + $0x168] ss:$16 sps:$4 sm:$0xff]  }
  0x51   : > { %1743 = vmatpush1.bf16.msra.mxu0 %v5931_v12  ;;  %v6032_v12 = vld [vmem:[%s8354_s1 + $0x14c] ss:$16 sps:$4 sm:$0xff]  }
  0x52   : > { %1826 = vmatpush1.bf16.msra.mxu1 %v5934_v13  ;;  %1744 = vmatprep.subr.bf16.mxu0 %v5939_v14  ;;  %v6035_v13 = vld [vmem:[%s8354_s1 + $0x2ec] ss:$16 sps:$4 sm:$0xff]   ;;  %v7006_v14 = vld [vmem:[%s6719_s20 + $0x10] ss:$24 sps:$4 sm:$0xff]  }
  0x53   : > { %1827 = vmatprep.subr.bf16.mxu1 %v5942_v15  ;;  %v6030_v15 = vld [vmem:[%s8354_s1 + $0x148] ss:$16 sps:$4 sm:$0xff]  }
  0x54   : > { %1617 = vmatmul.mubr.bf16.gmra.mxu0 %v6833_v18 }
  0x55   : > { %1700 = vmatmul.mubr.bf16.gmra.mxu1 %v5954_v19  ;;  %1745 = vmatpush1.bf16.msra.mxu0 %v5937_v16  ;;  %v6033_v16 = vld [vmem:[%s8354_s1 + $0x2e8] ss:$16 sps:$4 sm:$0xff]   ;;  %v6041_v19 = vld [vmem:[%s8354_s1 + $0x2cc] ss:$16 sps:$4 sm:$0xff]  }
  0x56   : > { %1828 = vmatpush1.bf16.msra.mxu1 %v5940_v17  ;;  %1746 = vmatprep.subr.bf16.mxu0 %v5945_v20  ;;  %v6038_v17 = vld [vmem:[%s8354_s1 + $0x12c] ss:$16 sps:$4 sm:$0xff]  }
  0x57   : > { %1829 = vmatprep.subr.bf16.mxu1 %v5948_v21  ;;  %1626 = vmatprep.mubr.bf16.mxu0 %v6843_v22  ;;  %v7021_v20 = vld [vmem:[%s6719_s20 + $0x44] ss:$24 sps:$4 sm:$0xff]   ;;  %v6036_v21 = vld [vmem:[%s8354_s1 + $0x128] ss:$16 sps:$4 sm:$0xff]  }
  0x58   : > { %1709 = vmatprep.mubr.bf16.mxu1 %v5969_v23  ;;  %v6039_v23 = vld [vmem:[%s8354_s1 + $0x2c8] ss:$16 sps:$4 sm:$0xff]  }
  0x59   : > { %1747 = vmatpush1.bf16.msra.mxu0 %v5943_v24  ;;  %v6047_v24 = vld [vmem:[%s8354_s1 + $0x10c] ss:$16 sps:$4 sm:$0xff]  }
  0x5a   : > { %1830 = vmatpush1.bf16.msra.mxu1 %v5946_v25  ;;  %1748 = vmatprep.subr.bf16.mxu0 %v5957_v26  ;;  %v6050_v25 = vld [vmem:[%s8354_s1 + $0x2ac] ss:$16 sps:$4 sm:$0xff]   ;;  %v7039_v26 = vld [vmem:[%s6719_s20 + $0x40] ss:$24 sps:$4 sm:$0xff]  }
  0x5b   : > { %1831 = vmatprep.subr.bf16.mxu1 %v5960_v27  ;;  %v6045_v27 = vld [vmem:[%s8354_s1 + $0x108] ss:$16 sps:$4 sm:$0xff]  }
  0x5c   : > { %1627 = vmatmul.mubr.bf16.gmra.mxu0 %v6867_v30 }
  0x5d   : > { %1710 = vmatmul.mubr.bf16.gmra.mxu1 %v5972_v31  ;;  %1749 = vmatpush1.bf16.msra.mxu0 %v5955_v28  ;;  %v6048_v28 = vld [vmem:[%s8354_s1 + $0x2a8] ss:$16 sps:$4 sm:$0xff]   ;;  %v6056_v31 = vld [vmem:[%s8354_s1 + $0x4ec] ss:$16 sps:$4 sm:$0xff]  }
  0x5e   : > { %1832 = vmatpush1.bf16.msra.mxu1 %v5958_v29  ;;  %1750 = vmatprep.subr.bf16.mxu0 %v5963_v32  ;;  %v6053_v29 = vld [vmem:[%s8354_s1 + $0x28c] ss:$16 sps:$4 sm:$0xff]  }
  0x5f   : > { %1833 = vmatprep.subr.bf16.mxu1 %v5966_v33  ;;  %1636 = vmatprep.mubr.bf16.mxu0 %v6877_v34  ;;  %v7054_v32 = vld [vmem:[%s6719_s20 + $0x74] ss:$24 sps:$4 sm:$0xff]   ;;  %v6051_v33 = vld [vmem:[%s8354_s1 + $0x288] ss:$16 sps:$4 sm:$0xff]  }
  0x60   : > { %1719 = vmatprep.mubr.bf16.mxu1 %v5987_v35  ;;  %v6054_v35 = vld [vmem:[%s8354_s1 + $0x4e8] ss:$16 sps:$4 sm:$0xff]  }
  0x61   : > { %1751 = vmatpush1.bf16.msra.mxu0 %v5961_v36  ;;  %v6062_v36 = vld [vmem:[%s8354_s1 + $0x26c] ss:$16 sps:$4 sm:$0xff]  }
  0x62   : > { %1834 = vmatpush1.bf16.msra.mxu1 %v5964_v37  ;;  %1752 = vmatprep.subr.bf16.mxu0 %v5975_v38  ;;  %v6065_v37 = vld [vmem:[%s8354_s1 + $0x4cc] ss:$16 sps:$4 sm:$0xff]   ;;  %v7072_v38 = vld [vmem:[%s6719_s20 + $0x70] ss:$24 sps:$4 sm:$0xff]  }
  0x63   : > { %1835 = vmatprep.subr.bf16.mxu1 %v5978_v39  ;;  %v6060_v39 = vld [vmem:[%s8354_s1 + $0x268] ss:$16 sps:$4 sm:$0xff]  }
  0x64   : > { %1637 = vmatmul.mubr.bf16.gmra.mxu0 %v6901_v42 }
  0x65   : > { %1720 = vmatmul.mubr.bf16.gmra.mxu1 %v5990_v43  ;;  %1753 = vmatpush1.bf16.msra.mxu0 %v5973_v40  ;;  %v6063_v40 = vld [vmem:[%s8354_s1 + $0x4c8] ss:$16 sps:$4 sm:$0xff]   ;;  %v7088_v43 = vld [vmem:[%s6719_s20 + $0xa4] ss:$24 sps:$4 sm:$0xff]  }
  0x66   : > { %1836 = vmatpush1.bf16.msra.mxu1 %v5976_v41  ;;  %1754 = vmatprep.subr.bf16.mxu0 %v5981_v44  ;;  %v6068_v41 = vld [vmem:[%s8354_s1 + $0x24c] ss:$16 sps:$4 sm:$0xff]   ;;  %v6066_v44 = vld [vmem:[%s8354_s1 + $0x248] ss:$16 sps:$4 sm:$0xff]  }
  0x67   : > { %1837 = vmatprep.subr.bf16.mxu1 %v5984_v45  ;;  %1646 = vmatprep.mubr.bf16.mxu0 %v6911_v46  ;;  %v6069_v45 = vld [vmem:[%s8354_s1 + $0x4a8] ss:$16 sps:$4 sm:$0xff]  }
  0x68   : > { %1729 = vmatprep.mubr.bf16.mxu1 %v6914_v47 }
  0x69   : > { %1755 = vmatpush1.bf16.msra.mxu0 %v5979_v48  ;;  %v6077_v48 = vld [vmem:[%s8354_s1 + $0x22c] ss:$16 sps:$4 sm:$0xff]  }
  0x6a   : > { %1838 = vmatpush1.bf16.msra.mxu1 %v5982_v50  ;;  %1762 = vmatprep.subr.bf16.mxu0 %v5993_v52  ;;  %v6080_v50 = vld [vmem:[%s8354_s1 + $0x48c] ss:$16 sps:$4 sm:$0xff]   ;;  %v6075_v52 = vld [vmem:[%s8354_s1 + $0x228] ss:$16 sps:$4 sm:$0xff]  }
  0x6b   : > { %1839 = vmatprep.subr.bf16.mxu1 %v5996_v53  ;;  %v6078_v53 = vld [vmem:[%s8354_s1 + $0x488] ss:$16 sps:$4 sm:$0xff]  }
  0x6c   : > { %1647 = vmatmul.mubr.bf16.gmra.mxu0 %v6938_v56 }
  0x6d   : > { %1730 = vmatmul.mubr.bf16.gmra.mxu1 %v6941_v57  ;;  %1763 = vmatpush2.bf16.msra.mxu0 %v5991_v54  ;;  %v6083_v54 = vld [vmem:[%s8354_s1 + $0x20c] ss:$16 sps:$4 sm:$0xff]  }
  0x6e   : > { %1840 = vmatpush2.bf16.msra.mxu1 %v5994_v55  ;;  %1764 = vmatprep.subr.bf16.mxu0 %v5999_v58  ;;  %v6086_v55 = vld [vmem:[%s8354_s1 + $0x46c] ss:$16 sps:$4 sm:$0xff]  }
  0x6f   : > { %1841 = vmatprep.subr.bf16.mxu1 %v6002_v59  ;;  %5196 = vmatprep.mubr.msk.bf16.mxu0 %vm1558_vm0, %v6950_v60  ;;  %v7123_v58 = vld [vmem:[%s6719_s20 + $0xd4] ss:$24 sps:$4 sm:$0xff]   ;;  %v6081_v59 = vld [vmem:[%s8354_s1 + $0x208] ss:$16 sps:$4 sm:$0xff]  }
  0x70   : > { %1855 = vmatprep.mubr.bf16.mxu1 %v6734_v49  ;;  %v6020_v49 = vld [vmem:[%s8354_s1 + $0x18c] ss:$16 sps:$4 sm:$0xff]  }
  0x71   : > { %1765 = vmatpush2.bf16.msra.mxu0 %v5997_v61  ;;  %v6092_v61 = vld [vmem:[%s8354_s1 + $0x3ec] ss:$16 sps:$4 sm:$0xff]  }
  0x72   : > { %1842 = vmatpush2.bf16.msra.mxu1 %v6000_v62  ;;  %1766 = vmatprep.subr.bf16.mxu0 %v6011_v63  ;;  %v6095_v62 = vld [vmem:[%s8354_s1 + $0x44c] ss:$16 sps:$4 sm:$0xff]   ;;  %v7140_v63 = vld [vmem:[%s6719_s20 + $0xd0] ss:$24 sps:$4 sm:$0xff]  }
  0x73   : > { %1843 = vmatprep.subr.bf16.mxu1 %v6014_v0  ;;  %v6093_v0 = vld [vmem:[%s8354_s1 + $0x448] ss:$16 sps:$4 sm:$0xff]  }
  0x75   : > { %1767 = vmatpush2.bf16.msra.mxu0 %v6009_v1  ;;  %v6098_v1 = vld [vmem:[%s8354_s1 + $0x3cc] ss:$16 sps:$4 sm:$0xff]  }
  0x76   : > { %1844 = vmatpush2.bf16.msra.mxu1 %v6012_v2  ;;  %1768 = vmatprep.subr.bf16.mxu0 %v6017_v3  ;;  %v6101_v2 = vld [vmem:[%s8354_s1 + $0x42c] ss:$16 sps:$4 sm:$0xff]   ;;  %v6096_v3 = vld [vmem:[%s8354_s1 + $0x3c8] ss:$16 sps:$4 sm:$0xff]  }
  0x77   : > { %1845 = vmatprep.subr.bf16.mxu1 %v6020_v49  ;;  %v6104_v49 = vld [vmem:[%s8354_s1 + $0x3ac] ss:$16 sps:$4 sm:$0xff]  }
  0x79   : > { %1769 = vmatpush2.bf16.msra.mxu0 %v6015_v5  ;;  %v6107_v5 = vld [vmem:[%s8354_s1 + $0x40c] ss:$16 sps:$4 sm:$0xff]  }
  0x7a   : > { %1846 = vmatpush2.bf16.msra.mxu1 %v6018_v6  ;;  %1770 = vmatprep.subr.bf16.mxu0 %v6023_v7  ;;  %v6102_v6 = vld [vmem:[%s8354_s1 + $0x3a8] ss:$16 sps:$4 sm:$0xff]   ;;  %v6110_v7 = vld [vmem:[%s8354_s1 + $0x38c] ss:$16 sps:$4 sm:$0xff]  }
  0x7b   : > { %1847 = vmatprep.subr.bf16.mxu1 %v6026_v8  ;;  %v6113_v8 = vld [vmem:[%s8354_s1 + $0x58c] ss:$16 sps:$4 sm:$0xff]  }
  0x7d   : > { %1771 = vmatpush2.bf16.msra.mxu0 %v6021_v9  ;;  %v6108_v9 = vld [vmem:[%s8354_s1 + $0x388] ss:$16 sps:$4 sm:$0xff]  }
  0x7e   : > { %1848 = vmatpush2.bf16.msra.mxu1 %v6024_v11  ;;  %1906 = vmatprep.subr.bf16.mxu0 %v6035_v13  ;;  %v6119_v11 = vld [vmem:[%s8354_s1 + $0x56c] ss:$16 sps:$4 sm:$0xff]  }
  0x7f   : > { %1849 = vmatprep.subr.bf16.mxu1 %v6032_v12  ;;  %v6114_v12 = vld [vmem:[%s8354_s1 + $0x368] ss:$16 sps:$4 sm:$0xff]   ;;  %v6122_v13 = vld [vmem:[%s8354_s1 + $0x34c] ss:$16 sps:$4 sm:$0xff]  }
  0x80   : > { %1773 = vmatmul.mubr.bf16.vlgmr.msra.gmra.mxu0 %v7006_v14 }
  0x81   : > { %1907 = vmatpush1.bf16.msra.mxu0 %v6033_v16  ;;  %5197 = vmatprep.mubr.msk.bf16.mxu0 %vm1558_vm0, %v7021_v20  ;;  %v6120_v16 = vld [vmem:[%s8354_s1 + $0x348] ss:$16 sps:$4 sm:$0xff]  }
  0x82   : > { %1850 = vmatpush2.bf16.msra.mxu1 %v6030_v15  ;;  %1908 = vmatprep.subr.bf16.mxu0 %v6041_v19  ;;  %v6125_v15 = vld [vmem:[%s8354_s1 + $0x54c] ss:$16 sps:$4 sm:$0xff]  }
  0x83   : > { %1851 = vmatprep.subr.bf16.mxu1 %v6038_v17  ;;  %v6128_v17 = vld [vmem:[%s8354_s1 + $0x32c] ss:$16 sps:$4 sm:$0xff]  }
  0x84   : > { %v6131_v19 = vld [vmem:[%s8354_s1 + $0x52c] ss:$16 sps:$4 sm:$0xff]  }
  0x85   : > { %1909 = vmatpush1.bf16.msra.mxu0 %v6039_v23  ;;  %v6134_v23 = vld [vmem:[%s8354_s1 + $0x30c] ss:$16 sps:$4 sm:$0xff]  }
  0x86   : > { %1852 = vmatpush2.bf16.msra.mxu1 %v6036_v21  ;;  %1910 = vmatprep.subr.bf16.mxu0 %v6050_v25  ;;  %v6126_v21 = vld [vmem:[%s8354_s1 + $0x328] ss:$16 sps:$4 sm:$0xff]  }
  0x87   : > { %1853 = vmatprep.subr.bf16.mxu1 %v6047_v24  ;;  %v6137_v24 = vld [vmem:[%s8354_s1 + $0x50c] ss:$16 sps:$4 sm:$0xff]   ;;  %v6132_v25 = vld [vmem:[%s8354_s1 + $0x308] ss:$16 sps:$4 sm:$0xff]  }
  0x88   : > { %1783 = vmatmul.mubr.bf16.gmra.mxu0 %v7039_v26 }
  0x89   : > { %1911 = vmatpush1.bf16.msra.mxu0 %v6048_v28  ;;  %5198 = vmatprep.mubr.msk.bf16.mxu0 %vm1558_vm0, %v7054_v32  ;;  %v6502_v28 = vld [vmem:[%s6719_s20 + $0x8] ss:$24 sps:$4 sm:$0xff]  }
  0x8a   : > { %1854 = vmatpush2.bf16.msra.mxu1 %v6045_v27  ;;  %1912 = vmatprep.subr.bf16.mxu0 %v6053_v29  ;;  %v6135_v27 = vld [vmem:[%s8354_s1 + $0x508] ss:$16 sps:$4 sm:$0xff]   ;;  %v6503_v29 = vld [vmem:[%s6719_s20 + $0x3c] ss:$24 sps:$4 sm:$0xff]  }
  0x8b   : > { %1989 = vmatprep.subr.bf16.mxu1 %v6056_v31  ;;  %v6504_v31 = vld [vmem:[%s6719_s20 + $0x38] ss:$24 sps:$4 sm:$0xff]  }
  0x8d   : > { %1856 = vmatmul.mubr.bf16.vlgmr.msra.gmra.mxu1 %v6793_v4  ;;  %1913 = vmatpush1.bf16.msra.mxu0 %v6051_v33  ;;  %v6071_v4 = vld [vmem:[%s8354_s1 + $0x4ac] ss:$16 sps:$4 sm:$0xff]  }
  0x8e   : > { %1990 = vmatpush1.bf16.msra.mxu1 %v6054_v35  ;;  %1914 = vmatprep.subr.bf16.mxu0 %v6062_v36  ;;  %v6505_v33 = vld [vmem:[%s6719_s20 + $0x6c] ss:$24 sps:$4 sm:$0xff]   ;;  %v6506_v35 = vld [vmem:[%s6719_s20 + $0x68] ss:$24 sps:$4 sm:$0xff]   ;;  %v6508_v36 = vld [vmem:[%s6719_s20 + $0x98] ss:$24 sps:$4 sm:$0xff]  }
  0x8f   : > { %1991 = vmatprep.subr.bf16.mxu1 %v6065_v37  ;;  %1865 = vmatprep.mubr.bf16.mxu1 %v6809_v10  ;;  %v7102_v10 = vld [vmem:[%s6719_s20 + $0xa0] ss:$24 sps:$4 sm:$0xff]  }
  0x90   : > { %1793 = vmatmul.mubr.bf16.gmra.mxu0 %v7072_v38 }
  0x91   : > { %1915 = vmatpush1.bf16.msra.mxu0 %v6060_v39  ;;  %5199 = vmatprep.mubr.msk.bf16.mxu0 %vm1558_vm0, %v7088_v43 }
  0x92   : > { %1992 = vmatpush1.bf16.msra.mxu1 %v6063_v40  ;;  %1916 = vmatprep.subr.bf16.mxu0 %v6068_v41 }
  0x93   : > { %1993 = vmatprep.subr.bf16.mxu1 %v6071_v4 }
  0x95   : > { %1866 = vmatmul.mubr.bf16.gmra.mxu1 %v6833_v18  ;;  %1917 = vmatpush1.bf16.msra.mxu0 %v6066_v44  ;;  %v6084_v18 = vld [vmem:[%s8354_s1 + $0x468] ss:$16 sps:$4 sm:$0xff]  }
  0x96   : > { %1994 = vmatpush1.bf16.msra.mxu1 %v6069_v45  ;;  %1918 = vmatprep.subr.bf16.mxu0 %v6077_v48 }
  0x97   : > { %1995 = vmatprep.subr.bf16.mxu1 %v6080_v50  ;;  %1875 = vmatprep.mubr.bf16.mxu1 %v6843_v22  ;;  %v6090_v22 = vld [vmem:[%s8354_s1 + $0x3e8] ss:$16 sps:$4 sm:$0xff]  }
  0x98   : > { %1803 = vmatmul.mubr.bf16.gmra.mxu0 %v7102_v10 }
  0x99   : > { %1919 = vmatpush1.bf16.msra.mxu0 %v6075_v52  ;;  %5200 = vmatprep.mubr.msk.bf16.mxu0 %vm1558_vm0, %v7123_v58 }
  0x9a   : > { %1996 = vmatpush1.bf16.msra.mxu1 %v6078_v53  ;;  %1920 = vmatprep.subr.bf16.mxu0 %v6083_v54 }
  0x9b   : > { %1997 = vmatprep.subr.bf16.mxu1 %v6086_v55 }
  0x9d   : > { %1876 = vmatmul.mubr.bf16.gmra.mxu1 %v6867_v30  ;;  %1921 = vmatpush1.bf16.msra.mxu0 %v6081_v59  ;;  %v6099_v30 = vld [vmem:[%s8354_s1 + $0x428] ss:$16 sps:$4 sm:$0xff]  }
  0x9e   : > { %1998 = vmatpush1.bf16.msra.mxu1 %v6084_v18  ;;  %1922 = vmatprep.subr.bf16.mxu0 %v6092_v61 }
  0x9f   : > { %1999 = vmatprep.subr.bf16.mxu1 %v6095_v62  ;;  %1885 = vmatprep.mubr.bf16.mxu1 %v6877_v34  ;;  %v6105_v34 = vld [vmem:[%s8354_s1 + $0x408] ss:$16 sps:$4 sm:$0xff]  }
  0xa0   : > { %1813 = vmatmul.mubr.bf16.gmra.mxu0 %v7140_v63 }
  0xa1   : > { %1923 = vmatpush2.bf16.msra.mxu0 %v6090_v22  ;;  %1938 = vmatprep.mubr.bf16.mxu0 %v6740_v51  ;;  %v6111_v51 = vld [vmem:[%s8354_s1 + $0x588] ss:$16 sps:$4 sm:$0xff]  }
  0xa2   : > { %2000 = vmatpush1.bf16.msra.mxu1 %v6093_v0  ;;  %1924 = vmatprep.subr.bf16.mxu0 %v6098_v1 }
  0xa3   : > { %2001 = vmatprep.subr.bf16.mxu1 %v6101_v2 }
  0xa5   : > { %1886 = vmatmul.mubr.bf16.gmra.mxu1 %v6901_v42  ;;  %1925 = vmatpush2.bf16.msra.mxu0 %v6096_v3  ;;  %v6116_v42 = vld [vmem:[%s8354_s1 + $0x36c] ss:$16 sps:$4 sm:$0xff]  }
  0xa6   : > { %2002 = vmatpush1.bf16.msra.mxu1 %v6099_v30  ;;  %1926 = vmatprep.subr.bf16.mxu0 %v6104_v49 }
  0xa7   : > { %2003 = vmatprep.subr.bf16.mxu1 %v6107_v5  ;;  %1895 = vmatprep.mubr.bf16.mxu1 %v6911_v46  ;;  %v6117_v46 = vld [vmem:[%s8354_s1 + $0x568] ss:$16 sps:$4 sm:$0xff]  }
  0xa9   : > { %1927 = vmatpush2.bf16.msra.mxu0 %v6102_v6 }
  0xaa   : > { %2004 = vmatpush1.bf16.msra.mxu1 %v6105_v34  ;;  %1928 = vmatprep.subr.bf16.mxu0 %v6110_v7 }
  0xab   : > { %2011 = vmatprep.subr.bf16.mxu1 %v6113_v8 }
  0xad   : > { %1896 = vmatmul.mubr.bf16.gmra.mxu1 %v6938_v56  ;;  %1929 = vmatpush2.bf16.msra.mxu0 %v6108_v9  ;;  %v6123_v56 = vld [vmem:[%s8354_s1 + $0x548] ss:$16 sps:$4 sm:$0xff]  }
  0xae   : > { %2012 = vmatpush2.bf16.msra.mxu1 %v6111_v51  ;;  %1930 = vmatprep.subr.bf16.mxu0 %v6116_v42 }
  0xaf   : > { %2013 = vmatprep.subr.bf16.mxu1 %v6119_v11  ;;  %5201 = vmatprep.mubr.msk.bf16.mxu1 %vm1558_vm0, %v6950_v60  ;;  %v6129_v60 = vld [vmem:[%s8354_s1 + $0x528] ss:$16 sps:$4 sm:$0xff]  }
  0xb1   : > { %1931 = vmatpush2.bf16.msra.mxu0 %v6114_v12 }
  0xb2   : > { %2014 = vmatpush2.bf16.msra.mxu1 %v6117_v46  ;;  %1932 = vmatprep.subr.bf16.mxu0 %v6122_v13 }
  0xb3   : > { %2015 = vmatprep.subr.bf16.mxu1 %v6125_v15 }
  0xb5   : > { %1933 = vmatpush2.bf16.msra.mxu0 %v6120_v16 }
  0xb6   : > { %2016 = vmatpush2.bf16.msra.mxu1 %v6123_v56  ;;  %1934 = vmatprep.subr.bf16.mxu0 %v6128_v17 }
  0xb7   : > { %2017 = vmatprep.subr.bf16.mxu1 %v6131_v19 }
  0xb9   : > { %1935 = vmatpush2.bf16.msra.mxu0 %v6126_v21 }
  0xba   : > { %2018 = vmatpush2.bf16.msra.mxu1 %v6129_v60  ;;  %1936 = vmatprep.subr.bf16.mxu0 %v6134_v23 }
  0xbb   : > { %2019 = vmatprep.subr.bf16.mxu1 %v6137_v24 }
  0xbd   : > { %1937 = vmatpush2.bf16.msra.mxu0 %v6132_v25 }
  0xbe   : > { %2020 = vmatpush2.bf16.msra.mxu1 %v6135_v27 }
  0xc0   : > { %1939 = vmatmul.mubr.bf16.vlgmr.msra.gmra.mxu0 %v6502_v28 }
  0xc1   : > { %2022 = vmatmul.mubr.bf16.vlgmr.msra.gmra.mxu1 %v7006_v14  ;;  %1948 = vmatprep.mubr.bf16.mxu0 %v6503_v29  ;;  %v6507_v14 = vld [vmem:[%s6719_s20 + $0x9c] ss:$24 sps:$4 sm:$0xff]  }
  0xc2   : > { %5202 = vmatprep.mubr.msk.bf16.mxu1 %vm1558_vm0, %v7021_v20 }
  0xc8   : > { %1949 = vmatmul.mubr.bf16.gmra.mxu0 %v6504_v31 }
  0xc9   : > { %2032 = vmatmul.mubr.bf16.gmra.mxu1 %v7039_v26  ;;  %1958 = vmatprep.mubr.bf16.mxu0 %v6505_v33 }
  0xca   : > { %5203 = vmatprep.mubr.msk.bf16.mxu1 %vm1558_vm0, %v7054_v32 }
  0xd0   : > { %1959 = vmatmul.mubr.bf16.gmra.mxu0 %v6506_v35 }
  0xd1   : > { %2042 = vmatmul.mubr.bf16.gmra.mxu1 %v7072_v38  ;;  %1968 = vmatprep.mubr.bf16.mxu0 %v6507_v14 }
  0xd2   : > { %5204 = vmatprep.mubr.msk.bf16.mxu1 %vm1558_vm0, %v7088_v43 }
  0xd8   : > { %1969 = vmatmul.mubr.bf16.gmra.mxu0 %v6508_v36 }
  0xd9   : > { %2052 = vmatmul.mubr.bf16.gmra.mxu1 %v7102_v10  ;;  %1978 = vmatprep.mubr.bf16.mxu0 %v6914_v47 }
  0xda   : > { %5205 = vmatprep.mubr.msk.bf16.mxu1 %vm1558_vm0, %v7123_v58 }
  0xe0   : > { %1979 = vmatmul.mubr.bf16.gmra.mxu0 %v6941_v57 }
  0xe1   : > { %2062 = vmatmul.mubr.bf16.gmra.mxu1 %v7140_v63 }
 0x10c   : > { %v1608_v20 = vpop.f32.mrf.mxu0 }
 0x10d   : > { %v1691_v26 = vpop.f32.mrf.mxu1 }
 0x10e   : > { %v1692_v32 = vadd.f32 %v1691_v26, %v1608_v20  ;;  %v1610_v37 = vpop.f32.mrf.mxu0 }
 0x10f   : > { %v1693_v38 = vpop.f32.mrf.mxu1 }
 0x110   : > { %v1694_v39 = vadd.f32 %v1693_v38, %v1610_v37  ;;  %v1612_v40 = vpop.f32.mrf.mxu0 }
 0x111   : > { %v1695_v41 = vpop.f32.mrf.mxu1 }
 0x112   : > { %v1696_v4 = vadd.f32 %v1695_v41, %v1612_v40  ;;  %v1614_v43 = vpop.f32.mrf.mxu0  ;;  %v8362_v41 = vmov 0  }
 0x113   : > { %v1697_v44 = vpop.f32.mrf.mxu1  ;;  %2175 = vmatprep.mubr.bf16.mxu0 %v8362_v41  ;;  %2280 = vmatprep.mubr.bf16.mxu1 %v8362_v41 }
 0x114   : > { %v1618_v45 = vpop.f32.mrf.mxu0  ;;  %v1698_v14 = vadd.f32 %v1697_v44, %v1614_v43 }
 0x115   : > { %v1701_v47 = vpop.f32.mrf.mxu1 }
 0x116   : > { %v1702_v48 = vadd.f32 %v1701_v47, %v1618_v45  ;;  %v1620_v10 = vpop.f32.mrf.mxu0 }
 0x117   : > { %v1703_v50 = vpop.f32.mrf.mxu1 }
 0x118   : > { %v1704_v52 = vadd.f32 %v1703_v50, %v1620_v10  ;;  %v1622_v57 = vpop.f32.mrf.mxu0 }
 0x119   : > { %v1705_v53 = vpop.f32.mrf.mxu1 }
 0x11a   : > { %v1706_v54 = vadd.f32 %v1705_v53, %v1622_v57  ;;  %v1624_v55 = vpop.f32.mrf.mxu0 }
 0x11b   : > { %v1707_v58 = vpop.f32.mrf.mxu1 }
 0x11c   : > { %v1628_v59 = vpop.f32.mrf.mxu0  ;;  %v1708_v47 = vadd.f32 %v1707_v58, %v1624_v55 }
 0x11d   : > { %v1711_v18 = vpop.f32.mrf.mxu1 }
 0x11e   : > { %v1712_v61 = vadd.f32 %v1711_v18, %v1628_v59  ;;  %v1630_v62 = vpop.f32.mrf.mxu0 }
 0x11f   : > { %v1713_v63 = vpop.f32.mrf.mxu1 }
 0x120   : > { %v7265_v22 = vadd.f32 %v1713_v63, %v1630_v62  ;;  %v1632_v0 = vpop.f32.mrf.mxu0 }
 0x121   : > { %v1715_v1 = vpop.f32.mrf.mxu1 }
 0x122   : > { %v1716_v2 = vadd.f32 %v1715_v1, %v1632_v0  ;;  %v1634_v3 = vpop.f32.mrf.mxu0 }
 0x123   : > { %v1717_v30 = vpop.f32.mrf.mxu1 }
 0x124   : > { %v1638_v49 = vpop.f32.mrf.mxu0 }
 0x125   : > { %v1721_v5 = vpop.f32.mrf.mxu1 }
 0x126   : > { %v1722_v6 = vadd.f32 %v1721_v5, %v1638_v49  ;;  %v1640_v34 = vpop.f32.mrf.mxu0 }
 0x127   : > { %v1723_v7 = vpop.f32.mrf.mxu1 }
 0x128   : > { %v7267_v8 = vadd.f32 %v1723_v7, %v1640_v34  ;;  %v1642_v9 = vpop.f32.mrf.mxu0 }
 0x129   : > { %v1725_v51 = vpop.f32.mrf.mxu1 }
 0x12a   : > { %v7269_v42 = vadd.f32 %v1725_v51, %v1642_v9  ;;  %v1644_v11 = vpop.f32.mrf.mxu0 }
 0x12b   : > { %v1727_v12 = vpop.f32.mrf.mxu1 }
 0x12c   : > { %v7271_v46 = vadd.f32 %v1727_v12, %v1644_v11  ;;  %v1648_v13 = vpop.f32.mrf.mxu0 }
 0x12d   : > { %v1731_v15 = vpop.f32.mrf.mxu1 }
 0x12e   : > { %v7273_v16 = vadd.f32 %v1731_v15, %v1648_v13  ;;  %v1650_v56 = vpop.f32.mrf.mxu0 }
 0x12f   : > { %v1733_v17 = vpop.f32.mrf.mxu1 }
 0x130   : > { %v7275_v19 = vadd.f32 %v1733_v17, %v1650_v56  ;;  %v1652_v21 = vpop.f32.mrf.mxu0 }
 0x131   : > { %v1735_v60 = vpop.f32.mrf.mxu1 }
 0x132   : > { %v7277_v23 = vadd.f32 %v1735_v60, %v1652_v21  ;;  %v1654_v24 = vpop.f32.mrf.mxu0 }
 0x133   : > { %v1737_v25 = vpop.f32.mrf.mxu1 }
 0x134   : > { %v7279_v27 = vadd.f32 %v1737_v25, %v1654_v24 }
 0x136   : > { %8364 = vst [vmem:[#allocation3_spill] sm:$0xff] %v7279_v27 }
 0x140   : > { %v1774_v28 = vpop.f32.mrf.mxu0 }
 0x141   : > { %v7281_v29 = vadd.f32 %v1774_v28, %v1692_v32 }
 0x142   : > { %v1776_v31 = vpop.f32.mrf.mxu0 }
 0x143   : > { %v7283_v33 = vadd.f32 %v1776_v31, %v1694_v39 }
 0x144   : > { %v1778_v35 = vpop.f32.mrf.mxu0 }
 0x145   : > { %v7285_v36 = vadd.f32 %v1778_v35, %v1696_v4 }
 0x146   : > { %v1780_v20 = vpop.f32.mrf.mxu0 }
 0x147   : > { %v7287_v26 = vadd.f32 %v1780_v20, %v1698_v14 }
 0x148   : > { %v1784_v37 = vpop.f32.mrf.mxu0 }
 0x149   : > { %v7289_v38 = vadd.f32 %v1784_v37, %v1702_v48 }
 0x14a   : > { %v1786_v40 = vpop.f32.mrf.mxu0 }
 0x14b   : > { %v7293_v32 = vadd.f32 %v1786_v40, %v1704_v52  ;;  %v1718_v52 = vadd.f32 %v1717_v30, %v1634_v3 }
 0x14c   : > { %v1788_v39 = vpop.f32.mrf.mxu0 }
 0x14d   : > { %v1857_v45 = vpop.f32.mrf.mxu1  ;;  %v7295_v43 = vadd.f32 %v1788_v39, %v1706_v54 }
 0x14e   : > { %v1790_v4 = vpop.f32.mrf.mxu0 }
 0x14f   : > { %v1859_v44 = vpop.f32.mrf.mxu1  ;;  %v7297_v10 = vadd.f32 %v1790_v4, %v1708_v47 }
 0x150   : > { %v1794_v50 = vpop.f32.mrf.mxu0 }
 0x151   : > { %v1861_v48 = vpop.f32.mrf.mxu1  ;;  %v7299_v57 = vadd.f32 %v1794_v50, %v1712_v61 }
 0x152   : > { %v7301_v53 = vpop.f32.mrf.mxu0 }
 0x153   : > { %8365 = vst [vmem:[#allocation4_spill] sm:$0xff] %v7301_v53  ;;  %v1863_v59 = vpop.f32.mrf.mxu1 }
 0x154   : > { %v1798_v18 = vpop.f32.mrf.mxu0 }
 0x155   : > { %v1867_v62 = vpop.f32.mrf.mxu1  ;;  %v7303_v63 = vadd.f32 %v1798_v18, %v1716_v2 }
 0x156   : > { %v1800_v0 = vpop.f32.mrf.mxu0 }
 0x157   : > { %v1869_v55 = vpop.f32.mrf.mxu1  ;;  %v7305_v54 = vadd.f32 %v1800_v0, %v1718_v52 }
 0x158   : > { %v1804_v58 = vpop.f32.mrf.mxu0 }
 0x159   : > { %v1871_v1 = vpop.f32.mrf.mxu1  ;;  %v7307_v49 = vadd.f32 %v1804_v58, %v1722_v6 }
 0x15a   : > { %v7319_v2 = vpop.f32.mrf.mxu0 }
 0x15b   : > { %v1873_v5 = vpop.f32.mrf.mxu1 }
 0x15c   : > { %v7323_v51 = vpop.f32.mrf.mxu0 }
 0x15d   : > { %v7309_v34 = vpop.f32.mrf.mxu1 }
 0x15e   : > { %v7327_v6 = vpop.f32.mrf.mxu0 }
 0x15f   : > { %v7311_v61 = vpop.f32.mrf.mxu1 }
 0x160   : > { %v7331_v13 = vpop.f32.mrf.mxu0 }
 0x161   : > { %v7313_v7 = vpop.f32.mrf.mxu1 }
 0x162   : > { %v7335_v56 = vpop.f32.mrf.mxu0 }
 0x163   : > { %v7315_v9 = vpop.f32.mrf.mxu1 }
 0x164   : > { %v7339_v21 = vpop.f32.mrf.mxu0 }
 0x165   : > { %v7317_v3 = vpop.f32.mrf.mxu1 }
 0x166   : > { %v7343_v24 = vpop.f32.mrf.mxu0 }
 0x167   : > { %v7321_v30 = vpop.f32.mrf.mxu1  ;;  %8366 = vst [vmem:[#allocation5_spill] sm:$0xff] %v7343_v24 }
 0x169   : > { %v7325_v11 = vpop.f32.mrf.mxu1 }
 0x16b   : > { %v7329_v12 = vpop.f32.mrf.mxu1 }
 0x16d   : > { %v7333_v15 = vpop.f32.mrf.mxu1 }
 0x16f   : > { %v7337_v17 = vpop.f32.mrf.mxu1 }
 0x171   : > { %v7341_v60 = vpop.f32.mrf.mxu1 }
 0x173   : > { %v7345_v25 = vpop.f32.mrf.mxu1 }
 0x180   : > { %v1940_v28 = vpop.f32.mrf.mxu0 }
 0x181   : > { %v2023_v31 = vpop.f32.mrf.mxu1  ;;  %v1941_v35 = vadd.f32 %v1940_v28, %v1857_v45 }
 0x182   : > { %v1942_v14 = vpop.f32.mrf.mxu0 }
 0x183   : > { %v2025_v20 = vpop.f32.mrf.mxu1  ;;  %v2024_v37 = vadd.f32 %v2023_v31, %v1941_v35  ;;  %v1943_v40 = vadd.f32 %v1942_v14, %v1859_v44 }
 0x184   : > { %v1944_v39 = vpop.f32.mrf.mxu0 }
 0x185   : > { %v2027_v47 = vpop.f32.mrf.mxu1  ;;  %v2072_v4 = vmax.f32 %v7281_v29, %v2024_v37  ;;  %v2026_v50 = vadd.f32 %v2025_v20, %v1943_v40  ;;  %v1945_v18 = vadd.f32 %v1944_v39, %v1861_v48 }
 0x186   : > { %v1946_v52 = vpop.f32.mrf.mxu0 }
 0x187   : > { %v2029_v0 = vpop.f32.mrf.mxu1  ;;  %v2073_v58 = vmax.f32 %v7283_v33, %v2026_v50  ;;  %v2028_v41 = vadd.f32 %v2027_v47, %v1945_v18  ;;  %v1947_v24 = vadd.f32 %v1946_v52, %v1863_v59 }
 0x188   : > { %v1950_v27 = vpop.f32.mrf.mxu0 }
 0x189   : > { %v2033_v53 = vpop.f32.mrf.mxu1  ;;  %v2074_v45 = vmax.f32 %v7285_v36, %v2028_v41  ;;  %v7350_v28 = vadd.f32 %v2029_v0, %v1947_v24  ;;  %v1951_v31 = vadd.f32 %v1950_v27, %v1867_v62 }
 0x18a   : > { %v1952_v44 = vpop.f32.mrf.mxu0 }
 0x18b   : > { %v2035_v35 = vpop.f32.mrf.mxu1  ;;  %v2075_v29 = vmax.f32 %v7287_v26, %v7350_v28  ;;  %v7354_v14 = vadd.f32 %v2033_v53, %v1951_v31  ;;  %v1953_v48 = vadd.f32 %v1952_v44, %v1869_v55 }
 0x18c   : > { %v1954_v20 = vpop.f32.mrf.mxu0 }
 0x18d   : > { %v2037_v37 = vpop.f32.mrf.mxu1  ;;  %v2076_v33 = vmax.f32 %v7289_v38, %v7354_v14  ;;  %v7358_v59 = vadd.f32 %v2035_v35, %v1953_v48  ;;  %v1955_v40 = vadd.f32 %v1954_v20, %v1871_v1 }
 0x18e   : > { %v1956_v36 = vpop.f32.mrf.mxu0 }
 0x18f   : > { %v2039_v41 = vpop.f32.mrf.mxu1  ;;  %v7362_v62 = vadd.f32 %v2037_v37, %v1955_v40  ;;  %v1957_v24 = vadd.f32 %v1956_v36, %v1873_v5 }
 0x190   : > { %v1960_v26 = vpop.f32.mrf.mxu0 }
 0x191   : > { %v2043_v53 = vpop.f32.mrf.mxu1  ;;  %v7366_v39 = vadd.f32 %v2039_v41, %v1957_v24 }
 0x192   : > { %v1962_v47 = vpop.f32.mrf.mxu0 }
 0x193   : > { %v7368_v50 = vpop.f32.mrf.mxu1 }
 0x194   : > { %v1964_v18 = vpop.f32.mrf.mxu0 }
 0x195   : > { %v2047_v52 = vpop.f32.mrf.mxu1  ;;  %v1965_v0 = vadd.f32 %v1964_v18, %v7313_v7 }
 0x196   : > { %v1966_v28 = vpop.f32.mrf.mxu0 }
 0x197   : > { %v2049_v31 = vpop.f32.mrf.mxu1  ;;  %v2048_v5 = vadd.f32 %v2047_v52, %v1965_v0  ;;  %v1967_v44 = vadd.f32 %v1966_v28, %v7315_v9  ;;  %v1807_v9 = vadd.f32 %v7319_v2, %v7267_v8  ;;  %v1961_v8 = vadd.f32 %v1960_v26, %v7309_v34 }
 0x198   : > { %v1970_v35 = vpop.f32.mrf.mxu0 }
 0x199   : > { %v2053_v48 = vpop.f32.mrf.mxu1  ;;  %v2082_v20 = vmax.f32 %v7303_v63, %v2048_v5  ;;  %v2050_v37 = vadd.f32 %v2049_v31, %v1967_v44  ;;  %v1971_v40 = vadd.f32 %v1970_v35, %v7317_v3  ;;  %v1811_v44 = vadd.f32 %v7327_v6, %v7271_v46 }
 0x19a   : > { %v1972_v36 = vpop.f32.mrf.mxu0  ;;  %v2044_v26 = vadd.f32 %v2043_v53, %v1961_v8 }
 0x19b   : > { %v2055_v41 = vpop.f32.mrf.mxu1  ;;  %v2092_v24 = vmax.f32 %v2072_v4, %v2082_v20  ;;  %v2083_v1 = vmax.f32 %v7305_v54, %v2050_v37  ;;  %v2054_v55 = vadd.f32 %v2053_v48, %v1971_v40  ;;  %v1973_v7 = vadd.f32 %v1972_v36, %v7321_v30  ;;  %v8372_v36 = vld [vmem:[#allocation5_spill] sm:$0xff] }
 0x19c   : > { %v1974_v18 = vpop.f32.mrf.mxu0  ;;  %v1809_v4 = vadd.f32 %v7323_v51, %v7269_v42  ;;  %v1815_v42 = vadd.f32 %v7331_v13, %v7273_v16  ;;  %v8367_v13 = vmax.f32 %v7293_v32, %v7358_v59  ;;  %v2080_v59 = vmax.f32 %v7299_v57, %v2044_v26  ;;  %v6146_v26 = vld [vmem:[%s8355_s2 + $0x150] ss:$8 sps:$4 sm:$0xff]  }
 0x19d   : > { %v2057_v27 = vpop.f32.mrf.mxu1  ;;  %v2093_v52 = vmax.f32 %v2073_v58, %v2083_v1  ;;  %v2084_v0 = vmax.f32 %v7307_v49, %v2054_v55  ;;  %v2056_v63 = vadd.f32 %v2055_v41, %v1973_v7  ;;  %v1975_v28 = vadd.f32 %v1974_v18, %v7325_v11 }
 0x19e   : > { %v1976_v3 = vpop.f32.mrf.mxu0  ;;  %6474 = vtanh.f32 %v2092_v24 }
 0x19f   : > { %v2059_v31 = vpop.f32.mrf.mxu1  ;;  %v2094_v54 = vmax.f32 %v2074_v45, %v2084_v0  ;;  %v2085_v5 = vmax.f32 %v1807_v9, %v2056_v63  ;;  %v1977_v30 = vadd.f32 %v1976_v3, %v7329_v12  ;;  %v2058_v2 = vadd.f32 %v2057_v27, %v1975_v28 }
 0x1a0   : > { %v1980_v49 = vpop.f32.mrf.mxu0  ;;  %v1817_v27 = vadd.f32 %v7335_v56, %v7275_v19  ;;  %v1819_v19 = vadd.f32 %v7339_v21, %v7277_v23  ;;  %v8370_v21 = vld [vmem:[#allocation4_spill] sm:$0xff] }
 0x1a1   : > { %v2063_v58 = vpop.f32.mrf.mxu1  ;;  %6476 = vtanh.f32 %v2094_v54  ;;  %v2095_v11 = vmax.f32 %v2075_v29, %v2085_v5  ;;  %v2060_v55 = vadd.f32 %v2059_v31, %v1977_v30  ;;  %v1981_v1 = vadd.f32 %v1980_v49, %v7333_v15  ;;  %v6192_v49 = vld [vmem:[%s8355_s2 + $0x74] ss:$8 sps:$4 sm:$0xff]  }
 0x1a2   : > { %6478 = vtanh.f32 %v2093_v52  ;;  %v2086_v51 = vmax.f32 %v1809_v4, %v2058_v2  ;;  %v1982_v12 = vpop.f32.mrf.mxu0  ;;  %v1963_v29 = vadd.f32 %v1962_v47, %v7311_v61  ;;  %v8368_v61 = vmax.f32 %v7295_v43, %v7362_v62  ;;  %v8371_v62 = vld [vmem:[#allocation3_spill] sm:$0xff]  ;;  %v6142_v2 = vld [vmem:[%s8355_s2 + $0x174] ss:$8 sps:$4 sm:$0xff]  }
 0x1a3   : > { %v2065_v45 = vpop.f32.mrf.mxu1  ;;  %6480 = vtanh.f32 %v2095_v11  ;;  %v2087_v46 = vmax.f32 %v1811_v44, %v2060_v55  ;;  %v2064_v6 = vadd.f32 %v2063_v58, %v1981_v1  ;;  %v1983_v34 = vadd.f32 %v1982_v12, %v7337_v17  ;;  %v6138_v58 = vld [vmem:[%s8356_s3] sm:$0xff]   ;;  %v6139_v11 = vld [vmem:[%s8356_s3 + $0xc] sm:$0xff]  }
 0x1a4   : > { %v2096_v15 = vmax.f32 %v2076_v33, %v2086_v51  ;;  %v1984_v16 = vpop.f32.mrf.mxu0  ;;  %v2046_v33 = vadd.f32 %v7368_v50, %v1963_v29  ;;  %v1797_v43 = vadd.f32 %v8370_v21, %v7265_v22  ;;  %v1821_v41 = vadd.f32 %v8372_v36, %v8371_v62  ;;  %v6140_v55 = vld [vmem:[%s8355_s2 + $0x170] ss:$8 sps:$4 sm:$0xff]   ;;  %v6145_v1 = vld [vmem:[%s8355_s2 + $0x164] ss:$8 sps:$4 sm:$0xff]   ;;  %v6143_v12 = vld [vmem:[%s8355_s2 + $0x160] ss:$8 sps:$4 sm:$0xff]  }
 0x1a5   : > { %v2097_v35 = vmax.f32 %v8367_v13, %v2087_v46  ;;  %v2088_v48 = vmax.f32 %v1815_v42, %v2064_v6  ;;  %v2066_v20 = vadd.f32 %v2065_v45, %v1983_v34  ;;  %v1985_v37 = vadd.f32 %v1984_v16, %v7341_v60  ;;  %v2067_v17 = vpop.f32.mrf.mxu1  ;;  %v6190_v42 = vld [vmem:[%s8355_s2 + $0x70] ss:$8 sps:$4 sm:$0xff]   ;;  %v6195_v51 = vld [vmem:[%s8355_s2 + $0x64] ss:$8 sps:$4 sm:$0xff]   ;;  %v6148_v46 = vld [vmem:[%s8355_s2 + $0x154] ss:$8 sps:$4 sm:$0xff]  }
 0x1a6   : > { %v1986_v40 = vpop.f32.mrf.mxu0  ;;  %6482 = vtanh.f32 %v2096_v15  ;;  %v8369_v60 = vmax.f32 %v7297_v10, %v7366_v39  ;;  %v8373_v45 = vmov 0   ;;  %v6193_v6 = vld [vmem:[%s8355_s2 + $0x60] ss:$8 sps:$4 sm:$0xff]   ;;  %v6149_v34 = vld [vmem:[%s8356_s3 + $0x14] ss:$0 sps:$4 sm:$0x11]  }
 0x1a7   : > { %v2098_v56 = vmax.f32 %v8368_v61, %v2088_v48  ;;  %v2089_v38 = vmax.f32 %v1817_v27, %v2066_v20  ;;  %v2068_v14 = vadd.f32 %v2067_v17, %v1985_v37  ;;  %v1987_v32 = vadd.f32 %v1986_v40, %v7345_v25  ;;  %v2069_v23 = vpop.f32.mrf.mxu1  ;;  %v6162_v27 = vld [vmem:[%s8356_s3 + $0x8] ss:$0 sps:$4 sm:$0x11]   ;;  %v6198_v29 = vld [vmem:[%s8355_s2 + $0x54] ss:$8 sps:$4 sm:$0xff]  }
 0x1a8   : > { %v2081_v25 = vmax.f32 %v1797_v43, %v2046_v33  ;;  %v6152_v15 = vld [vmem:[%s8355_s2 + $0x144] ss:$8 sps:$4 sm:$0xff]   ;;  %v6196_v16 = vld [vmem:[%s8355_s2 + $0x50] ss:$8 sps:$4 sm:$0xff]   ;;  %v6155_v48 = vld [vmem:[%s8355_s2 + $0x134] ss:$8 sps:$4 sm:$0xff]  }
 0x1a9   : > { %6484 = vtanh.f32 %v2098_v56  ;;  %v2099_v53 = vmax.f32 %v8369_v60, %v2089_v38  ;;  %v2090_v47 = vmax.f32 %v1819_v19, %v2068_v14  ;;  %v2070_v50 = vadd.f32 %v2069_v23, %v1987_v32  ;;  %v6201_v13 = vld [vmem:[%s8355_s2 + $0x44] ss:$8 sps:$4 sm:$0xff]   ;;  %v6199_v20 = vld [vmem:[%s8355_s2 + $0x40] ss:$8 sps:$4 sm:$0xff]   ;;  %v6204_v37 = vld [vmem:[%s8355_s2 + $0x34] ss:$8 sps:$4 sm:$0xff]  }
 0x1aa   : > { %6486 = vtanh.f32 %v2097_v35  ;;  %v6150_v35 = vld [vmem:[%s8355_s2 + $0x140] ss:$8 sps:$4 sm:$0xff]   ;;  %v6153_v17 = vld [vmem:[%s8355_s2 + $0x130] ss:$8 sps:$4 sm:$0xff]   ;;  %v6158_v40 = vld [vmem:[%s8355_s2 + $0x124] ss:$8 sps:$4 sm:$0xff]  }
 0x1ab   : > { %6488 = vtanh.f32 %v2099_v53  ;;  %v2100_v24 = vmax.f32 %v2080_v59, %v2090_v47  ;;  %v2091_v7 = vmax.f32 %v1821_v41, %v2070_v50  ;;  %v6475_v57 = vpop.eup %6474  ;;  %v6202_v19 = vld [vmem:[%s8355_s2 + $0x30] ss:$8 sps:$4 sm:$0xff]   ;;  %v6207_v61 = vld [vmem:[%s8355_s2 + $0x24] ss:$8 sps:$4 sm:$0xff]   ;;  %v6156_v56 = vld [vmem:[%s8355_s2 + $0x120] ss:$8 sps:$4 sm:$0xff]  }
 0x1ac   : > { %v6161_v38 = vld [vmem:[%s8355_s2 + $0x114] ss:$8 sps:$4 sm:$0xff]   ;;  %v6205_v14 = vld [vmem:[%s8355_s2 + $0x20] ss:$8 sps:$4 sm:$0xff]   ;;  %v6159_v32 = vld [vmem:[%s8355_s2 + $0x110] ss:$8 sps:$4 sm:$0xff]  }
 0x1ad   : > { %6490 = vtanh.f32 %v2100_v24  ;;  %v2101_v9 = vmax.f32 %v2081_v25, %v2091_v7  ;;  %v6210_v33 = vld [vmem:[%s8355_s2 + $0x14] ss:$8 sps:$4 sm:$0xff]   ;;  %v6165_v59 = vld [vmem:[%s8355_s2 + $0x104] ss:$8 sps:$4 sm:$0xff]   ;;  %v6208_v60 = vld [vmem:[%s8355_s2 + $0x10] ss:$8 sps:$4 sm:$0xff]  }
 0x1ae   : > { %v6477_v18 = vpop.eup %6476  ;;  %v6213_v53 = vld [vmem:[%s8355_s2 + $0x4] ss:$8 sps:$4 sm:$0xff]   ;;  %v6163_v47 = vld [vmem:[%s8355_s2 + $0x100] ss:$8 sps:$4 sm:$0xff]   ;;  %v6168_v23 = vld [vmem:[%s8355_s2 + $0x1f4] ss:$8 sps:$4 sm:$0xff]  }
 0x1af   : > { %v6479_v10 = vpop.eup %6478  ;;  %v7417_v39 = vpack.c.bf16 %v6477_v18, %v6475_v57  ;;  %6492 = vtanh.f32 %v2101_v9  ;;  %v6211_v21 = vld [vmem:[%s8355_s2] ss:$8 sps:$4 sm:$0xff]   ;;  %v6216_v43 = vld [vmem:[%s8355_s2 + $0xf4] ss:$8 sps:$4 sm:$0xff]   ;;  %v6166_v62 = vld [vmem:[%s8355_s2 + $0x1f0] ss:$8 sps:$4 sm:$0xff]  }
 0x1b0   : > { %v6481_v52 = vpop.eup %6480  ;;  %v6171_v36 = vld [vmem:[%s8355_s2 + $0x1e4] ss:$8 sps:$4 sm:$0xff]   ;;  %v6214_v41 = vld [vmem:[%s8355_s2 + $0xf0] ss:$8 sps:$4 sm:$0xff]   ;;  %v6169_v24 = vld [vmem:[%s8355_s2 + $0x1e0] ss:$8 sps:$4 sm:$0xff]  }
 0x1b1   : > { %v7419_v0 = vpack.c.bf16 %v6481_v52, %v6479_v10  ;;  %v6219_v50 = vld [vmem:[%s8355_s2 + $0xe4] ss:$8 sps:$4 sm:$0xff]   ;;  %v6174_v25 = vld [vmem:[%s8355_s2 + $0x1d4] ss:$8 sps:$4 sm:$0xff]   ;;  %v6217_v7 = vld [vmem:[%s8355_s2 + $0xe0] ss:$8 sps:$4 sm:$0xff]  }
 0x1b2   : > { %v6222_v57 = vld [vmem:[%s8355_s2 + $0xd4] ss:$8 sps:$4 sm:$0xff]   ;;  %v6172_v18 = vld [vmem:[%s8355_s2 + $0x1d0] ss:$8 sps:$4 sm:$0xff]   ;;  %v6177_v9 = vld [vmem:[%s8355_s2 + $0x1c4] ss:$8 sps:$4 sm:$0xff]  }
 0x1b3   : > { %v6483_v22 = vpop.eup %6482  ;;  %v6220_v10 = vld [vmem:[%s8355_s2 + $0xd0] ss:$8 sps:$4 sm:$0xff]   ;;  %v6225_v52 = vld [vmem:[%s8355_s2 + $0xc4] ss:$8 sps:$4 sm:$0xff]  }
 0x1b6   : > { %v6485_v63 = vpop.eup %6484 }
 0x1b7   : > { %v6487_v28 = vpop.eup %6486  ;;  %v7421_v3 = vpack.c.bf16 %v6485_v63, %v6483_v22  ;;  %v6175_v22 = vld [vmem:[%s8355_s2 + $0x1c0] ss:$8 sps:$4 sm:$0xff]   ;;  %v6180_v63 = vld [vmem:[%s8355_s2 + $0x1b4] ss:$8 sps:$4 sm:$0xff]  }
 0x1b8   : > { %v6489_v31 = vpop.eup %6488 }
 0x1b9   : > { %v7423_v4 = vpack.c.bf16 %v6489_v31, %v6487_v28  ;;  %v6223_v28 = vld [vmem:[%s8355_s2 + $0xc0] ss:$8 sps:$4 sm:$0xff]   ;;  %v6228_v31 = vld [vmem:[%s8355_s2 + $0xb4] ss:$8 sps:$4 sm:$0xff]  }
 0x1ba   : > { %v6491_v54 = vpop.eup %6490 }
 0x1bb   : > { %v2116_v5 = vpack.c.bf16 %v6491_v54, %v6491_v54  ;;  %v6178_v54 = vld [vmem:[%s8355_s2 + $0x1b0] ss:$8 sps:$4 sm:$0xff]  }
 0x1bc   : > { %v6493_v30 = vpop.eup %6492 }
 0x1bd   : > { %v7425_v44 = vpack.c.bf16 %v6493_v30, %v6493_v30  ;;  %v7432_v8 = vsel %vm2136_vm1, %v2116_v5, 0  ;;  %v6183_v5 = vld [vmem:[%s8355_s2 + $0x1a4] ss:$8 sps:$4 sm:$0xff]   ;;  %v6226_v30 = vld [vmem:[%s8355_s2 + $0xb0] ss:$8 sps:$4 sm:$0xff]  }
 0x1bf   : > { %5208 = vmatprep.subr.msk.bf16.mxu0 %vm2136_vm1, %v7425_v44  ;;  %5216 = vmatprep.subr.msk.bf16.mxu1 %vm2136_vm1, %v7425_v44 }
 0x1c0   : > { %2154 = vmatpush1.bf16.msra.mxu0 %v7432_v8  ;;  %2259 = vmatpush1.bf16.msra.mxu1 %v7432_v8 }
 0x1c1   : > { %2155 = vmatprep.subr.bf16.mxu0 %v7423_v4  ;;  %2260 = vmatprep.subr.bf16.mxu1 %v7423_v4 }
 0x1c4   : > { %2156 = vmatpush1.bf16.msra.mxu0 %v7421_v3  ;;  %2261 = vmatpush1.bf16.msra.mxu1 %v7421_v3 }
 0x1c5   : > { %2157 = vmatprep.subr.bf16.mxu0 %v7419_v0  ;;  %2262 = vmatprep.subr.bf16.mxu1 %v7419_v0 }
 0x1c8   : > { %2158 = vmatpush1.bf16.msra.mxu0 %v7417_v39  ;;  %2263 = vmatpush1.bf16.msra.mxu1 %v7417_v39 }
 0x1c9   : > { %2496 = vmatprep.subr.bf16.mxu0 %v6142_v2  ;;  %2707 = vmatprep.subr.bf16.mxu1 %v6192_v49  ;;  %v6231_v2 = vld [vmem:[%s8355_s2 + $0xa4] ss:$8 sps:$4 sm:$0xff]   ;;  %v6181_v49 = vld [vmem:[%s8355_s2 + $0x1a0] ss:$8 sps:$4 sm:$0xff]  }
 0x1cb   : > { %5209 = vmatmul.mubr.msk.bf16.vlgmr.msra.gmra.mxu0 %vm2129_vm2, %v6138_v58  ;;  %5217 = vmatmul.mubr.msk.bf16.vlgmr.msra.gmra.mxu1 %vm2129_vm2, %v6139_v11  ;;  %v6186_v58 = vld [vmem:[%s8355_s2 + $0x194] ss:$8 sps:$4 sm:$0xff]   ;;  %v6229_v11 = vld [vmem:[%s8355_s2 + $0xa0] ss:$8 sps:$4 sm:$0xff]  }
 0x1cc   : > { %2497 = vmatpush1.bf16.msra.mxu0 %v6140_v55  ;;  %2290 = vmatprep.mubr.bf16.mxu1 %v8373_v45  ;;  %v6184_v55 = vld [vmem:[%s8355_s2 + $0x190] ss:$8 sps:$4 sm:$0xff]  }
 0x1cd   : > { %2498 = vmatprep.subr.bf16.mxu0 %v6145_v1  ;;  %2185 = vmatprep.mubr.bf16.mxu0 %v8373_v45  ;;  %v6189_v1 = vld [vmem:[%s8355_s2 + $0x184] ss:$8 sps:$4 sm:$0xff]  }
 0x1ce   : > { %2708 = vmatpush1.bf16.msra.mxu1 %v6190_v42  ;;  %v6187_v42 = vld [vmem:[%s8355_s2 + $0x180] ss:$8 sps:$4 sm:$0xff]  }
 0x1cf   : > { %2709 = vmatprep.subr.bf16.mxu1 %v6195_v51  ;;  %v6234_v51 = vld [vmem:[%s8355_s2 + $0x94] ss:$8 sps:$4 sm:$0xff]  }
 0x1d0   : > { %2499 = vmatpush1.bf16.msra.mxu0 %v6143_v12  ;;  %v6232_v12 = vld [vmem:[%s8355_s2 + $0x90] ss:$8 sps:$4 sm:$0xff]  }
 0x1d1   : > { %2500 = vmatprep.subr.bf16.mxu0 %v6148_v46  ;;  %v6237_v46 = vld [vmem:[%s8355_s2 + $0x84] ss:$8 sps:$4 sm:$0xff]  }
 0x1d2   : > { %2710 = vmatpush1.bf16.msra.mxu1 %v6193_v6  ;;  %v6235_v6 = vld [vmem:[%s8355_s2 + $0x80] ss:$8 sps:$4 sm:$0xff]  }
 0x1d3   : > { %5218 = vmatmul.mubr.msk.bf16.gmra.mxu1 %vm2129_vm2, %v6149_v34  ;;  %5210 = vmatmul.mubr.msk.bf16.gmra.mxu0 %vm2129_vm2, %v6162_v27  ;;  %v6240_v34 = vld [vmem:[%s8355_s2 + $0x274] ss:$8 sps:$4 sm:$0xff]  }
 0x1d4   : > { %2501 = vmatpush1.bf16.msra.mxu0 %v6146_v26  ;;  %2711 = vmatprep.subr.bf16.mxu1 %v6198_v29 }
 0x1d5   : > { %2502 = vmatprep.subr.bf16.mxu0 %v6152_v15 }
 0x1d6   : > { %2712 = vmatpush1.bf16.msra.mxu1 %v6196_v16 }
 0x1d7   : > { %2713 = vmatprep.subr.bf16.mxu1 %v6201_v13 }
 0x1d8   : > { %2503 = vmatpush1.bf16.msra.mxu0 %v6150_v35 }
 0x1d9   : > { %2504 = vmatprep.subr.bf16.mxu0 %v6155_v48 }
 0x1da   : > { %2714 = vmatpush1.bf16.msra.mxu1 %v6199_v20 }
 0x1db   : > { %2715 = vmatprep.subr.bf16.mxu1 %v6204_v37 }
 0x1dc   : > { %2505 = vmatpush1.bf16.msra.mxu0 %v6153_v17 }
 0x1dd   : > { %2506 = vmatprep.subr.bf16.mxu0 %v6158_v40  ;;  %v6238_v40 = vld [vmem:[%s8355_s2 + $0x270] ss:$8 sps:$4 sm:$0xff]  }
 0x1de   : > { %2716 = vmatpush1.bf16.msra.mxu1 %v6202_v19 }
 0x1df   : > { %2717 = vmatprep.subr.bf16.mxu1 %v6207_v61 }
 0x1e0   : > { %2507 = vmatpush1.bf16.msra.mxu0 %v6156_v56  ;;  %v6243_v56 = vld [vmem:[%s8355_s2 + $0x264] ss:$8 sps:$4 sm:$0xff]  }
 0x1e1   : > { %2508 = vmatprep.subr.bf16.mxu0 %v6161_v38 }
 0x1e2   : > { %2718 = vmatpush1.bf16.msra.mxu1 %v6205_v14 }
 0x1e3   : > { %2719 = vmatprep.subr.bf16.mxu1 %v6210_v33 }
 0x1e4   : > { %2509 = vmatpush1.bf16.msra.mxu0 %v6159_v32  ;;  %v6241_v32 = vld [vmem:[%s8355_s2 + $0x260] ss:$8 sps:$4 sm:$0xff]  }
 0x1e5   : > { %2510 = vmatprep.subr.bf16.mxu0 %v6165_v59 }
 0x1e6   : > { %2720 = vmatpush1.bf16.msra.mxu1 %v6208_v60 }
 0x1e7   : > { %2721 = vmatprep.subr.bf16.mxu1 %v6213_v53  ;;  %v6246_v53 = vld [vmem:[%s8355_s2 + $0x254] ss:$8 sps:$4 sm:$0xff]  }
 0x1e8   : > { %2511 = vmatpush1.bf16.msra.mxu0 %v6163_v47 }
 0x1e9   : > { %2512 = vmatprep.subr.bf16.mxu0 %v6168_v23 }
 0x1ea   : > { %2722 = vmatpush1.bf16.msra.mxu1 %v6211_v21 }
 0x1eb   : > { %2723 = vmatprep.subr.bf16.mxu1 %v6216_v43 }
 0x1ec   : > { %2513 = vmatpush2.bf16.msra.mxu0 %v6166_v62 }
 0x1ed   : > { %2514 = vmatprep.subr.bf16.mxu0 %v6171_v36  ;;  %v6244_v36 = vld [vmem:[%s8355_s2 + $0x250] ss:$8 sps:$4 sm:$0xff]  }
 0x1ee   : > { %2724 = vmatpush2.bf16.msra.mxu1 %v6214_v41 }
 0x1ef   : > { %2725 = vmatprep.subr.bf16.mxu1 %v6219_v50  ;;  %v6249_v50 = vld [vmem:[%s8355_s2 + $0x244] ss:$8 sps:$4 sm:$0xff]  }
 0x1f0   : > { %2515 = vmatpush2.bf16.msra.mxu0 %v6169_v24  ;;  %v6247_v24 = vld [vmem:[%s8355_s2 + $0x240] ss:$8 sps:$4 sm:$0xff]  }
 0x1f1   : > { %2516 = vmatprep.subr.bf16.mxu0 %v6174_v25  ;;  %v6252_v25 = vld [vmem:[%s8355_s2 + $0x234] ss:$8 sps:$4 sm:$0xff]  }
 0x1f2   : > { %2726 = vmatpush2.bf16.msra.mxu1 %v6217_v7  ;;  %v6253_v7 = vld [vmem:[%s8356_s3 + $0x18] sm:$0xff]  }
 0x1f3   : > { %2727 = vmatprep.subr.bf16.mxu1 %v6222_v57  ;;  %v6250_v57 = vld [vmem:[%s8355_s2 + $0x230] ss:$8 sps:$4 sm:$0xff]  }
 0x1f4   : > { %2517 = vmatpush2.bf16.msra.mxu0 %v6172_v18  ;;  %v6256_v18 = vld [vmem:[%s8355_s2 + $0x224] ss:$8 sps:$4 sm:$0xff]  }
 0x1f5   : > { %2518 = vmatprep.subr.bf16.mxu0 %v6177_v9  ;;  %v6254_v9 = vld [vmem:[%s8355_s2 + $0x220] ss:$8 sps:$4 sm:$0xff]  }
 0x1f6   : > { %2728 = vmatpush2.bf16.msra.mxu1 %v6220_v10  ;;  %v6259_v10 = vld [vmem:[%s8355_s2 + $0x214] ss:$8 sps:$4 sm:$0xff]  }
 0x1f7   : > { %2729 = vmatprep.subr.bf16.mxu1 %v6225_v52  ;;  %v6260_v52 = vld [vmem:[%s8356_s3 + $0x20] ss:$0 sps:$4 sm:$0x11]  }
 0x1f8   : > { %2519 = vmatpush2.bf16.msra.mxu0 %v6175_v22  ;;  %v6257_v22 = vld [vmem:[%s8355_s2 + $0x210] ss:$8 sps:$4 sm:$0xff]  }
 0x1f9   : > { %2520 = vmatprep.subr.bf16.mxu0 %v6180_v63  ;;  %v6263_v63 = vld [vmem:[%s8355_s2 + $0x204] ss:$8 sps:$4 sm:$0xff]  }
 0x1fa   : > { %2730 = vmatpush2.bf16.msra.mxu1 %v6223_v28  ;;  %v6292_v28 = vld [vmem:[%s8355_s2 + $0x374] ss:$8 sps:$4 sm:$0xff]  }
 0x1fb   : > { %2731 = vmatprep.subr.bf16.mxu1 %v6228_v31  ;;  %v6261_v31 = vld [vmem:[%s8355_s2 + $0x200] ss:$8 sps:$4 sm:$0xff]  }
 0x1fc   : > { %2521 = vmatpush2.bf16.msra.mxu0 %v6178_v54  ;;  %v6266_v54 = vld [vmem:[%s8355_s2 + $0x2f4] ss:$8 sps:$4 sm:$0xff]  }
 0x1fd   : > { %2522 = vmatprep.subr.bf16.mxu0 %v6183_v5  ;;  %v6267_v5 = vld [vmem:[%s8356_s3 + $0x24] sm:$0xff]  }
 0x1fe   : > { %2732 = vmatpush2.bf16.msra.mxu1 %v6226_v30  ;;  %v6264_v30 = vld [vmem:[%s8355_s2 + $0x2f0] ss:$8 sps:$4 sm:$0xff]  }
 0x1ff   : > { %2733 = vmatprep.subr.bf16.mxu1 %v6231_v2  ;;  %v6270_v2 = vld [vmem:[%s8355_s2 + $0x2e4] ss:$8 sps:$4 sm:$0xff]  }
 0x200   : > { %2523 = vmatpush2.bf16.msra.mxu0 %v6181_v49  ;;  %v6290_v49 = vld [vmem:[%s8355_s2 + $0x370] ss:$8 sps:$4 sm:$0xff]  }
 0x201   : > { %2524 = vmatprep.subr.bf16.mxu0 %v6186_v58  ;;  %v6295_v58 = vld [vmem:[%s8355_s2 + $0x364] ss:$8 sps:$4 sm:$0xff]  }
 0x202   : > { %2734 = vmatpush2.bf16.msra.mxu1 %v6229_v11  ;;  %v6268_v11 = vld [vmem:[%s8355_s2 + $0x2e0] ss:$8 sps:$4 sm:$0xff]  }
 0x203   : > { %2735 = vmatprep.subr.bf16.mxu1 %v6234_v51  ;;  %v6277_v51 = vld [vmem:[%s8356_s3 + $0x2c] ss:$0 sps:$4 sm:$0x11]  }
 0x204   : > { %2525 = vmatpush2.bf16.msra.mxu0 %v6184_v55  ;;  %v6273_v55 = vld [vmem:[%s8355_s2 + $0x2d4] ss:$8 sps:$4 sm:$0xff]  }
 0x205   : > { %2526 = vmatprep.subr.bf16.mxu0 %v6189_v1  ;;  %v6293_v1 = vld [vmem:[%s8355_s2 + $0x360] ss:$8 sps:$4 sm:$0xff]  }
 0x206   : > { %2736 = vmatpush2.bf16.msra.mxu1 %v6232_v12  ;;  %v6271_v12 = vld [vmem:[%s8355_s2 + $0x2d0] ss:$8 sps:$4 sm:$0xff]  }
 0x207   : > { %2737 = vmatprep.subr.bf16.mxu1 %v6237_v46  ;;  %v6276_v46 = vld [vmem:[%s8355_s2 + $0x2c4] ss:$8 sps:$4 sm:$0xff]  }
 0x208   : > { %2527 = vmatpush2.bf16.msra.mxu0 %v6187_v42  ;;  %v6298_v42 = vld [vmem:[%s8355_s2 + $0x354] ss:$8 sps:$4 sm:$0xff]  }
 0x209   : > { %5320 = vmatprep.subr.msk.bf16.mxu0 %vm2136_vm1, %v7425_v44 }
 0x20a   : > { %2738 = vmatpush2.bf16.msra.mxu1 %v6235_v6  ;;  %v6296_v6 = vld [vmem:[%s8355_s2 + $0x350] ss:$8 sps:$4 sm:$0xff]  }
 0x20b   : > { %3024 = vmatprep.subr.bf16.mxu1 %v6240_v34  ;;  %v6301_v34 = vld [vmem:[%s8355_s2 + $0x344] ss:$8 sps:$4 sm:$0xff]  }
 0x28b   : > { %v2177_v27 = vpop.f32.mrf.mxu0  ;;  %v2282_v26 = vpop.f32.mrf.mxu1 }
 0x28d   : > { %v2179_v29 = vpop.f32.mrf.mxu0  ;;  %v2284_v15 = vpop.f32.mrf.mxu1 }
 0x28f   : > { %v2181_v16 = vpop.f32.mrf.mxu0  ;;  %v2286_v13 = vpop.f32.mrf.mxu1 }
 0x290   : > { %v2194_v35 = vpack.c.bf16 %v2181_v16, %v2177_v27  ;;  %v2299_v19 = vpack.c.bf16 %v2286_v13, %v2282_v26  ;;  %v6274_v27 = vld [vmem:[%s8355_s2 + $0x2c0] ss:$8 sps:$4 sm:$0xff]   ;;  %v6280_v26 = vld [vmem:[%s8355_s2 + $0x2b4] ss:$8 sps:$4 sm:$0xff]   ;;  %v6278_v16 = vld [vmem:[%s8355_s2 + $0x2b0] ss:$8 sps:$4 sm:$0xff]  }
 0x291   : > { %v2183_v48 = vpop.f32.mrf.mxu0  ;;  %v2288_v20 = vpop.f32.mrf.mxu1  ;;  %v6283_v13 = vld [vmem:[%s8355_s2 + $0x2a4] ss:$8 sps:$4 sm:$0xff]  }
 0x292   : > { %v2195_v37 = vpack.c.bf16 %v2183_v48, %v2179_v29  ;;  %v2300_v17 = vpack.c.bf16 %v2288_v20, %v2284_v15  ;;  %v6299_v29 = vld [vmem:[%s8355_s2 + $0x340] ss:$8 sps:$4 sm:$0xff]   ;;  %v6304_v15 = vld [vmem:[%s8355_s2 + $0x334] ss:$8 sps:$4 sm:$0xff]   ;;  %v6307_v48 = vld [vmem:[%s8355_s2 + $0x324] ss:$8 sps:$4 sm:$0xff]  }
 0x293   : > { %v2292_v61 = vpop.f32.mrf.mxu1  ;;  %v2187_v38 = vpop.f32.mrf.mxu0  ;;  %v6281_v20 = vld [vmem:[%s8355_s2 + $0x2a0] ss:$8 sps:$4 sm:$0xff]  }
 0x294   : > { %2528 = vmatprep.mubr.bf16.mxu0 %v2300_v17  ;;  %2739 = vmatprep.mubr.bf16.mxu1 %v2195_v37  ;;  %v2196_v21 = vpack.c.bf16 %v2187_v38, %v2187_v38  ;;  %v2301_v41 = vpack.c.bf16 %v2292_v61, %v2292_v61  ;;  %v6286_v37 = vld [vmem:[%s8355_s2 + $0x294] ss:$8 sps:$4 sm:$0xff]   ;;  %v6305_v17 = vld [vmem:[%s8355_s2 + $0x320] ss:$8 sps:$4 sm:$0xff]   ;;  %v6308_v38 = vld [vmem:[%s8355_s2 + $0x310] ss:$8 sps:$4 sm:$0xff]  }
 0x295   : > { %2529 = vmatmul.mubr.bf16.vlgmr.msra.gmra.mxu0 %v2299_v19  ;;  %2740 = vmatmul.mubr.bf16.vlgmr.msra.gmra.mxu1 %v2194_v35  ;;  %v2294_v14 = vpop.f32.mrf.mxu1  ;;  %v2189_v33 = vpop.f32.mrf.mxu0  ;;  %v6302_v35 = vld [vmem:[%s8355_s2 + $0x330] ss:$8 sps:$4 sm:$0xff]   ;;  %v6289_v19 = vld [vmem:[%s8355_s2 + $0x284] ss:$8 sps:$4 sm:$0xff]   ;;  %v6287_v61 = vld [vmem:[%s8355_s2 + $0x280] ss:$8 sps:$4 sm:$0xff]  }
 0x296   : > { %2787 = vmatpush1.bf16.msra.mxu0 %v7432_v8  ;;  %3025 = vmatpush1.bf16.msra.mxu1 %v6238_v40  ;;  %v2302_v59 = vpack.c.bf16 %v2294_v14, %v2294_v14  ;;  %v2197_v60 = vpack.c.bf16 %v2189_v33, %v2189_v33  ;;  %v6284_v40 = vld [vmem:[%s8355_s2 + $0x290] ss:$8 sps:$4 sm:$0xff]   ;;  %v6313_v14 = vld [vmem:[%s8355_s2 + $0x304] ss:$8 sps:$4 sm:$0xff]   ;;  %v6311_v33 = vld [vmem:[%s8355_s2 + $0x300] ss:$8 sps:$4 sm:$0xff]  }
 0x297   : > { %2788 = vmatprep.subr.bf16.mxu0 %v7423_v4  ;;  %3026 = vmatprep.subr.bf16.mxu1 %v6243_v56  ;;  %v2296_v47 = vpop.f32.mrf.mxu1  ;;  %v2191_v23 = vpop.f32.mrf.mxu0  ;;  %v6310_v56 = vld [vmem:[%s8355_s2 + $0x314] ss:$8 sps:$4 sm:$0xff]  }
 0x298   : > { %2538 = vmatprep.mubr.bf16.mxu0 %v2302_v59  ;;  %2749 = vmatprep.mubr.bf16.mxu1 %v2197_v60  ;;  %v6319_v59 = vld [vmem:[%s8355_s2 + $0x3e4] ss:$8 sps:$4 sm:$0xff]   ;;  %v6317_v60 = vld [vmem:[%s8355_s2 + $0x3e0] ss:$8 sps:$4 sm:$0xff]   ;;  %v6320_v47 = vld [vmem:[%s8355_s2 + $0x3d0] ss:$8 sps:$4 sm:$0xff]  }
 0x299   : > { %v2297_v43 = vpop.f32.mrf.mxu1  ;;  %v2192_v62 = vpop.f32.mrf.mxu0  ;;  %v6325_v23 = vld [vmem:[%s8355_s2 + $0x3c4] ss:$8 sps:$4 sm:$0xff]  }
 0x29a   : > { %2789 = vmatpush1.bf16.msra.mxu0 %v7421_v3  ;;  %3027 = vmatpush1.bf16.msra.mxu1 %v6241_v32  ;;  %v6314_v32 = vld [vmem:[%s8355_s2 + $0x3f0] ss:$8 sps:$4 sm:$0xff]   ;;  %v6328_v43 = vld [vmem:[%s8355_s2 + $0x3b4] ss:$8 sps:$4 sm:$0xff]  }
 0x29b   : > { %2790 = vmatprep.subr.bf16.mxu0 %v7419_v0  ;;  %3028 = vmatprep.subr.bf16.mxu1 %v6246_v53  ;;  %v6322_v53 = vld [vmem:[%s8355_s2 + $0x3d4] ss:$8 sps:$4 sm:$0xff]   ;;  %v6326_v62 = vld [vmem:[%s8355_s2 + $0x3b0] ss:$8 sps:$4 sm:$0xff]  }
 0x29d   : > { %2539 = vmatmul.mubr.bf16.gmra.mxu0 %v2301_v41  ;;  %2750 = vmatmul.mubr.bf16.gmra.mxu1 %v2196_v21  ;;  %v6323_v21 = vld [vmem:[%s8355_s2 + $0x3c0] ss:$8 sps:$4 sm:$0xff]  }
 0x29e   : > { %2791 = vmatpush1.bf16.msra.mxu0 %v7417_v39  ;;  %3029 = vmatpush1.bf16.msra.mxu1 %v6244_v36  ;;  %v6331_v36 = vld [vmem:[%s8355_s2 + $0x3a4] ss:$8 sps:$4 sm:$0xff]   ;;  %v6329_v41 = vld [vmem:[%s8355_s2 + $0x3a0] ss:$8 sps:$4 sm:$0xff]  }
 0x29f   : > { %5392 = vmatprep.subr.msk.bf16.mxu0 %vm2136_vm1, %v7425_v44  ;;  %3030 = vmatprep.subr.bf16.mxu1 %v6249_v50  ;;  %v6334_v50 = vld [vmem:[%s8355_s2 + $0x394] ss:$8 sps:$4 sm:$0xff]  }
 0x2a0   : > { %2808 = vmatprep.mubr.bf16.mxu0 %v8373_v45 }
 0x2a2   : > { %3031 = vmatpush1.bf16.msra.mxu1 %v6247_v24  ;;  %v6332_v24 = vld [vmem:[%s8355_s2 + $0x390] ss:$8 sps:$4 sm:$0xff]  }
 0x2a3   : > { %3032 = vmatprep.subr.bf16.mxu1 %v6252_v25  ;;  %v6337_v25 = vld [vmem:[%s8355_s2 + $0x384] ss:$8 sps:$4 sm:$0xff]  }
 0x2a5   : > { %5321 = vmatmul.mubr.msk.bf16.vlgmr.msra.gmra.mxu0 %vm2129_vm2, %v6253_v7  ;;  %v6335_v7 = vld [vmem:[%s8355_s2 + $0x380] ss:$8 sps:$4 sm:$0xff]  }
 0x2a6   : > { %3033 = vmatpush1.bf16.msra.mxu1 %v6250_v57  ;;  %3110 = vmatpush1.bf16.msra.mxu0 %v7432_v8 }
 0x2a7   : > { %3111 = vmatprep.subr.bf16.mxu0 %v7423_v4  ;;  %3034 = vmatprep.subr.bf16.mxu1 %v6256_v18 }
 0x2a8   : > { %2818 = vmatprep.mubr.bf16.mxu0 %v8373_v45 }
 0x2aa   : > { %3035 = vmatpush1.bf16.msra.mxu1 %v6254_v9  ;;  %3112 = vmatpush1.bf16.msra.mxu0 %v7421_v3 }
 0x2ab   : > { %3113 = vmatprep.subr.bf16.mxu0 %v7419_v0  ;;  %3036 = vmatprep.subr.bf16.mxu1 %v6259_v10 }
 0x2ad   : > { %5322 = vmatmul.mubr.msk.bf16.gmra.mxu0 %vm2129_vm2, %v6260_v52 }
 0x2ae   : > { %3037 = vmatpush1.bf16.msra.mxu1 %v6257_v22  ;;  %3114 = vmatpush1.bf16.msra.mxu0 %v7417_v39 }
 0x2af   : > { %3038 = vmatprep.subr.bf16.mxu1 %v6263_v63  ;;  %3131 = vmatprep.mubr.bf16.mxu0 %v8373_v45 }
 0x2b0   : > { %3347 = vmatprep.subr.bf16.mxu0 %v6292_v28 }
 0x2b2   : > { %3039 = vmatpush1.bf16.msra.mxu1 %v6261_v31 }
 0x2b3   : > { %3040 = vmatprep.subr.bf16.mxu1 %v6266_v54 }
 0x2b5   : > { %5393 = vmatmul.mubr.msk.bf16.vlgmr.msra.gmra.mxu0 %vm2129_vm2, %v6267_v5 }
 0x2b6   : > { %3041 = vmatpush2.bf16.msra.mxu1 %v6264_v30  ;;  %3141 = vmatprep.mubr.bf16.mxu0 %v8373_v45 }
 0x2b7   : > { %3042 = vmatprep.subr.bf16.mxu1 %v6270_v2  ;;  %3348 = vmatpush1.bf16.msra.mxu0 %v6290_v49 }
 0x2b8   : > { %3349 = vmatprep.subr.bf16.mxu0 %v6295_v58 }
 0x2ba   : > { %3043 = vmatpush2.bf16.msra.mxu1 %v6268_v11 }
 0x2bb   : > { %3044 = vmatprep.subr.bf16.mxu1 %v6273_v55  ;;  %3350 = vmatpush1.bf16.msra.mxu0 %v6293_v1 }
 0x2bc   : > { %3351 = vmatprep.subr.bf16.mxu0 %v6298_v42 }
 0x2bd   : > { %5394 = vmatmul.mubr.msk.bf16.gmra.mxu0 %vm2129_vm2, %v6277_v51 }
 0x2be   : > { %3045 = vmatpush2.bf16.msra.mxu1 %v6271_v12 }
 0x2bf   : > { %3046 = vmatprep.subr.bf16.mxu1 %v6276_v46  ;;  %3352 = vmatpush1.bf16.msra.mxu0 %v6296_v6 }
 0x2c0   : > { %3353 = vmatprep.subr.bf16.mxu0 %v6301_v34 }
 0x2c2   : > { %3047 = vmatpush2.bf16.msra.mxu1 %v6274_v27 }
 0x2c3   : > { %3048 = vmatprep.subr.bf16.mxu1 %v6280_v26  ;;  %3354 = vmatpush1.bf16.msra.mxu0 %v6299_v29 }
 0x2c4   : > { %3355 = vmatprep.subr.bf16.mxu0 %v6304_v15 }
 0x2c6   : > { %3049 = vmatpush2.bf16.msra.mxu1 %v6278_v16 }
 0x2c7   : > { %3050 = vmatprep.subr.bf16.mxu1 %v6283_v13  ;;  %3356 = vmatpush1.bf16.msra.mxu0 %v6302_v35 }
 0x2c8   : > { %3357 = vmatprep.subr.bf16.mxu0 %v6307_v48 }
 0x2ca   : > { %3051 = vmatpush2.bf16.msra.mxu1 %v6281_v20 }
 0x2cb   : > { %3052 = vmatprep.subr.bf16.mxu1 %v6286_v37  ;;  %3358 = vmatpush1.bf16.msra.mxu0 %v6305_v17 }
 0x2cc   : > { %3359 = vmatprep.subr.bf16.mxu0 %v6310_v56  ;;  %v6340_v56 = vld [vmem:[%s8355_s2 + $0x470] ss:$8 sps:$4 sm:$0xff]  }
 0x2ce   : > { %3053 = vmatpush2.bf16.msra.mxu1 %v6284_v40  ;;  %v6342_v40 = vld [vmem:[%s8355_s2 + $0x474] ss:$8 sps:$4 sm:$0xff]  }
 0x2cf   : > { %3054 = vmatprep.subr.bf16.mxu1 %v6289_v19  ;;  %3360 = vmatpush1.bf16.msra.mxu0 %v6308_v38 }
 0x2d0   : > { %3361 = vmatprep.subr.bf16.mxu0 %v6313_v14 }
 0x2d2   : > { %3055 = vmatpush2.bf16.msra.mxu1 %v6287_v61 }
 0x2d3   : > { %5464 = vmatprep.subr.msk.bf16.mxu1 %vm2136_vm1, %v7425_v44  ;;  %3362 = vmatpush1.bf16.msra.mxu0 %v6311_v33  ;;  %v6316_v44 = vld [vmem:[%s8355_s2 + $0x3f4] ss:$8 sps:$4 sm:$0xff]  }
 0x2d4   : > { %3363 = vmatprep.subr.bf16.mxu0 %v6316_v44  ;;  %v6343_v44 = vld [vmem:[%s8355_s2 + $0x460] ss:$8 sps:$4 sm:$0xff]  }
 0x2d7   : > { %3364 = vmatpush2.bf16.msra.mxu0 %v6314_v32  ;;  %v6348_v32 = vld [vmem:[%s8355_s2 + $0x454] ss:$8 sps:$4 sm:$0xff]  }
 0x2d8   : > { %3365 = vmatprep.subr.bf16.mxu0 %v6319_v59 }
 0x2db   : > { %3366 = vmatpush2.bf16.msra.mxu0 %v6317_v60 }
 0x2dc   : > { %3367 = vmatprep.subr.bf16.mxu0 %v6322_v53  ;;  %v6339_v53 = vld [vmem:[%s8356_s3 + $0x38] ss:$0 sps:$4 sm:$0x11]  }
 0x2df   : > { %3368 = vmatpush2.bf16.msra.mxu0 %v6320_v47 }
 0x2e0   : > { %3369 = vmatprep.subr.bf16.mxu0 %v6325_v23  ;;  %v6351_v23 = vld [vmem:[%s8355_s2 + $0x444] ss:$8 sps:$4 sm:$0xff]  }
 0x2e3   : > { %3370 = vmatpush2.bf16.msra.mxu0 %v6323_v21  ;;  %v6349_v21 = vld [vmem:[%s8355_s2 + $0x440] ss:$8 sps:$4 sm:$0xff]  }
 0x2e4   : > { %3371 = vmatprep.subr.bf16.mxu0 %v6328_v43  ;;  %v6354_v43 = vld [vmem:[%s8355_s2 + $0x434] ss:$8 sps:$4 sm:$0xff]  }
 0x2e7   : > { %3372 = vmatpush2.bf16.msra.mxu0 %v6326_v62  ;;  %v6352_v62 = vld [vmem:[%s8355_s2 + $0x430] ss:$8 sps:$4 sm:$0xff]  }
 0x2e8   : > { %3373 = vmatprep.subr.bf16.mxu0 %v6331_v36  ;;  %v6357_v36 = vld [vmem:[%s8355_s2 + $0x424] ss:$8 sps:$4 sm:$0xff]  }
 0x2eb   : > { %3374 = vmatpush2.bf16.msra.mxu0 %v6329_v41  ;;  %v6355_v41 = vld [vmem:[%s8355_s2 + $0x420] ss:$8 sps:$4 sm:$0xff]  }
 0x2ec   : > { %3375 = vmatprep.subr.bf16.mxu0 %v6334_v50  ;;  %v6360_v50 = vld [vmem:[%s8355_s2 + $0x414] ss:$8 sps:$4 sm:$0xff]  }
 0x2ef   : > { %3376 = vmatpush2.bf16.msra.mxu0 %v6332_v24  ;;  %v6358_v24 = vld [vmem:[%s8355_s2 + $0x410] ss:$8 sps:$4 sm:$0xff]  }
 0x2f0   : > { %3377 = vmatprep.subr.bf16.mxu0 %v6337_v25  ;;  %v6363_v25 = vld [vmem:[%s8355_s2 + $0x404] ss:$8 sps:$4 sm:$0xff]  }
 0x2f3   : > { %3378 = vmatpush2.bf16.msra.mxu0 %v6335_v7  ;;  %v6361_v7 = vld [vmem:[%s8355_s2 + $0x400] ss:$8 sps:$4 sm:$0xff]  }
 0x355   : > { %v2530_v57 = vpop.f32.mrf.mxu0  ;;  %v2741_v18 = vpop.f32.mrf.mxu1 }
 0x356   : > { %v7882_v9 = vadd.f32 %v2741_v18, %v2530_v57  ;;  %v6366_v57 = vld [vmem:[%s8355_s2 + $0x4f4] ss:$8 sps:$4 sm:$0xff]   ;;  %v6364_v18 = vld [vmem:[%s8355_s2 + $0x4f0] ss:$8 sps:$4 sm:$0xff]  }
 0x357   : > { %v2532_v10 = vpop.f32.mrf.mxu0  ;;  %v2743_v52 = vpop.f32.mrf.mxu1 }
 0x358   : > { %v7884_v22 = vadd.f32 %v2743_v52, %v2532_v10  ;;  %v6369_v10 = vld [vmem:[%s8355_s2 + $0x4e4] ss:$8 sps:$4 sm:$0xff]   ;;  %v6367_v52 = vld [vmem:[%s8355_s2 + $0x4e0] ss:$8 sps:$4 sm:$0xff]  }
 0x359   : > { %v2534_v63 = vpop.f32.mrf.mxu0  ;;  %v2745_v28 = vpop.f32.mrf.mxu1 }
 0x35a   : > { %v7886_v31 = vadd.f32 %v2745_v28, %v2534_v63  ;;  %v6372_v63 = vld [vmem:[%s8355_s2 + $0x4d4] ss:$8 sps:$4 sm:$0xff]   ;;  %v6370_v28 = vld [vmem:[%s8355_s2 + $0x4d0] ss:$8 sps:$4 sm:$0xff]  }
 0x35b   : > { %v2536_v54 = vpop.f32.mrf.mxu0  ;;  %v2747_v5 = vpop.f32.mrf.mxu1 }
 0x35c   : > { %v7888_v30 = vadd.f32 %v2747_v5, %v2536_v54  ;;  %v6375_v54 = vld [vmem:[%s8355_s2 + $0x4c4] ss:$8 sps:$4 sm:$0xff]   ;;  %v6373_v5 = vld [vmem:[%s8355_s2 + $0x4c0] ss:$8 sps:$4 sm:$0xff]  }
 0x35d   : > { %v2540_v2 = vpop.f32.mrf.mxu0  ;;  %v2751_v49 = vpop.f32.mrf.mxu1 }
 0x35e   : > { %v7890_v58 = vadd.f32 %v2751_v49, %v2540_v2  ;;  %v6378_v2 = vld [vmem:[%s8355_s2 + $0x4b4] ss:$8 sps:$4 sm:$0xff]   ;;  %v6376_v49 = vld [vmem:[%s8355_s2 + $0x4b0] ss:$8 sps:$4 sm:$0xff]  }
 0x35f   : > { %v2542_v11 = vpop.f32.mrf.mxu0  ;;  %v2753_v55 = vpop.f32.mrf.mxu1 }
 0x360   : > { %v7892_v1 = vadd.f32 %v2753_v55, %v2542_v11  ;;  %v6381_v11 = vld [vmem:[%s8355_s2 + $0x4a4] ss:$8 sps:$4 sm:$0xff]   ;;  %v6379_v55 = vld [vmem:[%s8355_s2 + $0x4a0] ss:$8 sps:$4 sm:$0xff]  }
 0x361   : > { %v2544_v42 = vpop.f32.mrf.mxu0  ;;  %v2755_v51 = vpop.f32.mrf.mxu1 }
 0x362   : > { %v6384_v42 = vld [vmem:[%s8355_s2 + $0x494] ss:$8 sps:$4 sm:$0xff]   ;;  %v6382_v51 = vld [vmem:[%s8355_s2 + $0x490] ss:$8 sps:$4 sm:$0xff]  }
 0x363   : > { %v2545_v12 = vpop.f32.mrf.mxu0  ;;  %v2756_v46 = vpop.f32.mrf.mxu1 }
 0x364   : > { %v6387_v12 = vld [vmem:[%s8355_s2 + $0x484] ss:$8 sps:$4 sm:$0xff]   ;;  %v6385_v46 = vld [vmem:[%s8355_s2 + $0x480] ss:$8 sps:$4 sm:$0xff]  }
 0x365   : > { %v2810_v6 = vpop.f32.mrf.mxu0 }
 0x367   : > { %v2812_v34 = vpop.f32.mrf.mxu0 }
 0x369   : > { %v2814_v27 = vpop.f32.mrf.mxu0 }
 0x36a   : > { %v2827_v15 = vpack.c.bf16 %v2814_v27, %v2810_v6 }
 0x36b   : > { %v2816_v26 = vpop.f32.mrf.mxu0 }
 0x36c   : > { %v2828_v29 = vpack.c.bf16 %v2816_v26, %v2812_v34 }
 0x36d   : > { %v2820_v16 = vpop.f32.mrf.mxu0 }
 0x36e   : > { %3056 = vmatprep.mubr.bf16.mxu1 %v2828_v29  ;;  %v2829_v37 = vpack.c.bf16 %v2820_v16, %v2820_v16 }
 0x36f   : > { %v2822_v13 = vpop.f32.mrf.mxu0  ;;  %3057 = vmatmul.mubr.bf16.vlgmr.msra.gmra.mxu1 %v2827_v15 }
 0x370   : > { %v2830_v35 = vpack.c.bf16 %v2822_v13, %v2822_v13  ;;  %3433 = vmatpush1.bf16.msra.mxu1 %v7432_v8 }
 0x371   : > { %3434 = vmatprep.subr.bf16.mxu1 %v7423_v4  ;;  %v2824_v48 = vpop.f32.mrf.mxu0 }
 0x372   : > { %3066 = vmatprep.mubr.bf16.mxu1 %v2830_v35 }
 0x373   : > { %v2825_v20 = vpop.f32.mrf.mxu0 }
 0x374   : > { %3435 = vmatpush1.bf16.msra.mxu1 %v7421_v3  ;;  %v6338_v3 = vld [vmem:[%s8356_s3 + $0x30] sm:$0xff]  }
 0x375   : > { %3436 = vmatprep.subr.bf16.mxu1 %v7419_v0  ;;  %v3133_v17 = vpop.f32.mrf.mxu0 }
 0x377   : > { %3067 = vmatmul.mubr.bf16.gmra.mxu1 %v2829_v37  ;;  %v3135_v19 = vpop.f32.mrf.mxu0 }
 0x378   : > { %3437 = vmatpush1.bf16.msra.mxu1 %v7417_v39  ;;  %3454 = vmatprep.mubr.bf16.mxu1 %v8373_v45  ;;  %v6345_v39 = vld [vmem:[%s8355_s2 + $0x464] ss:$8 sps:$4 sm:$0xff]  }
 0x379   : > { %v3137_v4 = vpop.f32.mrf.mxu0  ;;  %3670 = vmatprep.subr.bf16.mxu1 %v6342_v40 }
 0x37a   : > { %v3150_v8 = vpack.c.bf16 %v3137_v4, %v3133_v17 }
 0x37b   : > { %v3139_v61 = vpop.f32.mrf.mxu0 }
 0x37c   : > { %v3151_v0 = vpack.c.bf16 %v3139_v61, %v3135_v19 }
 0x37d   : > { %v3143_v38 = vpop.f32.mrf.mxu0 }
 0x37e   : > { %3379 = vmatprep.mubr.bf16.mxu0 %v3151_v0  ;;  %v3152_v60 = vpack.c.bf16 %v3143_v38, %v3143_v38 }
 0x37f   : > { %3380 = vmatmul.mubr.bf16.vlgmr.msra.gmra.mxu0 %v3150_v8  ;;  %5465 = vmatmul.mubr.msk.bf16.vlgmr.msra.gmra.mxu1 %vm2129_vm2, %v6338_v3  ;;  %v3145_v14 = vpop.f32.mrf.mxu0 }
 0x380   : > { %v3153_v33 = vpack.c.bf16 %v3145_v14, %v3145_v14  ;;  %3464 = vmatprep.mubr.bf16.mxu1 %v8373_v45  ;;  %3671 = vmatpush1.bf16.msra.mxu1 %v6340_v56  ;;  %v6346_v45 = vld [vmem:[%s8355_s2 + $0x450] ss:$8 sps:$4 sm:$0xff]  }
 0x381   : > { %3672 = vmatprep.subr.bf16.mxu1 %v6345_v39  ;;  %v3147_v59 = vpop.f32.mrf.mxu0 }
 0x382   : > { %3389 = vmatprep.mubr.bf16.mxu0 %v3153_v33 }
 0x383   : > { %v3148_v47 = vpop.f32.mrf.mxu0 }
 0x384   : > { %3673 = vmatpush1.bf16.msra.mxu1 %v6343_v44 }
 0x385   : > { %3674 = vmatprep.subr.bf16.mxu1 %v6348_v32 }
 0x387   : > { %3390 = vmatmul.mubr.bf16.gmra.mxu0 %v3152_v60  ;;  %5466 = vmatmul.mubr.msk.bf16.gmra.mxu1 %vm2129_vm2, %v6339_v53 }
 0x388   : > { %3675 = vmatpush1.bf16.msra.mxu1 %v6346_v45 }
 0x389   : > { %3676 = vmatprep.subr.bf16.mxu1 %v6351_v23 }
 0x38c   : > { %3677 = vmatpush1.bf16.msra.mxu1 %v6349_v21 }
 0x38d   : > { %3678 = vmatprep.subr.bf16.mxu1 %v6354_v43  ;;  %v6518_v43 = vmov 0.0  }
 0x38e   : > { %5742 = vmatprep.subr.bf16.mxu0 %v6518_v43  ;;  %5746 = vmatprep.mubr.msk.bf16.mxu0 %vm6519_vm3, %v6518_v43 }
 0x390   : > { %3679 = vmatpush1.bf16.msra.mxu1 %v6352_v62 }
 0x391   : > { %3680 = vmatprep.subr.bf16.mxu1 %v6357_v36 }
 0x394   : > { %3681 = vmatpush1.bf16.msra.mxu1 %v6355_v41 }
 0x395   : > { %3682 = vmatprep.subr.bf16.mxu1 %v6360_v50 }
 0x398   : > { %3683 = vmatpush1.bf16.msra.mxu1 %v6358_v24 }
 0x399   : > { %3684 = vmatprep.subr.bf16.mxu1 %v6363_v25 }
 0x39c   : > { %3685 = vmatpush1.bf16.msra.mxu1 %v6361_v7 }
 0x39d   : > { %3686 = vmatprep.subr.bf16.mxu1 %v6366_v57 }
 0x3a0   : > { %3687 = vmatpush2.bf16.msra.mxu1 %v6364_v18 }
 0x3a1   : > { %3688 = vmatprep.subr.bf16.mxu1 %v6369_v10 }
 0x3a4   : > { %3689 = vmatpush2.bf16.msra.mxu1 %v6367_v52 }
 0x3a5   : > { %3690 = vmatprep.subr.bf16.mxu1 %v6372_v63 }
 0x3a8   : > { %3691 = vmatpush2.bf16.msra.mxu1 %v6370_v28 }
 0x3a9   : > { %3692 = vmatprep.subr.bf16.mxu1 %v6375_v54 }
 0x3ac   : > { %3693 = vmatpush2.bf16.msra.mxu1 %v6373_v5 }
 0x3ad   : > { %3694 = vmatprep.subr.bf16.mxu1 %v6378_v2 }
 0x3b0   : > { %3695 = vmatpush2.bf16.msra.mxu1 %v6376_v49 }
 0x3b1   : > { %3696 = vmatprep.subr.bf16.mxu1 %v6381_v11 }
 0x3b4   : > { %3697 = vmatpush2.bf16.msra.mxu1 %v6379_v55 }
 0x3b5   : > { %3698 = vmatprep.subr.bf16.mxu1 %v6384_v42 }
 0x3b8   : > { %3699 = vmatpush2.bf16.msra.mxu1 %v6382_v51  ;;  %v6388_v51 = vld [vmem:[%s8357_s4] sm:$0x1f]  }
 0x3b9   : > { %3700 = vmatprep.subr.bf16.mxu1 %v6387_v12  ;;  %v6389_v12 = vld [vmem:[%s8357_s4 + $0x8] sm:$0x1f]  }
 0x3bc   : > { %3701 = vmatpush2.bf16.msra.mxu1 %v6385_v46  ;;  %v6390_v46 = vld [vmem:[%s8358_s5 + $0x78] sm:$0xff]  }
 0x42f   : > { %v3058_v6 = vpop.f32.mrf.mxu1 }
 0x430   : > { %v3075_v34 = vadd.f32 %v3058_v6, %v7882_v9  ;;  %v6391_v6 = vld [vmem:[%s8358_s5 + $0xf8] sm:$0xff]  }
 0x431   : > { %v3060_v27 = vpop.f32.mrf.mxu1  ;;  %5653 = vmatprep.subr.bf16.mxu1 %v6391_v6 }
 0x432   : > { %v3076_v26 = vadd.f32 %v3060_v27, %v7884_v22  ;;  %v6393_v27 = vld [vmem:[%s8358_s5 + $0xb8] sm:$0xff]  }
 0x433   : > { %v3062_v29 = vpop.f32.mrf.mxu1 }
 0x434   : > { %v3077_v15 = vadd.f32 %v3062_v29, %v7886_v31  ;;  %v6395_v29 = vld [vmem:[%s8358_s5 + $0xf0] sm:$0xff]  }
 0x435   : > { %v3064_v16 = vpop.f32.mrf.mxu1 }
 0x436   : > { %v3078_v13 = vadd.f32 %v3064_v16, %v7888_v30  ;;  %v6397_v16 = vld [vmem:[%s8358_s5 + $0xb0] sm:$0xff]  }
 0x437   : > { %v3068_v35 = vpop.f32.mrf.mxu1 }
 0x438   : > { %v3079_v48 = vadd.f32 %v3068_v35, %v7890_v58  ;;  %v6399_v35 = vld [vmem:[%s8358_s5 + $0xe8] sm:$0xff]  }
 0x439   : > { %v3070_v20 = vpop.f32.mrf.mxu1 }
 0x43a   : > { %v3080_v37 = vadd.f32 %v3070_v20, %v7892_v1  ;;  %v6401_v20 = vld [vmem:[%s8358_s5 + $0xa8] sm:$0xff]  }
 0x43b   : > { %v3072_v17 = vpop.f32.mrf.mxu1 }
 0x43c   : > { %v6403_v17 = vld [vmem:[%s8358_s5 + $0xe0] sm:$0xff]  }
 0x43d   : > { %v3073_v40 = vpop.f32.mrf.mxu1 }
 0x43e   : > { %v6404_v40 = vld [vmem:[%s8358_s5 + $0x20] sm:$0xff]  }
 0x43f   : > { %v3381_v19 = vpop.f32.mrf.mxu0  ;;  %v3456_v4 = vpop.f32.mrf.mxu1 }
 0x440   : > { %v3398_v9 = vadd.f32 %v3381_v19, %v3075_v34  ;;  %v6392_v34 = vld [vmem:[%s8358_s5 + $0x38] sm:$0xff]   ;;  %v6405_v19 = vld [vmem:[%s8358_s5 + $0xa0] sm:$0xff]  }
 0x441   : > { %v3383_v8 = vpop.f32.mrf.mxu0  ;;  %v3458_v61 = vpop.f32.mrf.mxu1 }
 0x442   : > { %v3399_v22 = vadd.f32 %v3383_v8, %v3076_v26  ;;  %v6394_v26 = vld [vmem:[%s8358_s5 + $0x70] sm:$0xff]   ;;  %v6408_v8 = vld [vmem:[%s8358_s5 + $0x18] sm:$0xff]  }
 0x443   : > { %v3385_v3 = vpop.f32.mrf.mxu0  ;;  %v3460_v0 = vpop.f32.mrf.mxu1 }
 0x444   : > { %v3400_v31 = vadd.f32 %v3385_v3, %v3077_v15  ;;  %v3473_v14 = vpack.c.bf16 %v3460_v0, %v3456_v4  ;;  %v6396_v15 = vld [vmem:[%s8358_s5 + $0x30] sm:$0xff]   ;;  %v6406_v4 = vld [vmem:[%s8358_s5 + $0x58] sm:$0xff]  }
 0x445   : > { %v3387_v56 = vpop.f32.mrf.mxu0  ;;  %v3462_v38 = vpop.f32.mrf.mxu1  ;;  %v6411_v3 = vld [vmem:[%s8358_s5 + $0xd0] sm:$0xff]  }
 0x446   : > { %v3401_v30 = vadd.f32 %v3387_v56, %v3078_v13  ;;  %v3474_v39 = vpack.c.bf16 %v3462_v38, %v3458_v61  ;;  %v6398_v13 = vld [vmem:[%s8358_s5 + $0x68] sm:$0xff]   ;;  %v6409_v61 = vld [vmem:[%s8358_s5 + $0x98] sm:$0xff]   ;;  %v6412_v0 = vld [vmem:[%s8358_s5 + $0x10] sm:$0xff]  }
 0x447   : > { %v3391_v58 = vpop.f32.mrf.mxu0  ;;  %v3466_v33 = vpop.f32.mrf.mxu1  ;;  %v6414_v56 = vld [vmem:[%s8358_s5 + $0x48] sm:$0xff]  }
 0x448   : > { %v3402_v44 = vadd.f32 %v3391_v58, %v3079_v48  ;;  %3702 = vmatprep.mubr.bf16.mxu1 %v3474_v39  ;;  %v3475_v21 = vpack.c.bf16 %v3466_v33, %v3466_v33  ;;  %v6400_v48 = vld [vmem:[%s8358_s5 + $0x28] sm:$0xff]   ;;  %v6419_v58 = vld [vmem:[%s8358_s5 + $0xc0] sm:$0xff]  }
 0x449   : > { %v3393_v1 = vpop.f32.mrf.mxu0  ;;  %3703 = vmatmul.mubr.bf16.vlgmr.msra.gmra.mxu1 %v3473_v14  ;;  %v3468_v32 = vpop.f32.mrf.mxu1  ;;  %v6415_v38 = vld [vmem:[%s8358_s5 + $0xc8] sm:$0xff]   ;;  %v6418_v14 = vld [vmem:[%s8358_s5 + $0x40] sm:$0xff]  }
 0x44a   : > { %v3403_v59 = vadd.f32 %v3393_v1, %v3080_v37  ;;  %v3476_v60 = vpack.c.bf16 %v3468_v32, %v3468_v32  ;;  %5654 = vmatpush3.bf16.msra.mxu1 %v6393_v27  ;;  %v6402_v37 = vld [vmem:[%s8358_s5 + $0x60] sm:$0xff]   ;;  %v6417_v39 = vld [vmem:[%s8358_s5 + $0x88] sm:$0xff]   ;;  %v6422_v1 = vld [vmem:[%s8358_s5 + $0x178] sm:$0xff]  }
 0x44b   : > { %v3470_v53 = vpop.f32.mrf.mxu1  ;;  %v3395_v47 = vpop.f32.mrf.mxu0  ;;  %5655 = vmatprep.subr.bf16.mxu1 %v6395_v29  ;;  %v6420_v33 = vld [vmem:[%s8358_s5] sm:$0xff]   ;;  %v6423_v32 = vld [vmem:[%s8358_s5 + $0x1f8] sm:$0xff]  }
 0x44c   : > { %3712 = vmatprep.mubr.bf16.mxu1 %v3476_v60 }
 0x44d   : > { %v3471_v45 = vpop.f32.mrf.mxu1  ;;  %v3396_v23 = vpop.f32.mrf.mxu0 }
 0x44e   : > { %5656 = vmatpush3.bf16.msra.mxu1 %v6397_v16 }
 0x44f   : > { %5657 = vmatprep.subr.bf16.mxu1 %v6399_v35 }
 0x451   : > { %3713 = vmatmul.mubr.bf16.gmra.mxu1 %v3475_v21 }
 0x452   : > { %5658 = vmatpush3.bf16.msra.mxu1 %v6401_v20 }
 0x453   : > { %5659 = vmatprep.subr.bf16.mxu1 %v6403_v17 }
 0x456   : > { %5660 = vmatpush3.bf16.msra.mxu1 %v6405_v19 }
 0x509   : > { %v3704_v62 = vpop.f32.mrf.mxu1 }
 0x50a   : > { %v3721_v41 = vadd.f32 %v3704_v62, %v3398_v9  ;;  %v6407_v9 = vld [vmem:[%s8358_s5 + $0xd8] sm:$0xff]  }
 0x50b   : > { %v3706_v36 = vpop.f32.mrf.mxu1  ;;  %5661 = vmatprep.subr.bf16.mxu1 %v6407_v9 }
 0x50c   : > { %v3722_v50 = vadd.f32 %v3706_v36, %v3399_v22  ;;  %5662 = vmatpush3.bf16.msra.mxu1 %v6409_v61  ;;  %v6410_v22 = vld [vmem:[%s8358_s5 + $0x50] sm:$0xff]   ;;  %v3844_v36 = vlaneseq }
 0x50d   : > { %v3708_v24 = vpop.f32.mrf.mxu1  ;;  %5663 = vmatprep.subr.bf16.mxu1 %v6411_v3  ;;  %v6425_v3 = vld [vmem:[%s8358_s5 + $0x1b8] sm:$0xff]  }
 0x50e   : > { %v3727_v25 = vmax.f32 %v3721_v41, %v3722_v50  ;;  %v3723_v57 = vadd.f32 %v3708_v24, %v3400_v31  ;;  %v6413_v31 = vld [vmem:[%s8358_s5 + $0x90] sm:$0xff]   ;;  %v6520_v41 = vmov 1966171168   ;;  %vm8130_vm6 = vcmp.lt.s32.totalorder %v3844_v36, 128 }
 0x50f   : > { %v3710_v7 = vpop.f32.mrf.mxu1  ;;  %v3851_v50 = vunpack.c.l.s4 %v6520_v41  ;;  %v6445_v41 = vld [vmem:[%s8358_s5 + $0x190] sm:$0xff]  }
 0x510   : > { %v3724_v18 = vadd.f32 %v3710_v7, %v3401_v30  ;;  %5664 = vmatpush3.bf16.msra.mxu1 %v6413_v31  ;;  %v6416_v30 = vld [vmem:[%s8358_s5 + $0x8] sm:$0xff]   ;;  %v6427_v31 = vld [vmem:[%s8358_s5 + $0x1f0] sm:$0xff]  }
 0x511   : > { %v3714_v10 = vpop.f32.mrf.mxu1  ;;  %5665 = vmatprep.subr.bf16.mxu1 %v6415_v38  ;;  %v3852_v7 = vunpack.c.0.s8 %v3851_v50  ;;  %v6429_v38 = vld [vmem:[%s8358_s5 + $0x1b0] sm:$0xff]   ;;  %v6446_v50 = vld [vmem:[%s8358_s5 + $0x148] sm:$0xff]  }
 0x512   : > { %v3728_v52 = vmax.f32 %v3723_v57, %v3724_v18  ;;  %v3725_v54 = vadd.f32 %v3714_v10, %v3402_v44  ;;  %v6421_v44 = vld [vmem:[%s8358_s5 + $0x80] sm:$0xff]   ;;  %v8127_v57 = vshrl.u32 %v3844_v36, 7  ;;  %v6444_v36 = vld [vmem:[%s8358_s5 + $0x110] sm:$0xff]  }
 0x513   : > { %v3716_v63 = vpop.f32.mrf.mxu1  ;;  %v6451_v10 = vld [vmem:[%s8358_s5 + $0x1c0] sm:$0xff]  }
 0x514   : > { %v3730_v28 = vpack.c.bf16 %v3728_v52, %v3727_v25  ;;  %v3726_v5 = vadd.f32 %v3716_v63, %v3403_v59  ;;  %5666 = vmatpush3.bf16.msra.mxu1 %v6417_v39  ;;  %v3855_v18 = vsub.s32 %v3852_v7, %v8127_v57  ;;  %v3924_v27 = vsub.s32 1, %v8127_v57  ;;  %v6449_v7 = vld [vmem:[%s8358_s5 + $0x188] sm:$0xff]  }
 0x515   : > { %v3718_v2 = vpop.f32.mrf.mxu1  ;;  %5667 = vmatprep.subr.bf16.mxu1 %v6419_v58  ;;  %v3920_v29 = vsub.s32 0, %v8127_v57  ;;  %v3940_v16 = vsub.s32 5, %v8127_v57  ;;  %v6431_v58 = vld [vmem:[%s8358_s5 + $0x1e8] sm:$0xff]  }
 0x516   : > { %v3729_v49 = vmax.f32 %v3725_v54, %v3726_v5 }
 0x517   : > { %v3719_v11 = vpop.f32.mrf.mxu1 }
 0x518   : > { %v3731_v55 = vpack.c.bf16 %v3729_v49, %v3729_v49  ;;  %5668 = vmatpush3.bf16.msra.mxu1 %v6421_v44  ;;  %v6433_v44 = vld [vmem:[%s8358_s5 + $0x1a8] sm:$0xff]  }
 0x519   : > { %5697 = vmatprep.subr.bf16.mxu1 %v6423_v32  ;;  %v6435_v32 = vld [vmem:[%s8358_s5 + $0x1e0] sm:$0xff]  }
 0x51a   : > { %v3745_v42 = vsel %vm3743_vm4, %v3731_v55, 0 }
 0x51b   : > { %5743 = vmatpush3.bf16.msra.mxu0 %v3745_v42 }
 0x51c   : > { %5744 = vmatprep.subr.bf16.mxu0 %v6518_v43 }
 0x51f   : > { %5745 = vmatpush3.bf16.msra.mxu0 %v3730_v28 }
 0x520   : > { %5750 = vmatprep.subr.bf16.mxu0 %v6518_v43 }
 0x522   : > { %5747 = vmatmul.mubr.msk.bf16.vlgmr.msra.gmra.mxu0 %vm3739_vm5, %v6388_v51 }
 0x523   : > { %5751 = vmatpush3.bf16.msra.mxu0 %v3745_v42  ;;  %5754 = vmatprep.mubr.msk.bf16.mxu0 %vm6519_vm3, %v6518_v43 }
 0x524   : > { %5752 = vmatprep.subr.bf16.mxu0 %v6518_v43 }
 0x527   : > { %5753 = vmatpush3.bf16.msra.mxu0 %v3730_v28 }
 0x528   : > { %5631 = vmatprep.subr.bf16.mxu0 %v6390_v46 }
 0x52a   : > { %5755 = vmatmul.mubr.msk.bf16.vlgmr.msra.gmra.mxu0 %vm3739_vm5, %v6389_v12 }
 0x52b   : > { %5632 = vmatpush3.bf16.msra.mxu0 %v6392_v34 }
 0x52c   : > { %5633 = vmatprep.subr.bf16.mxu0 %v6394_v26  ;;  %v3932_v26 = vsub.s32 3, %v8127_v57 }
 0x52f   : > { %5634 = vmatpush3.bf16.msra.mxu0 %v6396_v15  ;;  %v3928_v15 = vsub.s32 2, %v8127_v57 }
 0x530   : > { %5635 = vmatprep.subr.bf16.mxu0 %v6398_v13  ;;  %v3948_v13 = vsub.s32 7, %v8127_v57 }
 0x533   : > { %5636 = vmatpush3.bf16.msra.mxu0 %v6400_v48 }
 0x534   : > { %5637 = vmatprep.subr.bf16.mxu0 %v6402_v37 }
 0x537   : > { %5638 = vmatpush3.bf16.msra.mxu0 %v6404_v40 }
 0x538   : > { %5639 = vmatprep.subr.bf16.mxu0 %v6406_v4 }
 0x53b   : > { %5640 = vmatpush3.bf16.msra.mxu0 %v6408_v8 }
 0x53c   : > { %5641 = vmatprep.subr.bf16.mxu0 %v6410_v22  ;;  %v6424_v22 = vld [vmem:[%s8358_s5 + $0x138] sm:$0xff]  }
 0x53f   : > { %5642 = vmatpush3.bf16.msra.mxu0 %v6412_v0  ;;  %v6426_v0 = vld [vmem:[%s8358_s5 + $0x170] sm:$0xff]  }
 0x540   : > { %5643 = vmatprep.subr.bf16.mxu0 %v6414_v56  ;;  %v6428_v56 = vld [vmem:[%s8358_s5 + $0x130] sm:$0xff]  }
 0x543   : > { %5644 = vmatpush3.bf16.msra.mxu0 %v6416_v30 }
 0x544   : > { %5645 = vmatprep.subr.bf16.mxu0 %v6418_v14  ;;  %v6430_v14 = vld [vmem:[%s8358_s5 + $0x168] sm:$0xff]  }
 0x547   : > { %5646 = vmatpush3.bf16.msra.mxu0 %v6420_v33  ;;  %v6432_v33 = vld [vmem:[%s8358_s5 + $0x128] sm:$0xff]  }
 0x548   : > { %5675 = vmatprep.subr.bf16.mxu0 %v6422_v1  ;;  %v6434_v1 = vld [vmem:[%s8358_s5 + $0x160] sm:$0xff]  }
 0x5e2   : > { %v3781_v59 = vpop.f32.mrf.mxu0 }
 0x5e4   : > { %v5748_v60 = vpop.f32.mrf.mxu0 }
 0x5e5   : > { %v6437_v60 = vld [vmem:[%s8358_s5 + $0x1a0] sm:$0xff]  }
 0x5e6   : > { %v3784_v53 = vpop.f32.mrf.mxu0 }
 0x5e8   : > { %v5749_v47 = vpop.f32.mrf.mxu0 }
 0x5e9   : > { %v6439_v47 = vld [vmem:[%s8358_s5 + $0x1d8] sm:$0xff]  }
 0x5ea   : > { %v3833_v45 = vpop.f32.mrf.mxu0 }
 0x5eb   : > { %v3840_v23 = vmax.f32 %v3781_v59, %v3833_v45  ;;  %v6436_v59 = vld [vmem:[%s8358_s5 + $0x120] sm:$0xff]   ;;  %v6440_v45 = vld [vmem:[%s8358_s5 + $0x118] sm:$0xff]  }
 0x5ec   : > { %v5756_v21 = vpop.f32.mrf.mxu0 }
 0x5ed   : > { %6494 = vtanh.f32 %v3840_v23  ;;  %v6441_v23 = vld [vmem:[%s8358_s5 + $0x198] sm:$0xff]   ;;  %v6442_v21 = vld [vmem:[%s8358_s5 + $0x150] sm:$0xff]  }
 0x5ee   : > { %v3836_v62 = vpop.f32.mrf.mxu0 }
 0x5ef   : > { %v3841_v24 = vmax.f32 %v3784_v53, %v3836_v62  ;;  %v6438_v53 = vld [vmem:[%s8358_s5 + $0x158] sm:$0xff]   ;;  %v6443_v62 = vld [vmem:[%s8358_s5 + $0x1d0] sm:$0xff]  }
 0x5f0   : > { %v5757_v25 = vpop.f32.mrf.mxu0 }
 0x5f1   : > { %6496 = vtanh.f32 %v3841_v24  ;;  %v6447_v24 = vld [vmem:[%s8358_s5 + $0x1c8] sm:$0xff]  }
 0x5f2   : > { %v6448_v25 = vld [vmem:[%s8358_s5 + $0x108] sm:$0xff]  }
 0x5fa   : > { %v6495_v52 = vpop.eup %6494 }
 0x5fb   : > { %3848 = vst.msk [vmem:[#allocation2] sm:$0x1] %vm8130_vm6, %v6495_v52  ;;  %v3856_v63 = vrot.slane %v6495_v52, %v3855_v18  ;;  %v3880_v28 = vcombine.high %v6495_v52, %v6495_v52  ;;  %v3936_v52 = vsub.s32 4, %v8127_v57 }
 0x5fd   : > { %v3857_v54 = vcombine.high %v3856_v63, %v3856_v63  ;;  %v3864_v5 = vrot.slane %v3856_v63, %v3855_v18  ;;  %v3887_v2 = vrot.slane %v3880_v28, %v3855_v18  ;;  %v3944_v63 = vsub.s32 6, %v8127_v57  ;;  %v6452_v28 = vld [vmem:[%s8358_s5 + $0x100] sm:$0xff]   ;;  %v6454_v57 = vld [vmem:[%s8358_s5 + $0x238] sm:$0xff]  }
 0x5fe   : > { %v6497_v49 = vpop.eup %6496 }
 0x5ff   : > { %v3871_v11 = vrot.slane %v3857_v54, %v3855_v18  ;;  %v3874_v55 = vcombine.high %v3864_v5, %v3864_v5  ;;  %v3894_v42 = vrot.slane %v3887_v2, %v3855_v18  ;;  %v3897_v51 = vcombine.high %v3887_v2, %v3887_v2  ;;  %3913 = vst.msk [vmem:[#allocation2 + $0x8] sm:$0x1] %vm8130_vm6, %v6497_v49  ;;  %v6453_v54 = vld [vmem:[%s8358_s5 + $0x180] sm:$0xff]  }
 0x601   : > { %3873 = vst.msk [vmem:[#allocation2 + $0x1] sm:$0x1] %vm8130_vm6, %v3871_v11  ;;  %3876 = vst.msk [vmem:[#allocation2 + $0x2] sm:$0x1] %vm8130_vm6, %v3874_v55  ;;  %v3877_v12 = vcombine.high %v3871_v11, %v3871_v11  ;;  %v3904_v46 = vrot.slane %v3897_v51, %v3855_v18  ;;  %v3907_v6 = vcombine.high %v3894_v42, %v3894_v42  ;;  %v6450_v18 = vld [vmem:[%s8358_s5 + $0x140] sm:$0xff]   ;;  %v6455_v55 = vld [vmem:[%s8358_s5 + $0x230] sm:$0xff]  }
 0x602   : > { %3896 = vst.msk [vmem:[#allocation2 + $0x4] sm:$0x1] %vm8130_vm6, %v3894_v42  ;;  %v6456_v42 = vld [vmem:[%s8358_s5 + $0x228] sm:$0xff]   ;;  %v6457_v51 = vld [vmem:[%s8358_s5 + $0x220] sm:$0xff]  }
 0x603   : > { %3879 = vst.msk [vmem:[#allocation2 + $0x3] sm:$0x1] %vm8130_vm6, %v3877_v12  ;;  %3906 = vst.msk [vmem:[#allocation2 + $0x5] sm:$0x1] %vm8130_vm6, %v3904_v46  ;;  %v3910_v34 = vcombine.high %v3904_v46, %v3904_v46  ;;  %v6458_v12 = vld [vmem:[%s8358_s5 + $0x218] sm:$0xff]   ;;  %v6459_v46 = vld [vmem:[%s8358_s5 + $0x210] sm:$0xff]  }
 0x604   : > { %3909 = vst.msk [vmem:[#allocation2 + $0x6] sm:$0x1] %vm8130_vm6, %v3907_v6  ;;  %v6460_v6 = vld [vmem:[%s8358_s5 + $0x208] sm:$0xff]  }
 0x605   : > { %3912 = vst.msk [vmem:[#allocation2 + $0x7] sm:$0x1] %vm8130_vm6, %v3910_v34  ;;  %v6461_v34 = vld [vmem:[%s8358_s5 + $0x200] sm:$0xff]  }
 0x60c   : > { %v8158_v35 = vld [vmem:[#allocation2] sm:$0xff] }
 0x60d   : > { %v3925_v48 = vrot.slane %v8158_v35, %v3924_v27  ;;  %v3933_v20 = vrot.slane %v8158_v35, %v3932_v26  ;;  %v3921_v37 = vrot.slane %v8158_v35, %v3920_v29  ;;  %v3929_v17 = vrot.slane %v8158_v35, %v3928_v15  ;;  %v5537_v27 = vld [vmem:[#allocation2 + $0x8] ss:$0 sm:$0xff]  ;;  %v6462_v29 = vld [vmem:[%s8359_s6 + $0x38] sm:$0xff]   ;;  %v6463_v15 = vld [vmem:[%s8359_s6 + $0x30] sm:$0xff]  }
 0x60e   : > { %v3941_v40 = vrot.slane %v8158_v35, %v3940_v16  ;;  %v3949_v19 = vrot.slane %v8158_v35, %v3948_v13  ;;  %v3937_v5 = vrot.slane %v8158_v35, %v3936_v52  ;;  %v3945_v2 = vrot.slane %v8158_v35, %v3944_v63  ;;  %v6464_v16 = vld [vmem:[%s8359_s6 + $0x28] sm:$0xff]   ;;  %v6465_v13 = vld [vmem:[%s8359_s6 + $0x20] sm:$0xff]   ;;  %v6466_v35 = vld [vmem:[%s8359_s6 + $0x18] sm:$0xff]  }
 0x60f   : > { %v3964_v4 = vpack.c.bf16 %v3925_v48, %v3925_v48  ;;  %v3966_v9 = vpack.c.bf16 %v3933_v20, %v3933_v20  ;;  %v3963_v8 = vpack.c.bf16 %v3921_v37, %v3921_v37  ;;  %v3965_v61 = vpack.c.bf16 %v3929_v17, %v3929_v17  ;;  %v6467_v48 = vld [vmem:[%s8359_s6 + $0x10] sm:$0xff]   ;;  %v6468_v20 = vld [vmem:[%s8359_s6 + $0x8] sm:$0xff]   ;;  %v6469_v37 = vld [vmem:[%s8359_s6] sm:$0xff]  }
 0x610   : > { %v3968_v30 = vpack.c.bf16 %v3941_v40, %v3941_v40  ;;  %v3970_v39 = vpack.c.bf16 %v3949_v19, %v3949_v19  ;;  %v3967_v49 = vpack.c.bf16 %v3937_v5, %v3937_v5  ;;  %v3969_v11 = vpack.c.bf16 %v3945_v2, %v3945_v2 }
 0x611   : > { %4580 = vmatprep.mubr.bf16.mxu0 %v3964_v4  ;;  %4620 = vmatprep.mubr.bf16.mxu1 %v3966_v9  ;;  %v3971_v26 = vpack.c.bf16 %v5537_v27, %v5537_v27 }
 0x612   : > { %4581 = vmatmul.mubr.bf16.vlgmr.msra.gmra.mxu0 %v3963_v8  ;;  %4621 = vmatmul.mubr.bf16.vlgmr.msra.gmra.mxu1 %v3965_v61 }
 0x613   : > { %5676 = vmatpush3.bf16.msra.mxu0 %v6424_v22  ;;  %5698 = vmatpush3.bf16.msra.mxu1 %v6425_v3 }
 0x614   : > { %5677 = vmatprep.subr.bf16.mxu0 %v6426_v0  ;;  %5699 = vmatprep.subr.bf16.mxu1 %v6427_v31 }
 0x615   : > { %4660 = vmatprep.mubr.bf16.mxu0 %v3968_v30  ;;  %4700 = vmatprep.mubr.bf16.mxu1 %v3970_v39 }
 0x617   : > { %5678 = vmatpush3.bf16.msra.mxu0 %v6428_v56  ;;  %5700 = vmatpush3.bf16.msra.mxu1 %v6429_v38 }
 0x618   : > { %5679 = vmatprep.subr.bf16.mxu0 %v6430_v14  ;;  %5701 = vmatprep.subr.bf16.mxu1 %v6431_v58 }
 0x61b   : > { %5680 = vmatpush3.bf16.msra.mxu0 %v6432_v33  ;;  %5702 = vmatpush3.bf16.msra.mxu1 %v6433_v44 }
 0x61c   : > { %5681 = vmatprep.subr.bf16.mxu0 %v6434_v1  ;;  %5703 = vmatprep.subr.bf16.mxu1 %v6435_v32 }
 0x61f   : > { %5682 = vmatpush3.bf16.msra.mxu0 %v6436_v59  ;;  %5704 = vmatpush3.bf16.msra.mxu1 %v6437_v60 }
 0x620   : > { %5683 = vmatprep.subr.bf16.mxu0 %v6438_v53  ;;  %5705 = vmatprep.subr.bf16.mxu1 %v6439_v47 }
 0x623   : > { %5684 = vmatpush3.bf16.msra.mxu0 %v6440_v45  ;;  %5706 = vmatpush3.bf16.msra.mxu1 %v6441_v23 }
 0x624   : > { %5685 = vmatprep.subr.bf16.mxu0 %v6442_v21  ;;  %5707 = vmatprep.subr.bf16.mxu1 %v6443_v62 }
 0x627   : > { %5686 = vmatpush3.bf16.msra.mxu0 %v6444_v36  ;;  %5708 = vmatpush3.bf16.msra.mxu1 %v6445_v41  ;;  %v6470_v41 = vld [vmem:[%s8360_s7 + $0x18] sm:$0xff]  }
 0x628   : > { %5687 = vmatprep.subr.bf16.mxu0 %v6446_v50  ;;  %5709 = vmatprep.subr.bf16.mxu1 %v6447_v24  ;;  %v6471_v50 = vld [vmem:[%s8360_s7 + $0x10] sm:$0xff]   ;;  %v6472_v24 = vld [vmem:[%s8360_s7 + $0x8] sm:$0xff]  }
 0x62b   : > { %5688 = vmatpush3.bf16.msra.mxu0 %v6448_v25  ;;  %5710 = vmatpush3.bf16.msra.mxu1 %v6449_v7  ;;  %v6473_v25 = vld [vmem:[%s8360_s7] sm:$0xff]  }
 0x62c   : > { %5689 = vmatprep.subr.bf16.mxu0 %v6450_v18  ;;  %5711 = vmatprep.subr.bf16.mxu1 %v6451_v10 }
 0x62f   : > { %5690 = vmatpush3.bf16.msra.mxu0 %v6452_v28  ;;  %5712 = vmatpush3.bf16.msra.mxu1 %v6453_v54 }
 0x630   : > { %5758 = vmatprep.subr.bf16.mxu0 %v6518_v43  ;;  %5778 = vmatprep.subr.bf16.mxu1 %v6518_v43 }
 0x632   : > { %4661 = vmatmul.mubr.bf16.vlgmr.msra.gmra.mxu0 %v3967_v49  ;;  %4701 = vmatmul.mubr.bf16.vlgmr.msra.gmra.mxu1 %v3969_v11 }
 0x633   : > { %5759 = vmatpush3.bf16.msra.mxu0 %v6454_v57  ;;  %5774 = vmatprep.mubr.msk.bf16.mxu0 %vm6519_vm3, %v6518_v43 }
 0x634   : > { %5760 = vmatprep.subr.bf16.mxu0 %v6518_v43  ;;  %5794 = vmatprep.mubr.msk.bf16.mxu1 %vm6519_vm3, %v6518_v43 }
 0x635   : > { %5779 = vmatpush3.bf16.msra.mxu1 %v6462_v29 }
 0x636   : > { %5780 = vmatprep.subr.bf16.mxu1 %v6518_v43 }
 0x637   : > { %5761 = vmatpush3.bf16.msra.mxu0 %v6455_v55 }
 0x638   : > { %5762 = vmatprep.subr.bf16.mxu0 %v6518_v43 }
 0x639   : > { %5781 = vmatpush3.bf16.msra.mxu1 %v6463_v15 }
 0x63a   : > { %5782 = vmatprep.subr.bf16.mxu1 %v6518_v43 }
 0x63b   : > { %5763 = vmatpush3.bf16.msra.mxu0 %v6456_v42 }
 0x63c   : > { %5764 = vmatprep.subr.bf16.mxu0 %v6518_v43 }
 0x63d   : > { %5783 = vmatpush3.bf16.msra.mxu1 %v6464_v16 }
 0x63e   : > { %5784 = vmatprep.subr.bf16.mxu1 %v6518_v43 }
 0x63f   : > { %5765 = vmatpush3.bf16.msra.mxu0 %v6457_v51 }
 0x640   : > { %5766 = vmatprep.subr.bf16.mxu0 %v6518_v43 }
 0x641   : > { %5785 = vmatpush3.bf16.msra.mxu1 %v6465_v13 }
 0x642   : > { %5786 = vmatprep.subr.bf16.mxu1 %v6518_v43 }
 0x643   : > { %5767 = vmatpush3.bf16.msra.mxu0 %v6458_v12 }
 0x644   : > { %5768 = vmatprep.subr.bf16.mxu0 %v6518_v43 }
 0x645   : > { %5787 = vmatpush3.bf16.msra.mxu1 %v6466_v35 }
 0x646   : > { %5788 = vmatprep.subr.bf16.mxu1 %v6518_v43 }
 0x647   : > { %5769 = vmatpush3.bf16.msra.mxu0 %v6459_v46 }
 0x648   : > { %5770 = vmatprep.subr.bf16.mxu0 %v6518_v43 }
 0x649   : > { %5789 = vmatpush3.bf16.msra.mxu1 %v6467_v48 }
 0x64a   : > { %5790 = vmatprep.subr.bf16.mxu1 %v6518_v43 }
 0x64b   : > { %5771 = vmatpush3.bf16.msra.mxu0 %v6460_v6 }
 0x64c   : > { %5772 = vmatprep.subr.bf16.mxu0 %v6518_v43 }
 0x64d   : > { %5791 = vmatpush3.bf16.msra.mxu1 %v6468_v20 }
 0x64e   : > { %5792 = vmatprep.subr.bf16.mxu1 %v6518_v43 }
 0x64f   : > { %5773 = vmatpush3.bf16.msra.mxu0 %v6461_v34 }
 0x650   : > { %5798 = vmatprep.subr.bf16.mxu0 %v6518_v43 }
 0x651   : > { %5793 = vmatpush3.bf16.msra.mxu1 %v6469_v37 }
 0x652   : > { %5775 = vmatmul.mubr.bf16.vlgmr.msra.gmra.mxu0 %v3971_v26 }
 0x653   : > { %5806 = vmatprep.mubr.msk.bf16.mxu0 %vm6519_vm3, %v6518_v43  ;;  %5799 = vmatpush3.bf16.msra.mxu0 %v6470_v41 }
 0x654   : > { %5800 = vmatprep.subr.bf16.mxu0 %v6518_v43 }
 0x657   : > { %5801 = vmatpush3.bf16.msra.mxu0 %v6471_v50 }
 0x658   : > { %5802 = vmatprep.subr.bf16.mxu0 %v6518_v43 }
 0x65b   : > { %5803 = vmatpush3.bf16.msra.mxu0 %v6472_v24 }
 0x65c   : > { %5804 = vmatprep.subr.bf16.mxu0 %v6518_v43 }
 0x65f   : > { %5805 = vmatpush3.bf16.msra.mxu0 %v6473_v25 }
 0x6d2   : > { %v5647_v17 = vpop.f32.mrf.mxu0  ;;  %v5669_v40 = vpop.f32.mrf.mxu1 }
 0x6d4   : > { %v5648_v19 = vpop.f32.mrf.mxu0  ;;  %v5670_v4 = vpop.f32.mrf.mxu1 }
 0x6d5   : > { %v5649_v58 = vadd.f32 %v5648_v19, %v5647_v17  ;;  %v5671_v33 = vadd.f32 %v5670_v4, %v5669_v40 }
 0x6d6   : > { %v5650_v9 = vpop.f32.mrf.mxu0  ;;  %v5672_v8 = vpop.f32.mrf.mxu1 }
 0x6d7   : > { %v4623_v1 = vadd.f32 %v5671_v33, %v5649_v58 }
 0x6d8   : > { %v5651_v61 = vpop.f32.mrf.mxu0  ;;  %v5673_v22 = vpop.f32.mrf.mxu1 }
 0x6f2   : > { %v5691_v3 = vpop.f32.mrf.mxu0  ;;  %v5713_v0 = vpop.f32.mrf.mxu1 }
 0x6f4   : > { %v5692_v31 = vpop.f32.mrf.mxu0  ;;  %v5714_v56 = vpop.f32.mrf.mxu1 }
 0x6f5   : > { %v5693_v44 = vadd.f32 %v5692_v31, %v5691_v3  ;;  %v5715_v59 = vadd.f32 %v5714_v56, %v5713_v0 }
 0x6f6   : > { %v5694_v38 = vpop.f32.mrf.mxu0  ;;  %v5716_v30 = vpop.f32.mrf.mxu1 }
 0x6f7   : > { %v4663_v32 = vadd.f32 %v5693_v44, %v4623_v1 }
 0x6f8   : > { %v5695_v39 = vpop.f32.mrf.mxu0  ;;  %v5717_v14 = vpop.f32.mrf.mxu1 }
 0x6f9   : > { %v4703_v60 = vadd.f32 %v5715_v59, %v4663_v32 }
 0x712   : > { %v4742_v53 = vpop.f32.mrf.mxu0 }
 0x713   : > { %v4743_v47 = vadd.f32 %v4742_v53, %v4703_v60 }
 0x714   : > { %v5776_v45 = vpop.f32.mrf.mxu0 }
 0x715   : > { %6498 = vtanh.f32 %v4743_v47 }
 0x716   : > { %v4745_v23 = vpop.f32.mrf.mxu0 }
 0x718   : > { %v5777_v21 = vpop.f32.mrf.mxu0 }
 0x722   : > { %v6499_v62 = vpop.eup %6498 }
 0x723   : > { %v4749_v36 = vpack.c.bf16 %v6499_v62, %v6499_v62 }
 0x725   : > { %5795 = vmatmul.mubr.bf16.vlgmr.msra.gmra.mxu1 %v4749_v36 }
 0x7e5   : > { %v4848_v7 = vpop.f32.mrf.mxu1 }
 0x7e6   : > { %6500 = vtanh.f32 %v4848_v7 }
 0x7e7   : > { %v5796_v18 = vpop.f32.mrf.mxu1 }
 0x7e9   : > { %v4851_v10 = vpop.f32.mrf.mxu1 }
 0x7eb   : > { %v5797_v52 = vpop.f32.mrf.mxu1 }
 0x7f3   : > { %v6501_v63 = vpop.eup %6500 }
 0x7f4   : > { %v4855_v28 = vpack.c.bf16 %v6501_v63, %v6501_v63 }
 0x7f6   : > { %5807 = vmatmul.mubr.msk.bf16.vlgmr.msra.gmra.mxu0 %vm4888_vm7, %v4855_v28 }
 0x8b6   : > { %v4926_v54 = vpop.f32.mrf.mxu0 }
 0x8b7   : > { %4932 = vst [vmem:[%s301_s18] sm:$0x1] %v4926_v54 }
 0x8b8   : > { %v5808_v43 = vpop.f32.mrf.mxu0 }
 0x8ba   : > { %v4929_v5 = vpop.f32.mrf.mxu0 }
 0x8bc   : > { %v5809_v2 = vpop.f32.mrf.mxu0 }
 0x8bd PF: > { %s18_s27 = sadd.s32 1, %s6515_s27  }
 0x8be   : > { %p15_p4 = scmp.ge.s32.totalorder %s18_s27, 10  }
 0x8c0   :  { %17 = sbr.rel (!%p15_p4) target bundleno = 1 (0x1), region = 91 }

</bundles_post_ra>
